<compile_context>
chip_gen: v6e
topology: v6e:2x2x1
jax: 0.10.0
libtpu: 0.0.40
codegen_flags: <defaults>
</compile_context>

<pallas_src>
import functools
import math

import jax
import jax.numpy as jnp
from jax import lax
from jax.experimental import pallas as pl
from jax.experimental.pallas import tpu as pltpu


# -----------------------------------------------------------------------------
# VMEM limit: derive from the hardware, leave headroom for compiler scratch,
# semaphores and double-buffering.  ~48 MiB on v7x (64 MiB physical),
# ~96-100 MiB on v5e/v6e (128 MiB physical).
# -----------------------------------------------------------------------------
@functools.lru_cache(maxsize=None)
def _vmem_limit_bytes():
    try:
        cap = int(pltpu.get_tpu_info().vmem_capacity_bytes)
        return min(100 * 1024 * 1024, (cap * 3) // 4)
    except Exception:
        return 32 * 1024 * 1024  # conservative fallback (default scoped limit)


def _pick_tile(dim, prefer=(512, 256, 128)):
    """Largest preferred K/N tile that divides `dim` (256+ feeds v6e/v7x MXU)."""
    for t in prefer:
        if dim >= t and dim % t == 0:
            return t
    return dim


def _pick_tm(m, cap=256):
    """Row tile: biggest <= cap that still yields >=2 parallel blocks (v7x 2 TCs)."""
    for t in (cap, cap // 2, 128, 64, 32, 16, 8):
        if t < m and m % t == 0:
            return t
    return m


def _pick_seq_tile(s, prefer=(256, 128, 64, 32, 16)):
    """Attention sequence tile (>=16 for bf16 sublane packing when possible)."""
    for t in prefer:
        if s >= t and s % t == 0:
            return t
    return s


# =============================================================================
# Kernel 1: tiled matmul + fused bias (+ optional ReLU) epilogue
#   x:(M,K) f32/bf16 (cast to bf16 in-kernel), w:(K,N) bf16, b:(N,) f32
# =============================================================================
def _matmul_bias_kernel(x_ref, w_ref, b_ref, o_ref, acc_ref, *, activation):
    @pl.when(pl.program_id(2) == 0)
    def _():
        acc_ref[...] = jnp.zeros_like(acc_ref)

    acc_ref[...] += jnp.dot(x_ref[...].astype(jnp.bfloat16), w_ref[...],
                            preferred_element_type=jnp.float32)

    @pl.when(pl.program_id(2) == pl.num_programs(2) - 1)
    def _():
        r = acc_ref[...] + b_ref[...]
        if activation == "relu":
            r = jnp.maximum(r, 0.0)
        o_ref[...] = r.astype(o_ref.dtype)


def matmul_bias(x, w, b, *, activation=None, out_dtype=jnp.bfloat16):
    M, K = x.shape
    K2, N = w.shape
    assert K == K2
    tm, tn, tk = _pick_tm(M), _pick_tile(N), _pick_tile(K)
    assert M % tm == 0 and N % tn == 0 and K % tk == 0
    b2 = b.reshape(1, N).astype(jnp.float32)
    kernel = functools.partial(_matmul_bias_kernel, activation=activation)
    return pl.pallas_call(
        kernel,
        out_shape=jax.ShapeDtypeStruct((M, N), out_dtype),
        grid_spec=pltpu.PrefetchScalarGridSpec(
            num_scalar_prefetch=0,
            grid=(M // tm, N // tn, K // tk),
            in_specs=[
                pl.BlockSpec((tm, tk), lambda i, j, k: (i, k)),
                pl.BlockSpec((tk, tn), lambda i, j, k: (k, j)),
                pl.BlockSpec((1, tn), lambda i, j, k: (0, j)),
            ],
            out_specs=pl.BlockSpec((tm, tn), lambda i, j, k: (i, j)),
            scratch_shapes=[pltpu.VMEM((tm, tn), jnp.float32)],
        ),
        compiler_params=pltpu.CompilerParams(
            dimension_semantics=("parallel", "parallel", "arbitrary"),
            vmem_limit_bytes=_vmem_limit_bytes(),
        ),
    )(x, w, b2)


# =============================================================================
# Kernel 2: tiled matmul + bias + residual add + LayerNorm fused in the
#           last-k epilogue (requires full row: tn == N).
#   out = LayerNorm(residual + x @ w + b)   (residual stream stays f32)
# =============================================================================
def _matmul_res_ln_kernel(x_ref, w_ref, b_ref, res_ref, g_ref, bt_ref,
                          o_ref, acc_ref, *, eps):
    @pl.when(pl.program_id(1) == 0)
    def _():
        acc_ref[...] = jnp.zeros_like(acc_ref)

    acc_ref[...] += jnp.dot(x_ref[...].astype(jnp.bfloat16), w_ref[...],
                            preferred_element_type=jnp.float32)

    @pl.when(pl.program_id(1) == pl.num_programs(1) - 1)
    def _():
        z = acc_ref[...] + b_ref[...] + res_ref[...].astype(jnp.float32)
        mean = jnp.mean(z, axis=-1, keepdims=True)
        zc = z - mean
        var = jnp.mean(zc * zc, axis=-1, keepdims=True)
        inv = lax.rsqrt(var + eps)
        o_ref[...] = (zc * inv * g_ref[...] + bt_ref[...]).astype(o_ref.dtype)


def matmul_bias_residual_layernorm(x, w, b, residual, gamma, beta, *, eps=1e-5):
    M, K = x.shape
    K2, N = w.shape
    assert K == K2 and residual.shape == (M, N)
    tm, tk = _pick_tm(M), _pick_tile(K)
    assert M % tm == 0 and K % tk == 0
    b2 = b.reshape(1, N).astype(jnp.float32)
    g2 = gamma.reshape(1, N).astype(jnp.float32)
    bt2 = beta.reshape(1, N).astype(jnp.float32)
    kernel = functools.partial(_matmul_res_ln_kernel, eps=eps)
    return pl.pallas_call(
        kernel,
        out_shape=jax.ShapeDtypeStruct((M, N), jnp.float32),
        grid_spec=pltpu.PrefetchScalarGridSpec(
            num_scalar_prefetch=0,
            grid=(M // tm, K // tk),
            in_specs=[
                pl.BlockSpec((tm, tk), lambda i, k: (i, k)),
                pl.BlockSpec((tk, N), lambda i, k: (k, 0)),
                pl.BlockSpec((1, N), lambda i, k: (0, 0)),
                pl.BlockSpec((tm, N), lambda i, k: (i, 0)),
                pl.BlockSpec((1, N), lambda i, k: (0, 0)),
                pl.BlockSpec((1, N), lambda i, k: (0, 0)),
            ],
            out_specs=pl.BlockSpec((tm, N), lambda i, k: (i, 0)),
            scratch_shapes=[pltpu.VMEM((tm, N), jnp.float32)],
        ),
        compiler_params=pltpu.CompilerParams(
            dimension_semantics=("parallel", "arbitrary"),
            vmem_limit_bytes=_vmem_limit_bytes(),
        ),
    )(x, w, b2, residual, g2, bt2)


# =============================================================================
# Kernel 3: flash attention (online softmax), merged-head layout.
#   q/k/v blocks are (tq, E) / (tkv, E); heads are static lane slices of E,
#   so the output block written back to HBM is the full lane-dense (tq, E) slab.
# =============================================================================
def _flash_attn_kernel(q_ref, k_ref, v_ref, o_ref, m_sc, l_sc, acc_sc,
                       *, scale, num_heads, head_dim):
    ki = pl.program_id(2)

    @pl.when(ki == 0)
    def _():
        m_sc[...] = jnp.full_like(m_sc, -jnp.inf)
        l_sc[...] = jnp.zeros_like(l_sc)
        acc_sc[...] = jnp.zeros_like(acc_sc)

    for h in range(num_heads):  # static unroll; heads live in the lane dim
        sl = slice(h * head_dim, (h + 1) * head_dim)
        q_h = q_ref[:, sl]                       # (tq, Dh)  bf16
        k_h = k_ref[:, sl]                       # (tkv, Dh) bf16
        v_h = v_ref[:, sl]                       # (tkv, Dh) bf16
        # q·kᵀ: contraction on the last dims lowers as an MXU matmul with a
        # transposed RHS operand (no separate XLU transpose per KV step).
        s = lax.dot_general(q_h, k_h, (((1,), (1,)), ((), ())),
                            preferred_element_type=jnp.float32) * scale
        m_prev = m_sc[h]
        m_new = jnp.maximum(m_prev, s.max(axis=-1, keepdims=True))
        alpha = jnp.exp(m_prev - m_new)
        p = jnp.exp(s - m_new)
        l_sc[h] = alpha * l_sc[h] + p.sum(axis=-1, keepdims=True)
        acc_sc[h] = alpha * acc_sc[h] + jnp.dot(
            p.astype(v_h.dtype), v_h, preferred_element_type=jnp.float32)
        m_sc[h] = m_new

    @pl.when(ki == pl.num_programs(2) - 1)
    def _():
        for h in range(num_heads):
            inv_l = pl.reciprocal(l_sc[h], approx=False)   # EUP, final step only
            o_ref[:, h * head_dim:(h + 1) * head_dim] = (
                acc_sc[h] * inv_l).astype(o_ref.dtype)


def flash_attention(q_src, kv_src, *, embed_dim, num_heads,
                    q_blk, k_blk, v_blk, out_dtype=jnp.bfloat16):
    """Attention over packed projections.

    q_src:  (B, Sq, nq*E)  — q occupies E-block `q_blk` of the last dim.
    kv_src: (B, Skv, nk*E) — k / v occupy E-blocks `k_blk` / `v_blk`.
    Returns (B, Sq, E) in merged-head layout (no head transposes anywhere).
    """
    B, Sq, _ = q_src.shape
    _, Skv, _ = kv_src.shape
    E = embed_dim
    head_dim = E // num_heads
    tq = _pick_seq_tile(Sq)
    tkv = _pick_seq_tile(Skv)
    assert Sq % tq == 0 and Skv % tkv == 0
    scale = 1.0 / math.sqrt(head_dim)
    kernel = functools.partial(_flash_attn_kernel, scale=scale,
                               num_heads=num_heads, head_dim=head_dim)
    return pl.pallas_call(
        kernel,
        out_shape=jax.ShapeDtypeStruct((B, Sq, E), out_dtype),
        grid_spec=pltpu.PrefetchScalarGridSpec(
            num_scalar_prefetch=0,
            grid=(B, Sq // tq, Skv // tkv),
            in_specs=[
                pl.BlockSpec((None, tq, E), lambda b, qi, ki: (b, qi, q_blk)),
                pl.BlockSpec((None, tkv, E), lambda b, qi, ki: (b, ki, k_blk)),
                pl.BlockSpec((None, tkv, E), lambda b, qi, ki: (b, ki, v_blk)),
            ],
            out_specs=pl.BlockSpec((None, tq, E), lambda b, qi, ki: (b, qi, 0)),
            scratch_shapes=[
                pltpu.VMEM((num_heads, tq, 1), jnp.float32),        # running max
                pltpu.VMEM((num_heads, tq, 1), jnp.float32),        # running denom
                pltpu.VMEM((num_heads, tq, head_dim), jnp.float32),  # accumulator
            ],
        ),
        compiler_params=pltpu.CompilerParams(
            dimension_semantics=("parallel", "parallel", "arbitrary"),
            vmem_limit_bytes=_vmem_limit_bytes(),
        ),
    )(q_src, kv_src, kv_src)


# =============================================================================
# Decoder layer / stack (wrapper glue is leading-dim reshapes only)
# =============================================================================
def transformer_decoder_layer(x2d, mem2d, p, *, B, S, Mem, E, num_heads):
    # ---- self-attention (fused QKV projection; packed q/k/v read by BlockSpec)
    qkv = matmul_bias(x2d, p["Wqkv_s"], p["bqkv_s"])          # (B*S, 3E) bf16
    attn = flash_attention(qkv.reshape(B, S, 3 * E), qkv.reshape(B, S, 3 * E),
                           embed_dim=E, num_heads=num_heads,
                           q_blk=0, k_blk=1, v_blk=2)          # (B, S, E) bf16
    x2d = matmul_bias_residual_layernorm(attn.reshape(B * S, E), p["Wo_s"],
                                         p["bo_s"], x2d, p["ln1_g"], p["ln1_b"])

    # ---- cross-attention (queries from decoder, keys/values from memory)
    q = matmul_bias(x2d, p["Wq_c"], p["bq_c"])                 # (B*S, E)  bf16
    kv = matmul_bias(mem2d, p["Wkv_c"], p["bkv_c"])            # (B*Mem, 2E) bf16
    attn = flash_attention(q.reshape(B, S, E), kv.reshape(B, Mem, 2 * E),
                           embed_dim=E, num_heads=num_heads,
                           q_blk=0, k_blk=0, v_blk=1)          # (B, S, E) bf16
    x2d = matmul_bias_residual_layernorm(attn.reshape(B * S, E), p["Wo_c"],
                                         p["bo_c"], x2d, p["ln2_g"], p["ln2_b"])

    # ---- FFN: bias+ReLU fused into matmul 1; matmul 2 fused with residual+LN
    h = matmul_bias(x2d, p["W1"], p["b1"], activation="relu")  # (B*S, F) bf16
    x2d = matmul_bias_residual_layernorm(h, p["W2"], p["b2"], x2d,
                                         p["ln3_g"], p["ln3_b"])
    return x2d


def transformer_decoder(x, memory, layers, *, num_heads):
    B, S, E = x.shape
    _, Mem, _ = memory.shape
    x2d = x.reshape(B * S, E)
    mem2d = memory.reshape(B * Mem, E)
    for p in layers:
        x2d = transformer_decoder_layer(x2d, mem2d, p, B=B, S=S, Mem=Mem, E=E,
                                        num_heads=num_heads)
    return x2d.reshape(B, S, E)


# =============================================================================
# Pure-JAX reference (same bf16 casts / f32 accumulation, direct softmax)
# =============================================================================
def _ref_mm(a, w, b):
    return jnp.dot(a.astype(jnp.bfloat16), w,
                   preferred_element_type=jnp.float32) + b.astype(jnp.float32)


def _ref_attention(q, k, v, H, Dh):
    B, Sq, E = q.shape
    _, Skv, _ = k.shape
    qh = q.reshape(B, Sq, H, Dh).transpose(0, 2, 1, 3)
    kh = k.reshape(B, Skv, H, Dh).transpose(0, 2, 1, 3)
    vh = v.reshape(B, Skv, H, Dh).transpose(0, 2, 1, 3)
    s = jnp.einsum("bhqd,bhkd->bhqk", qh, kh,
                   preferred_element_type=jnp.float32) / math.sqrt(Dh)
    pattn = jax.nn.softmax(s, axis=-1)
    o = jnp.einsum("bhqk,bhkd->bhqd", pattn.astype(jnp.bfloat16), vh,
                   preferred_element_type=jnp.float32)
    return o.transpose(0, 2, 1, 3).reshape(B, Sq, E)


def _ref_add_ln(x, y, g, b, eps=1e-5):
    z = x + y
    mean = jnp.mean(z, axis=-1, keepdims=True)
    zc = z - mean
    var = jnp.mean(zc * zc, axis=-1, keepdims=True)
    return zc * lax.rsqrt(var + eps) * g + b


def reference_decoder(x, memory, layers, *, num_heads):
    B, S, E = x.shape
    _, Mem, _ = memory.shape
    H, Dh = num_heads, E // num_heads
    x2d = x.reshape(B * S, E)
    mem2d = memory.reshape(B * Mem, E)
    for p in layers:
        qkv = _ref_mm(x2d, p["Wqkv_s"], p["bqkv_s"]).astype(jnp.bfloat16)
        q, k, v = qkv[:, :E], qkv[:, E:2 * E], qkv[:, 2 * E:]
        attn = _ref_attention(q.reshape(B, S, E), k.reshape(B, S, E),
                              v.reshape(B, S, E), H, Dh).astype(jnp.bfloat16)
        sa = _ref_mm(attn.reshape(B * S, E), p["Wo_s"], p["bo_s"])
        x2d = _ref_add_ln(x2d, sa, p["ln1_g"], p["ln1_b"])

        q = _ref_mm(x2d, p["Wq_c"], p["bq_c"]).astype(jnp.bfloat16)
        kv = _ref_mm(mem2d, p["Wkv_c"], p["bkv_c"]).astype(jnp.bfloat16)
        k, v = kv[:, :E], kv[:, E:]
        attn = _ref_attention(q.reshape(B, S, E), k.reshape(B, Mem, E),
                              v.reshape(B, Mem, E), H, Dh).astype(jnp.bfloat16)
        ca = _ref_mm(attn.reshape(B * S, E), p["Wo_c"], p["bo_c"])
        x2d = _ref_add_ln(x2d, ca, p["ln2_g"], p["ln2_b"])

        h = jnp.maximum(_ref_mm(x2d, p["W1"], p["b1"]), 0.0).astype(jnp.bfloat16)
        f = _ref_mm(h, p["W2"], p["b2"])
        x2d = _ref_add_ln(x2d, f, p["ln3_g"], p["ln3_b"])
    return x2d.reshape(B, S, E)


# =============================================================================
# Parameter init (self-attention QKV pre-fused into one (E, 3E) projection)
# =============================================================================
def init_layer_params(key, E, F):
    ks = jax.random.split(key, 20)

    def w(k, shape):
        fan_in = shape[0]
        return (jax.random.normal(k, shape, jnp.float32)
                / math.sqrt(fan_in)).astype(jnp.bfloat16)

    def b(k, n):
        return 0.02 * jax.random.normal(k, (n,), jnp.float32)

    return dict(
        Wqkv_s=w(ks[0], (E, 3 * E)), bqkv_s=b(ks[1], 3 * E),
        Wo_s=w(ks[2], (E, E)),       bo_s=b(ks[3], E),
        Wq_c=w(ks[4], (E, E)),       bq_c=b(ks[5], E),
        Wkv_c=w(ks[6], (E, 2 * E)),  bkv_c=b(ks[7], 2 * E),
        Wo_c=w(ks[8], (E, E)),       bo_c=b(ks[9], E),
        W1=w(ks[10], (E, F)),        b1=b(ks[11], F),
        W2=w(ks[12], (F, E)),        b2=b(ks[13], E),
        ln1_g=1.0 + 0.1 * jax.random.normal(ks[14], (E,), jnp.float32),
        ln1_b=0.02 * jax.random.normal(ks[15], (E,), jnp.float32),
        ln2_g=jnp.ones((E,), jnp.float32),
        ln2_b=jnp.zeros((E,), jnp.float32),
        ln3_g=1.0 + 0.1 * jax.random.normal(ks[16], (E,), jnp.float32),
        ln3_b=0.02 * jax.random.normal(ks[17], (E,), jnp.float32),
    )


# =============================================================================
# Main
# =============================================================================
if __name__ == "__main__":
    B, S, M_SRC = 2, 16, 16          # batch, target seq, memory seq
    E, H, F = 128, 2, 256            # d_model (lane-dense), heads, d_ff
    NUM_LAYERS = 2

    key = jax.random.PRNGKey(0)
    k_x, k_m, k_p = jax.random.split(key, 3)
    x = jax.random.normal(k_x, (B, S, E), jnp.float32)
    memory = jax.random.normal(k_m, (B, M_SRC, E), jnp.float32)
    layer_keys = jax.random.split(k_p, NUM_LAYERS)
    layers = [init_layer_params(layer_keys[i], E, F) for i in range(NUM_LAYERS)]

    fwd = jax.jit(functools.partial(transformer_decoder, num_heads=H))
    out = jax.block_until_ready(fwd(x, memory, layers))

    assert out.shape == (B, S, E)
    assert bool(jnp.all(jnp.isfinite(out)))

    ref = reference_decoder(x, memory, layers, num_heads=H)
    # bf16 MXU inputs + bf16 activation intermediates => loose tolerance.
    if not jnp.allclose(out, ref, atol=5e-2, rtol=5e-2):
        raise AssertionError(
            f"mismatch vs reference, max abs diff="
            f"{float(jnp.max(jnp.abs(out - ref)))}")

    print("KERNEL_OK")
</pallas_src>

<mosaic_0001>
module attributes {stable_mosaic.version = 11 : i64} {
  func.func @_matmul_res_ln_kernel(%arg0: i32, %arg1: i32, %arg2: memref<16x128xbf16, #tpu.memory_space<vmem>>, %arg3: memref<128x128xbf16, #tpu.memory_space<vmem>>, %arg4: memref<1x128xf32, #tpu.memory_space<vmem>>, %arg5: memref<16x128xf32, #tpu.memory_space<vmem>>, %arg6: memref<1x128xf32, #tpu.memory_space<vmem>>, %arg7: memref<1x128xf32, #tpu.memory_space<vmem>>, %arg8: memref<16x128xf32, #tpu.memory_space<vmem>>, %arg9: memref<16x128xf32, #tpu.memory_space<vmem>>) attributes {dimension_semantics = [#tpu.dimension_semantics<parallel>, #tpu.dimension_semantics<arbitrary>], iteration_bounds = array<i64: 2, 1>, scalar_prefetch = 0 : i64, scratch_operands = 1 : i64, tpu.core_type = #tpu.core_type<tc>, window_params = [{transform_indices = @transform_0, window_bounds = array<i64: 16, 128>}, {transform_indices = @transform_1, window_bounds = array<i64: 128, 128>}, {pipeline_mode = #tpu.pipeline_mode<synchronous>, transform_indices = @transform_2, window_bounds = array<i64: 1, 128>}, {transform_indices = @transform_3, window_bounds = array<i64: 16, 128>}, {pipeline_mode = #tpu.pipeline_mode<synchronous>, transform_indices = @transform_4, window_bounds = array<i64: 1, 128>}, {pipeline_mode = #tpu.pipeline_mode<synchronous>, transform_indices = @transform_5, window_bounds = array<i64: 1, 128>}, {transform_indices = @transform_6, window_bounds = array<i64: 16, 128>}]} {
    %c0_i32 = arith.constant 0 : i32
    %0 = arith.cmpi eq, %arg1, %c0_i32 : i32
    %1 = arith.extui %0 : i1 to i32
    %c0_i32_0 = arith.constant 0 : i32
    %2 = arith.cmpi ne, %1, %c0_i32_0 : i32
    scf.if %2 {
      %cst_10 = arith.constant 0.000000e+00 : f32
      %12 = vector.broadcast %cst_10 : f32 to vector<16x128xf32>
      %c0_11 = arith.constant 0 : index
      %c0_12 = arith.constant 0 : index
      %13 = vector.load %arg9[%c0_11, %c0_12] : memref<16x128xf32, #tpu.memory_space<vmem>>, vector<16x128xf32>
      tpu.vector_store %arg9[%c0_11, %c0_12], %12 {strides = array<i32>} : memref<16x128xf32, #tpu.memory_space<vmem>>, vector<16x128xf32>,
    } else {
    }
    %c0 = arith.constant 0 : index
    %c0_1 = arith.constant 0 : index
    %3 = vector.load %arg9[%c0, %c0_1] : memref<16x128xf32, #tpu.memory_space<vmem>>, vector<16x128xf32>
    %c0_2 = arith.constant 0 : index
    %c0_3 = arith.constant 0 : index
    %4 = vector.load %arg2[%c0_2, %c0_3] : memref<16x128xbf16, #tpu.memory_space<vmem>>, vector<16x128xbf16>
    %c0_4 = arith.constant 0 : index
    %c0_5 = arith.constant 0 : index
    %5 = vector.load %arg3[%c0_4, %c0_5] : memref<128x128xbf16, #tpu.memory_space<vmem>>, vector<128x128xbf16>
    %cst = arith.constant dense<0.000000e+00> : vector<16x128xf32>
    %6 = tpu.matmul %4, %5, %cst {dimension_numbers = #tpu.dot_dimension_numbers<[1], [0], [0], [1], [0, 0, 1, 1], [], []>} : vector<16x128xbf16>, vector<128x128xbf16>, vector<16x128xf32> -> vector<16x128xf32>
    %7 = arith.addf %3, %6 : vector<16x128xf32>
    %c0_6 = arith.constant 0 : index
    %c0_7 = arith.constant 0 : index
    %8 = vector.load %arg9[%c0_6, %c0_7] : memref<16x128xf32, #tpu.memory_space<vmem>>, vector<16x128xf32>
    tpu.vector_store %arg9[%c0_6, %c0_7], %7 {strides = array<i32>} : memref<16x128xf32, #tpu.memory_space<vmem>>, vector<16x128xf32>,
    %c0_i32_8 = arith.constant 0 : i32
    %9 = arith.cmpi eq, %arg1, %c0_i32_8 : i32
    %10 = arith.extui %9 : i1 to i32
    %c0_i32_9 = arith.constant 0 : i32
    %11 = arith.cmpi ne, %10, %c0_i32_9 : i32
    scf.if %11 {
      %c0_10 = arith.constant 0 : index
      %c0_11 = arith.constant 0 : index
      %12 = vector.load %arg9[%c0_10, %c0_11] : memref<16x128xf32, #tpu.memory_space<vmem>>, vector<16x128xf32>
      %c0_12 = arith.constant 0 : index
      %c0_13 = arith.constant 0 : index
      %13 = vector.load %arg4[%c0_12, %c0_13] : memref<1x128xf32, #tpu.memory_space<vmem>>, vector<1x128xf32>
      %14 = vector.broadcast %13 : vector<1x128xf32> to vector<16x128xf32>
      %15 = arith.addf %12, %14 : vector<16x128xf32>
      %c0_14 = arith.constant 0 : index
      %c0_15 = arith.constant 0 : index
      %16 = vector.load %arg5[%c0_14, %c0_15] : memref<16x128xf32, #tpu.memory_space<vmem>>, vector<16x128xf32>
      %17 = arith.addf %15, %16 : vector<16x128xf32>
      %cst_16 = arith.constant dense<0.000000e+00> : vector<16xf32>
      %18 = vector.multi_reduction <add>, %17, %cst_16 [1] : vector<16x128xf32> to vector<16xf32>
      %19 = vector.shape_cast %18 : vector<16xf32> to vector<16x1xf32>
      %cst_17 = arith.constant 1.280000e+02 : f32
      %20 = vector.broadcast %cst_17 : f32 to vector<16x1xf32>
      %21 = arith.divf %19, %20 : vector<16x1xf32>
      %22 = vector.broadcast %21 : vector<16x1xf32> to vector<16x128xf32>
      %23 = arith.subf %17, %22 : vector<16x128xf32>
      %24 = arith.mulf %23, %23 : vector<16x128xf32>
      %cst_18 = arith.constant dense<0.000000e+00> : vector<16xf32>
      %25 = vector.multi_reduction <add>, %24, %cst_18 [1] : vector<16x128xf32> to vector<16xf32>
      %26 = vector.shape_cast %25 : vector<16xf32> to vector<16x1xf32>
      %cst_19 = arith.constant 1.280000e+02 : f32
      %27 = vector.broadcast %cst_19 : f32 to vector<16x1xf32>
      %28 = arith.divf %26, %27 : vector<16x1xf32>
      %cst_20 = arith.constant 9.99999974E-6 : f32
      %29 = vector.broadcast %cst_20 : f32 to vector<16x1xf32>
      %30 = arith.addf %28, %29 : vector<16x1xf32>
      %31 = math.rsqrt %30 : vector<16x1xf32>
      %32 = vector.broadcast %31 : vector<16x1xf32> to vector<16x128xf32>
      %33 = arith.mulf %23, %32 : vector<16x128xf32>
      %c0_21 = arith.constant 0 : index
      %c0_22 = arith.constant 0 : index
      %34 = vector.load %arg6[%c0_21, %c0_22] : memref<1x128xf32, #tpu.memory_space<vmem>>, vector<1x128xf32>
      %35 = vector.broadcast %34 : vector<1x128xf32> to vector<16x128xf32>
      %36 = arith.mulf %33, %35 : vector<16x128xf32>
      %c0_23 = arith.constant 0 : index
      %c0_24 = arith.constant 0 : index
      %37 = vector.load %arg7[%c0_23, %c0_24] : memref<1x128xf32, #tpu.memory_space<vmem>>, vector<1x128xf32>
      %38 = vector.broadcast %37 : vector<1x128xf32> to vector<16x128xf32>
      %39 = arith.addf %36, %38 : vector<16x128xf32>
      %c0_25 = arith.constant 0 : index
      %c0_26 = arith.constant 0 : index
      %40 = vector.load %arg8[%c0_25, %c0_26] : memref<16x128xf32, #tpu.memory_space<vmem>>, vector<16x128xf32>
      tpu.vector_store %arg8[%c0_25, %c0_26], %39 {strides = array<i32>} : memref<16x128xf32, #tpu.memory_space<vmem>>, vector<16x128xf32>,
    } else {
    }
    return
  }
  func.func @transform_0(%arg0: i32, %arg1: i32) -> (i32, i32) {
    %c0_i32 = arith.constant 0 : i32
    return %arg0, %arg1 : i32, i32
  }
  func.func @transform_1(%arg0: i32, %arg1: i32) -> (i32, i32) {
    %c0_i32 = arith.constant 0 : i32
    %c0_i32_0 = arith.constant 0 : i32
    return %arg1, %c0_i32 : i32, i32
  }
  func.func @transform_2(%arg0: i32, %arg1: i32) -> (i32, i32) {
    %c0_i32 = arith.constant 0 : i32
    %c0_i32_0 = arith.constant 0 : i32
    %c0_i32_1 = arith.constant 0 : i32
    return %c0_i32, %c0_i32_0 : i32, i32
  }
  func.func @transform_3(%arg0: i32, %arg1: i32) -> (i32, i32) {
    %c0_i32 = arith.constant 0 : i32
    %c0_i32_0 = arith.constant 0 : i32
    return %arg0, %c0_i32 : i32, i32
  }
  func.func @transform_4(%arg0: i32, %arg1: i32) -> (i32, i32) {
    %c0_i32 = arith.constant 0 : i32
    %c0_i32_0 = arith.constant 0 : i32
    %c0_i32_1 = arith.constant 0 : i32
    return %c0_i32, %c0_i32_0 : i32, i32
  }
  func.func @transform_5(%arg0: i32, %arg1: i32) -> (i32, i32) {
    %c0_i32 = arith.constant 0 : i32
    %c0_i32_0 = arith.constant 0 : i32
    %c0_i32_1 = arith.constant 0 : i32
    return %c0_i32, %c0_i32_0 : i32, i32
  }
  func.func @transform_6(%arg0: i32, %arg1: i32) -> (i32, i32) {
    %c0_i32 = arith.constant 0 : i32
    %c0_i32_0 = arith.constant 0 : i32
    return %arg0, %c0_i32 : i32, i32
  }
}

module attributes {stable_mosaic.version = 11 : i64} {
  func.func @_matmul_bias_kernel(%arg0: i32, %arg1: i32, %arg2: i32, %arg3: memref<16x128xf32, #tpu.memory_space<vmem>>, %arg4: memref<128x128xbf16, #tpu.memory_space<vmem>>, %arg5: memref<1x128xf32, #tpu.memory_space<vmem>>, %arg6: memref<16x128xbf16, #tpu.memory_space<vmem>>, %arg7: memref<16x128xf32, #tpu.memory_space<vmem>>) attributes {dimension_semantics = [#tpu.dimension_semantics<parallel>, #tpu.dimension_semantics<parallel>, #tpu.dimension_semantics<arbitrary>], iteration_bounds = array<i64: 2, 3, 1>, scalar_prefetch = 0 : i64, scratch_operands = 1 : i64, tpu.core_type = #tpu.core_type<tc>, window_params = [{transform_indices = @transform_0, window_bounds = array<i64: 16, 128>}, {transform_indices = @transform_1, window_bounds = array<i64: 128, 128>}, {transform_indices = @transform_2, window_bounds = array<i64: 1, 128>}, {transform_indices = @transform_3, window_bounds = array<i64: 16, 128>}]} {
    %c0_i32 = arith.constant 0 : i32
    %0 = arith.cmpi eq, %arg2, %c0_i32 : i32
    %1 = arith.extui %0 : i1 to i32
    %c0_i32_0 = arith.constant 0 : i32
    %2 = arith.cmpi ne, %1, %c0_i32_0 : i32
    scf.if %2 {
      %cst_10 = arith.constant 0.000000e+00 : f32
      %13 = vector.broadcast %cst_10 : f32 to vector<16x128xf32>
      %c0_11 = arith.constant 0 : index
      %c0_12 = arith.constant 0 : index
      %14 = vector.load %arg7[%c0_11, %c0_12] : memref<16x128xf32, #tpu.memory_space<vmem>>, vector<16x128xf32>
      tpu.vector_store %arg7[%c0_11, %c0_12], %13 {strides = array<i32>} : memref<16x128xf32, #tpu.memory_space<vmem>>, vector<16x128xf32>,
    } else {
    }
    %c0 = arith.constant 0 : index
    %c0_1 = arith.constant 0 : index
    %3 = vector.load %arg7[%c0, %c0_1] : memref<16x128xf32, #tpu.memory_space<vmem>>, vector<16x128xf32>
    %c0_2 = arith.constant 0 : index
    %c0_3 = arith.constant 0 : index
    %4 = vector.load %arg3[%c0_2, %c0_3] : memref<16x128xf32, #tpu.memory_space<vmem>>, vector<16x128xf32>
    %5 = arith.truncf %4 : vector<16x128xf32> to vector<16x128xbf16>
    %c0_4 = arith.constant 0 : index
    %c0_5 = arith.constant 0 : index
    %6 = vector.load %arg4[%c0_4, %c0_5] : memref<128x128xbf16, #tpu.memory_space<vmem>>, vector<128x128xbf16>
    %cst = arith.constant dense<0.000000e+00> : vector<16x128xf32>
    %7 = tpu.matmul %5, %6, %cst {dimension_numbers = #tpu.dot_dimension_numbers<[1], [0], [0], [1], [0, 0, 1, 1], [], []>} : vector<16x128xbf16>, vector<128x128xbf16>, vector<16x128xf32> -> vector<16x128xf32>
    %8 = arith.addf %3, %7 : vector<16x128xf32>
    %c0_6 = arith.constant 0 : index
    %c0_7 = arith.constant 0 : index
    %9 = vector.load %arg7[%c0_6, %c0_7] : memref<16x128xf32, #tpu.memory_space<vmem>>, vector<16x128xf32>
    tpu.vector_store %arg7[%c0_6, %c0_7], %8 {strides = array<i32>} : memref<16x128xf32, #tpu.memory_space<vmem>>, vector<16x128xf32>,
    %c0_i32_8 = arith.constant 0 : i32
    %10 = arith.cmpi eq, %arg2, %c0_i32_8 : i32
    %11 = arith.extui %10 : i1 to i32
    %c0_i32_9 = arith.constant 0 : i32
    %12 = arith.cmpi ne, %11, %c0_i32_9 : i32
    scf.if %12 {
      %c0_10 = arith.constant 0 : index
      %c0_11 = arith.constant 0 : index
      %13 = vector.load %arg7[%c0_10, %c0_11] : memref<16x128xf32, #tpu.memory_space<vmem>>, vector<16x128xf32>
      %c0_12 = arith.constant 0 : index
      %c0_13 = arith.constant 0 : index
      %14 = vector.load %arg5[%c0_12, %c0_13] : memref<1x128xf32, #tpu.memory_space<vmem>>, vector<1x128xf32>
      %15 = vector.broadcast %14 : vector<1x128xf32> to vector<16x128xf32>
      %16 = arith.addf %13, %15 : vector<16x128xf32>
      %17 = arith.truncf %16 : vector<16x128xf32> to vector<16x128xbf16>
      %c0_14 = arith.constant 0 : index
      %c0_15 = arith.constant 0 : index
      %18 = vector.load %arg6[%c0_14, %c0_15] : memref<16x128xbf16, #tpu.memory_space<vmem>>, vector<16x128xbf16>
      tpu.vector_store %arg6[%c0_14, %c0_15], %17 {strides = array<i32>} : memref<16x128xbf16, #tpu.memory_space<vmem>>, vector<16x128xbf16>,
    } else {
    }
    return
  }
  func.func @transform_0(%arg0: i32, %arg1: i32, %arg2: i32) -> (i32, i32) {
    %c0_i32 = arith.constant 0 : i32
    return %arg0, %arg2 : i32, i32
  }
  func.func @transform_1(%arg0: i32, %arg1: i32, %arg2: i32) -> (i32, i32) {
    %c0_i32 = arith.constant 0 : i32
    return %arg2, %arg1 : i32, i32
  }
  func.func @transform_2(%arg0: i32, %arg1: i32, %arg2: i32) -> (i32, i32) {
    %c0_i32 = arith.constant 0 : i32
    %c0_i32_0 = arith.constant 0 : i32
    return %c0_i32, %arg1 : i32, i32
  }
  func.func @transform_3(%arg0: i32, %arg1: i32, %arg2: i32) -> (i32, i32) {
    %c0_i32 = arith.constant 0 : i32
    return %arg0, %arg1 : i32, i32
  }
}

module attributes {stable_mosaic.version = 11 : i64} {
  func.func @_flash_attn_kernel(%arg0: i32, %arg1: i32, %arg2: i32, %arg3: memref<1x16x128xbf16, #tpu.memory_space<vmem>>, %arg4: memref<1x16x128xbf16, #tpu.memory_space<vmem>>, %arg5: memref<1x16x128xbf16, #tpu.memory_space<vmem>>, %arg6: memref<1x16x128xbf16, #tpu.memory_space<vmem>>, %arg7: memref<2x16x1xf32, #tpu.memory_space<vmem>>, %arg8: memref<2x16x1xf32, #tpu.memory_space<vmem>>, %arg9: memref<2x16x64xf32, #tpu.memory_space<vmem>>) attributes {dimension_semantics = [#tpu.dimension_semantics<parallel>, #tpu.dimension_semantics<parallel>, #tpu.dimension_semantics<arbitrary>], iteration_bounds = array<i64: 2, 1, 1>, scalar_prefetch = 0 : i64, scratch_operands = 3 : i64, tpu.core_type = #tpu.core_type<tc>, window_params = [{transform_indices = @transform_0, window_bounds = array<i64: 1, 16, 128>}, {transform_indices = @transform_1, window_bounds = array<i64: 1, 16, 128>}, {transform_indices = @transform_2, window_bounds = array<i64: 1, 16, 128>}, {transform_indices = @transform_3, window_bounds = array<i64: 1, 16, 128>}]} {
    %c0_i32 = arith.constant 0 : i32
    %0 = arith.cmpi eq, %arg2, %c0_i32 : i32
    %1 = arith.extui %0 : i1 to i32
    %c0_i32_0 = arith.constant 0 : i32
    %2 = arith.cmpi ne, %1, %c0_i32_0 : i32
    scf.if %2 {
      %cst_63 = arith.constant 0xFF800000 : f32
      %88 = vector.broadcast %cst_63 : f32 to vector<2x16x1xf32>
      %c0_64 = arith.constant 0 : index
      %c0_65 = arith.constant 0 : index
      %c0_66 = arith.constant 0 : index
      %89 = vector.load %arg7[%c0_64, %c0_65, %c0_66] : memref<2x16x1xf32, #tpu.memory_space<vmem>>, vector<2x16x1xf32>
      tpu.vector_store %arg7[%c0_64, %c0_65, %c0_66], %88 {strides = array<i32>} : memref<2x16x1xf32, #tpu.memory_space<vmem>>, vector<2x16x1xf32>,
      %cst_67 = arith.constant 0.000000e+00 : f32
      %90 = vector.broadcast %cst_67 : f32 to vector<2x16x1xf32>
      %c0_68 = arith.constant 0 : index
      %c0_69 = arith.constant 0 : index
      %c0_70 = arith.constant 0 : index
      %91 = vector.load %arg8[%c0_68, %c0_69, %c0_70] : memref<2x16x1xf32, #tpu.memory_space<vmem>>, vector<2x16x1xf32>
      tpu.vector_store %arg8[%c0_68, %c0_69, %c0_70], %90 {strides = array<i32>} : memref<2x16x1xf32, #tpu.memory_space<vmem>>, vector<2x16x1xf32>,
      %cst_71 = arith.constant 0.000000e+00 : f32
      %92 = vector.broadcast %cst_71 : f32 to vector<2x16x64xf32>
      %c0_72 = arith.constant 0 : index
      %c0_73 = arith.constant 0 : index
      %c0_74 = arith.constant 0 : index
      %93 = vector.load %arg9[%c0_72, %c0_73, %c0_74] : memref<2x16x64xf32, #tpu.memory_space<vmem>>, vector<2x16x64xf32>
      tpu.vector_store %arg9[%c0_72, %c0_73, %c0_74], %92 {strides = array<i32>} : memref<2x16x64xf32, #tpu.memory_space<vmem>>, vector<2x16x64xf32>,
    } else {
    }
    %c0 = arith.constant 0 : index
    %c0_1 = arith.constant 0 : index
    %c0_2 = arith.constant 0 : index
    %3 = vector.load %arg3[%c0, %c0_1, %c0_2] : memref<1x16x128xbf16, #tpu.memory_space<vmem>>, vector<1x16x64xbf16>
    %4 = vector.shape_cast %3 : vector<1x16x64xbf16> to vector<16x64xbf16>
    %c0_3 = arith.constant 0 : index
    %c0_4 = arith.constant 0 : index
    %c0_5 = arith.constant 0 : index
    %5 = vector.load %arg4[%c0_3, %c0_4, %c0_5] : memref<1x16x128xbf16, #tpu.memory_space<vmem>>, vector<1x16x64xbf16>
    %6 = vector.shape_cast %5 : vector<1x16x64xbf16> to vector<16x64xbf16>
    %c0_6 = arith.constant 0 : index
    %c0_7 = arith.constant 0 : index
    %c0_8 = arith.constant 0 : index
    %7 = vector.load %arg5[%c0_6, %c0_7, %c0_8] : memref<1x16x128xbf16, #tpu.memory_space<vmem>>, vector<1x16x64xbf16>
    %8 = vector.shape_cast %7 : vector<1x16x64xbf16> to vector<16x64xbf16>
    %cst = arith.constant dense<0.000000e+00> : vector<16x16xf32>
    %9 = tpu.matmul %4, %6, %cst {dimension_numbers = #tpu.dot_dimension_numbers<[1], [1], [0], [0], [0, 0, 1, 0], [], []>} : vector<16x64xbf16>, vector<16x64xbf16>, vector<16x16xf32> -> vector<16x16xf32>
    %cst_9 = arith.constant 1.250000e-01 : f32
    %10 = vector.broadcast %cst_9 : f32 to vector<16x16xf32>
    %11 = arith.mulf %9, %10 : vector<16x16xf32>
    %c0_10 = arith.constant 0 : index
    %c0_11 = arith.constant 0 : index
    %c0_12 = arith.constant 0 : index
    %12 = vector.load %arg7[%c0_10, %c0_11, %c0_12] : memref<2x16x1xf32, #tpu.memory_space<vmem>>, vector<1x16x1xf32>
    %13 = vector.shape_cast %12 : vector<1x16x1xf32> to vector<16x1xf32>
    %cst_13 = arith.constant dense<0xFF800000> : vector<16xf32>
    %14 = vector.multi_reduction <maximumf>, %11, %cst_13 [1] : vector<16x16xf32> to vector<16xf32>
    %15 = vector.shape_cast %14 : vector<16xf32> to vector<16x1xf32>
    %16 = arith.maximumf %13, %15 : vector<16x1xf32>
    %17 = arith.subf %13, %16 : vector<16x1xf32>
    %18 = math.exp %17 : vector<16x1xf32>
    %19 = vector.broadcast %16 : vector<16x1xf32> to vector<16x16xf32>
    %20 = arith.subf %11, %19 : vector<16x16xf32>
    %21 = math.exp %20 : vector<16x16xf32>
    %c0_14 = arith.constant 0 : index
    %c0_15 = arith.constant 0 : index
    %c0_16 = arith.constant 0 : index
    %22 = vector.load %arg8[%c0_14, %c0_15, %c0_16] : memref<2x16x1xf32, #tpu.memory_space<vmem>>, vector<1x16x1xf32>
    %23 = vector.shape_cast %22 : vector<1x16x1xf32> to vector<16x1xf32>
    %24 = arith.mulf %18, %23 : vector<16x1xf32>
    %cst_17 = arith.constant dense<0.000000e+00> : vector<16xf32>
    %25 = vector.multi_reduction <add>, %21, %cst_17 [1] : vector<16x16xf32> to vector<16xf32>
    %26 = vector.shape_cast %25 : vector<16xf32> to vector<16x1xf32>
    %27 = arith.addf %24, %26 : vector<16x1xf32>
    %c0_18 = arith.constant 0 : index
    %c0_19 = arith.constant 0 : index
    %c0_20 = arith.constant 0 : index
    %28 = vector.load %arg8[%c0_18, %c0_19, %c0_20] : memref<2x16x1xf32, #tpu.memory_space<vmem>>, vector<1x16x1xf32>
    %29 = vector.shape_cast %28 : vector<1x16x1xf32> to vector<16x1xf32>
    %30 = vector.shape_cast %27 : vector<16x1xf32> to vector<1x16x1xf32>
    tpu.vector_store %arg8[%c0_18, %c0_19, %c0_20], %30 {strides = array<i32>} : memref<2x16x1xf32, #tpu.memory_space<vmem>>, vector<1x16x1xf32>,
    %c0_21 = arith.constant 0 : index
    %c0_22 = arith.constant 0 : index
    %c0_23 = arith.constant 0 : index
    %31 = vector.load %arg9[%c0_21, %c0_22, %c0_23] : memref<2x16x64xf32, #tpu.memory_space<vmem>>, vector<1x16x64xf32>
    %32 = vector.shape_cast %31 : vector<1x16x64xf32> to vector<16x64xf32>
    %33 = vector.broadcast %18 : vector<16x1xf32> to vector<16x64xf32>
    %34 = arith.mulf %33, %32 : vector<16x64xf32>
    %35 = arith.truncf %21 : vector<16x16xf32> to vector<16x16xbf16>
    %cst_24 = arith.constant dense<0.000000e+00> : vector<16x64xf32>
    %36 = tpu.matmul %35, %8, %cst_24 {dimension_numbers = #tpu.dot_dimension_numbers<[1], [0], [0], [1], [0, 0, 1, 1], [], []>} : vector<16x16xbf16>, vector<16x64xbf16>, vector<16x64xf32> -> vector<16x64xf32>
    %37 = arith.addf %34, %36 : vector<16x64xf32>
    %c0_25 = arith.constant 0 : index
    %c0_26 = arith.constant 0 : index
    %c0_27 = arith.constant 0 : index
    %38 = vector.load %arg9[%c0_25, %c0_26, %c0_27] : memref<2x16x64xf32, #tpu.memory_space<vmem>>, vector<1x16x64xf32>
    %39 = vector.shape_cast %38 : vector<1x16x64xf32> to vector<16x64xf32>
    %40 = vector.shape_cast %37 : vector<16x64xf32> to vector<1x16x64xf32>
    tpu.vector_store %arg9[%c0_25, %c0_26, %c0_27], %40 {strides = array<i32>} : memref<2x16x64xf32, #tpu.memory_space<vmem>>, vector<1x16x64xf32>,
    %c0_28 = arith.constant 0 : index
    %c0_29 = arith.constant 0 : index
    %c0_30 = arith.constant 0 : index
    %41 = vector.load %arg7[%c0_28, %c0_29, %c0_30] : memref<2x16x1xf32, #tpu.memory_space<vmem>>, vector<1x16x1xf32>
    %42 = vector.shape_cast %41 : vector<1x16x1xf32> to vector<16x1xf32>
    %43 = vector.shape_cast %16 : vector<16x1xf32> to vector<1x16x1xf32>
    tpu.vector_store %arg7[%c0_28, %c0_29, %c0_30], %43 {strides = array<i32>} : memref<2x16x1xf32, #tpu.memory_space<vmem>>, vector<1x16x1xf32>,
    %c0_31 = arith.constant 0 : index
    %c0_32 = arith.constant 0 : index
    %c64 = arith.constant 64 : index
    %44 = vector.load %arg3[%c0_31, %c0_32, %c64] : memref<1x16x128xbf16, #tpu.memory_space<vmem>>, vector<1x16x64xbf16>
    %45 = vector.shape_cast %44 : vector<1x16x64xbf16> to vector<16x64xbf16>
    %c0_33 = arith.constant 0 : index
    %c0_34 = arith.constant 0 : index
    %c64_35 = arith.constant 64 : index
    %46 = vector.load %arg4[%c0_33, %c0_34, %c64_35] : memref<1x16x128xbf16, #tpu.memory_space<vmem>>, vector<1x16x64xbf16>
    %47 = vector.shape_cast %46 : vector<1x16x64xbf16> to vector<16x64xbf16>
    %c0_36 = arith.constant 0 : index
    %c0_37 = arith.constant 0 : index
    %c64_38 = arith.constant 64 : index
    %48 = vector.load %arg5[%c0_36, %c0_37, %c64_38] : memref<1x16x128xbf16, #tpu.memory_space<vmem>>, vector<1x16x64xbf16>
    %49 = vector.shape_cast %48 : vector<1x16x64xbf16> to vector<16x64xbf16>
    %cst_39 = arith.constant dense<0.000000e+00> : vector<16x16xf32>
    %50 = tpu.matmul %45, %47, %cst_39 {dimension_numbers = #tpu.dot_dimension_numbers<[1], [1], [0], [0], [0, 0, 1, 0], [], []>} : vector<16x64xbf16>, vector<16x64xbf16>, vector<16x16xf32> -> vector<16x16xf32>
    %cst_40 = arith.constant 1.250000e-01 : f32
    %51 = vector.broadcast %cst_40 : f32 to vector<16x16xf32>
    %52 = arith.mulf %50, %51 : vector<16x16xf32>
    %c1 = arith.constant 1 : index
    %c0_41 = arith.constant 0 : index
    %c0_42 = arith.constant 0 : index
    %53 = vector.load %arg7[%c1, %c0_41, %c0_42] : memref<2x16x1xf32, #tpu.memory_space<vmem>>, vector<1x16x1xf32>
    %54 = vector.shape_cast %53 : vector<1x16x1xf32> to vector<16x1xf32>
    %cst_43 = arith.constant dense<0xFF800000> : vector<16xf32>
    %55 = vector.multi_reduction <maximumf>, %52, %cst_43 [1] : vector<16x16xf32> to vector<16xf32>
    %56 = vector.shape_cast %55 : vector<16xf32> to vector<16x1xf32>
    %57 = arith.maximumf %54, %56 : vector<16x1xf32>
    %58 = arith.subf %54, %57 : vector<16x1xf32>
    %59 = math.exp %58 : vector<16x1xf32>
    %60 = vector.broadcast %57 : vector<16x1xf32> to vector<16x16xf32>
    %61 = arith.subf %52, %60 : vector<16x16xf32>
    %62 = math.exp %61 : vector<16x16xf32>
    %c1_44 = arith.constant 1 : index
    %c0_45 = arith.constant 0 : index
    %c0_46 = arith.constant 0 : index
    %63 = vector.load %arg8[%c1_44, %c0_45, %c0_46] : memref<2x16x1xf32, #tpu.memory_space<vmem>>, vector<1x16x1xf32>
    %64 = vector.shape_cast %63 : vector<1x16x1xf32> to vector<16x1xf32>
    %65 = arith.mulf %59, %64 : vector<16x1xf32>
    %cst_47 = arith.constant dense<0.000000e+00> : vector<16xf32>
    %66 = vector.multi_reduction <add>, %62, %cst_47 [1] : vector<16x16xf32> to vector<16xf32>
    %67 = vector.shape_cast %66 : vector<16xf32> to vector<16x1xf32>
    %68 = arith.addf %65, %67 : vector<16x1xf32>
    %c1_48 = arith.constant 1 : index
    %c0_49 = arith.constant 0 : index
    %c0_50 = arith.constant 0 : index
    %69 = vector.load %arg8[%c1_48, %c0_49, %c0_50] : memref<2x16x1xf32, #tpu.memory_space<vmem>>, vector<1x16x1xf32>
    %70 = vector.shape_cast %69 : vector<1x16x1xf32> to vector<16x1xf32>
    %71 = vector.shape_cast %68 : vector<16x1xf32> to vector<1x16x1xf32>
    tpu.vector_store %arg8[%c1_48, %c0_49, %c0_50], %71 {strides = array<i32>} : memref<2x16x1xf32, #tpu.memory_space<vmem>>, vector<1x16x1xf32>,
    %c1_51 = arith.constant 1 : index
    %c0_52 = arith.constant 0 : index
    %c0_53 = arith.constant 0 : index
    %72 = vector.load %arg9[%c1_51, %c0_52, %c0_53] : memref<2x16x64xf32, #tpu.memory_space<vmem>>, vector<1x16x64xf32>
    %73 = vector.shape_cast %72 : vector<1x16x64xf32> to vector<16x64xf32>
    %74 = vector.broadcast %59 : vector<16x1xf32> to vector<16x64xf32>
    %75 = arith.mulf %74, %73 : vector<16x64xf32>
    %76 = arith.truncf %62 : vector<16x16xf32> to vector<16x16xbf16>
    %cst_54 = arith.constant dense<0.000000e+00> : vector<16x64xf32>
    %77 = tpu.matmul %76, %49, %cst_54 {dimension_numbers = #tpu.dot_dimension_numbers<[1], [0], [0], [1], [0, 0, 1, 1], [], []>} : vector<16x16xbf16>, vector<16x64xbf16>, vector<16x64xf32> -> vector<16x64xf32>
    %78 = arith.addf %75, %77 : vector<16x64xf32>
    %c1_55 = arith.constant 1 : index
    %c0_56 = arith.constant 0 : index
    %c0_57 = arith.constant 0 : index
    %79 = vector.load %arg9[%c1_55, %c0_56, %c0_57] : memref<2x16x64xf32, #tpu.memory_space<vmem>>, vector<1x16x64xf32>
    %80 = vector.shape_cast %79 : vector<1x16x64xf32> to vector<16x64xf32>
    %81 = vector.shape_cast %78 : vector<16x64xf32> to vector<1x16x64xf32>
    tpu.vector_store %arg9[%c1_55, %c0_56, %c0_57], %81 {strides = array<i32>} : memref<2x16x64xf32, #tpu.memory_space<vmem>>, vector<1x16x64xf32>,
    %c1_58 = arith.constant 1 : index
    %c0_59 = arith.constant 0 : index
    %c0_60 = arith.constant 0 : index
    %82 = vector.load %arg7[%c1_58, %c0_59, %c0_60] : memref<2x16x1xf32, #tpu.memory_space<vmem>>, vector<1x16x1xf32>
    %83 = vector.shape_cast %82 : vector<1x16x1xf32> to vector<16x1xf32>
    %84 = vector.shape_cast %57 : vector<16x1xf32> to vector<1x16x1xf32>
    tpu.vector_store %arg7[%c1_58, %c0_59, %c0_60], %84 {strides = array<i32>} : memref<2x16x1xf32, #tpu.memory_space<vmem>>, vector<1x16x1xf32>,
    %c0_i32_61 = arith.constant 0 : i32
    %85 = arith.cmpi eq, %arg2, %c0_i32_61 : i32
    %86 = arith.extui %85 : i1 to i32
    %c0_i32_62 = arith.constant 0 : i32
    %87 = arith.cmpi ne, %86, %c0_i32_62 : i32
    scf.if %87 {
      %c0_63 = arith.constant 0 : index
      %c0_64 = arith.constant 0 : index
      %c0_65 = arith.constant 0 : index
      %88 = vector.load %arg8[%c0_63, %c0_64, %c0_65] : memref<2x16x1xf32, #tpu.memory_space<vmem>>, vector<1x16x1xf32>
      %89 = vector.shape_cast %88 : vector<1x16x1xf32> to vector<16x1xf32>
      %90 = tpu.reciprocal %89 : vector<16x1xf32> -> vector<16x1xf32>
      %c0_66 = arith.constant 0 : index
      %c0_67 = arith.constant 0 : index
      %c0_68 = arith.constant 0 : index
      %91 = vector.load %arg9[%c0_66, %c0_67, %c0_68] : memref<2x16x64xf32, #tpu.memory_space<vmem>>, vector<1x16x64xf32>
      %92 = vector.shape_cast %91 : vector<1x16x64xf32> to vector<16x64xf32>
      %93 = vector.broadcast %90 : vector<16x1xf32> to vector<16x64xf32>
      %94 = arith.mulf %92, %93 : vector<16x64xf32>
      %95 = arith.truncf %94 : vector<16x64xf32> to vector<16x64xbf16>
      %c0_69 = arith.constant 0 : index
      %c0_70 = arith.constant 0 : index
      %c0_71 = arith.constant 0 : index
      %96 = vector.load %arg6[%c0_69, %c0_70, %c0_71] : memref<1x16x128xbf16, #tpu.memory_space<vmem>>, vector<1x16x64xbf16>
      %97 = vector.shape_cast %96 : vector<1x16x64xbf16> to vector<16x64xbf16>
      %98 = vector.shape_cast %95 : vector<16x64xbf16> to vector<1x16x64xbf16>
      tpu.vector_store %arg6[%c0_69, %c0_70, %c0_71], %98 {strides = array<i32>} : memref<1x16x128xbf16, #tpu.memory_space<vmem>>, vector<1x16x64xbf16>,
      %c1_72 = arith.constant 1 : index
      %c0_73 = arith.constant 0 : index
      %c0_74 = arith.constant 0 : index
      %99 = vector.load %arg8[%c1_72, %c0_73, %c0_74] : memref<2x16x1xf32, #tpu.memory_space<vmem>>, vector<1x16x1xf32>
      %100 = vector.shape_cast %99 : vector<1x16x1xf32> to vector<16x1xf32>
      %101 = tpu.reciprocal %100 : vector<16x1xf32> -> vector<16x1xf32>
      %c1_75 = arith.constant 1 : index
      %c0_76 = arith.constant 0 : index
      %c0_77 = arith.constant 0 : index
      %102 = vector.load %arg9[%c1_75, %c0_76, %c0_77] : memref<2x16x64xf32, #tpu.memory_space<vmem>>, vector<1x16x64xf32>
      %103 = vector.shape_cast %102 : vector<1x16x64xf32> to vector<16x64xf32>
      %104 = vector.broadcast %101 : vector<16x1xf32> to vector<16x64xf32>
      %105 = arith.mulf %103, %104 : vector<16x64xf32>
      %106 = arith.truncf %105 : vector<16x64xf32> to vector<16x64xbf16>
      %c0_78 = arith.constant 0 : index
      %c0_79 = arith.constant 0 : index
      %c64_80 = arith.constant 64 : index
      %107 = vector.load %arg6[%c0_78, %c0_79, %c64_80] : memref<1x16x128xbf16, #tpu.memory_space<vmem>>, vector<1x16x64xbf16>
      %108 = vector.shape_cast %107 : vector<1x16x64xbf16> to vector<16x64xbf16>
      %109 = vector.shape_cast %106 : vector<16x64xbf16> to vector<1x16x64xbf16>
      tpu.vector_store %arg6[%c0_78, %c0_79, %c64_80], %109 {strides = array<i32>} : memref<1x16x128xbf16, #tpu.memory_space<vmem>>, vector<1x16x64xbf16>,
    } else {
    }
    return
  }
  func.func @transform_0(%arg0: i32, %arg1: i32, %arg2: i32) -> (i32, i32, i32) {
    %c0_i32 = arith.constant 0 : i32
    %c0_i32_0 = arith.constant 0 : i32
    return %arg0, %arg1, %c0_i32 : i32, i32, i32
  }
  func.func @transform_1(%arg0: i32, %arg1: i32, %arg2: i32) -> (i32, i32, i32) {
    %c1_i32 = arith.constant 1 : i32
    %c0_i32 = arith.constant 0 : i32
    return %arg0, %arg2, %c1_i32 : i32, i32, i32
  }
  func.func @transform_2(%arg0: i32, %arg1: i32, %arg2: i32) -> (i32, i32, i32) {
    %c2_i32 = arith.constant 2 : i32
    %c0_i32 = arith.constant 0 : i32
    return %arg0, %arg2, %c2_i32 : i32, i32, i32
  }
  func.func @transform_3(%arg0: i32, %arg1: i32, %arg2: i32) -> (i32, i32, i32) {
    %c0_i32 = arith.constant 0 : i32
    %c0_i32_0 = arith.constant 0 : i32
    return %arg0, %arg1, %c0_i32 : i32, i32, i32
  }
}

module attributes {stable_mosaic.version = 11 : i64} {
  func.func @_matmul_bias_kernel(%arg0: i32, %arg1: i32, %arg2: i32, %arg3: memref<16x128xf32, #tpu.memory_space<vmem>>, %arg4: memref<128x128xbf16, #tpu.memory_space<vmem>>, %arg5: memref<1x128xf32, #tpu.memory_space<vmem>>, %arg6: memref<16x128xbf16, #tpu.memory_space<vmem>>, %arg7: memref<16x128xf32, #tpu.memory_space<vmem>>) attributes {dimension_semantics = [#tpu.dimension_semantics<parallel>, #tpu.dimension_semantics<parallel>, #tpu.dimension_semantics<arbitrary>], iteration_bounds = array<i64: 2, 1, 1>, scalar_prefetch = 0 : i64, scratch_operands = 1 : i64, tpu.core_type = #tpu.core_type<tc>, window_params = [{transform_indices = @transform_0, window_bounds = array<i64: 16, 128>}, {transform_indices = @transform_1, window_bounds = array<i64: 128, 128>}, {transform_indices = @transform_2, window_bounds = array<i64: 1, 128>}, {transform_indices = @transform_3, window_bounds = array<i64: 16, 128>}]} {
    %c0_i32 = arith.constant 0 : i32
    %0 = arith.cmpi eq, %arg2, %c0_i32 : i32
    %1 = arith.extui %0 : i1 to i32
    %c0_i32_0 = arith.constant 0 : i32
    %2 = arith.cmpi ne, %1, %c0_i32_0 : i32
    scf.if %2 {
      %cst_10 = arith.constant 0.000000e+00 : f32
      %13 = vector.broadcast %cst_10 : f32 to vector<16x128xf32>
      %c0_11 = arith.constant 0 : index
      %c0_12 = arith.constant 0 : index
      %14 = vector.load %arg7[%c0_11, %c0_12] : memref<16x128xf32, #tpu.memory_space<vmem>>, vector<16x128xf32>
      tpu.vector_store %arg7[%c0_11, %c0_12], %13 {strides = array<i32>} : memref<16x128xf32, #tpu.memory_space<vmem>>, vector<16x128xf32>,
    } else {
    }
    %c0 = arith.constant 0 : index
    %c0_1 = arith.constant 0 : index
    %3 = vector.load %arg7[%c0, %c0_1] : memref<16x128xf32, #tpu.memory_space<vmem>>, vector<16x128xf32>
    %c0_2 = arith.constant 0 : index
    %c0_3 = arith.constant 0 : index
    %4 = vector.load %arg3[%c0_2, %c0_3] : memref<16x128xf32, #tpu.memory_space<vmem>>, vector<16x128xf32>
    %5 = arith.truncf %4 : vector<16x128xf32> to vector<16x128xbf16>
    %c0_4 = arith.constant 0 : index
    %c0_5 = arith.constant 0 : index
    %6 = vector.load %arg4[%c0_4, %c0_5] : memref<128x128xbf16, #tpu.memory_space<vmem>>, vector<128x128xbf16>
    %cst = arith.constant dense<0.000000e+00> : vector<16x128xf32>
    %7 = tpu.matmul %5, %6, %cst {dimension_numbers = #tpu.dot_dimension_numbers<[1], [0], [0], [1], [0, 0, 1, 1], [], []>} : vector<16x128xbf16>, vector<128x128xbf16>, vector<16x128xf32> -> vector<16x128xf32>
    %8 = arith.addf %3, %7 : vector<16x128xf32>
    %c0_6 = arith.constant 0 : index
    %c0_7 = arith.constant 0 : index
    %9 = vector.load %arg7[%c0_6, %c0_7] : memref<16x128xf32, #tpu.memory_space<vmem>>, vector<16x128xf32>
    tpu.vector_store %arg7[%c0_6, %c0_7], %8 {strides = array<i32>} : memref<16x128xf32, #tpu.memory_space<vmem>>, vector<16x128xf32>,
    %c0_i32_8 = arith.constant 0 : i32
    %10 = arith.cmpi eq, %arg2, %c0_i32_8 : i32
    %11 = arith.extui %10 : i1 to i32
    %c0_i32_9 = arith.constant 0 : i32
    %12 = arith.cmpi ne, %11, %c0_i32_9 : i32
    scf.if %12 {
      %c0_10 = arith.constant 0 : index
      %c0_11 = arith.constant 0 : index
      %13 = vector.load %arg7[%c0_10, %c0_11] : memref<16x128xf32, #tpu.memory_space<vmem>>, vector<16x128xf32>
      %c0_12 = arith.constant 0 : index
      %c0_13 = arith.constant 0 : index
      %14 = vector.load %arg5[%c0_12, %c0_13] : memref<1x128xf32, #tpu.memory_space<vmem>>, vector<1x128xf32>
      %15 = vector.broadcast %14 : vector<1x128xf32> to vector<16x128xf32>
      %16 = arith.addf %13, %15 : vector<16x128xf32>
      %17 = arith.truncf %16 : vector<16x128xf32> to vector<16x128xbf16>
      %c0_14 = arith.constant 0 : index
      %c0_15 = arith.constant 0 : index
      %18 = vector.load %arg6[%c0_14, %c0_15] : memref<16x128xbf16, #tpu.memory_space<vmem>>, vector<16x128xbf16>
      tpu.vector_store %arg6[%c0_14, %c0_15], %17 {strides = array<i32>} : memref<16x128xbf16, #tpu.memory_space<vmem>>, vector<16x128xbf16>,
    } else {
    }
    return
  }
  func.func @transform_0(%arg0: i32, %arg1: i32, %arg2: i32) -> (i32, i32) {
    %c0_i32 = arith.constant 0 : i32
    return %arg0, %arg2 : i32, i32
  }
  func.func @transform_1(%arg0: i32, %arg1: i32, %arg2: i32) -> (i32, i32) {
    %c0_i32 = arith.constant 0 : i32
    return %arg2, %arg1 : i32, i32
  }
  func.func @transform_2(%arg0: i32, %arg1: i32, %arg2: i32) -> (i32, i32) {
    %c0_i32 = arith.constant 0 : i32
    %c0_i32_0 = arith.constant 0 : i32
    return %c0_i32, %arg1 : i32, i32
  }
  func.func @transform_3(%arg0: i32, %arg1: i32, %arg2: i32) -> (i32, i32) {
    %c0_i32 = arith.constant 0 : i32
    return %arg0, %arg1 : i32, i32
  }
}

module attributes {stable_mosaic.version = 11 : i64} {
  func.func @_matmul_bias_kernel(%arg0: i32, %arg1: i32, %arg2: i32, %arg3: memref<16x128xf32, #tpu.memory_space<vmem>>, %arg4: memref<128x256xbf16, #tpu.memory_space<vmem>>, %arg5: memref<1x256xf32, #tpu.memory_space<vmem>>, %arg6: memref<16x256xbf16, #tpu.memory_space<vmem>>, %arg7: memref<16x256xf32, #tpu.memory_space<vmem>>) attributes {dimension_semantics = [#tpu.dimension_semantics<parallel>, #tpu.dimension_semantics<parallel>, #tpu.dimension_semantics<arbitrary>], iteration_bounds = array<i64: 2, 1, 1>, scalar_prefetch = 0 : i64, scratch_operands = 1 : i64, tpu.core_type = #tpu.core_type<tc>, window_params = [{transform_indices = @transform_0, window_bounds = array<i64: 16, 128>}, {transform_indices = @transform_1, window_bounds = array<i64: 128, 256>}, {transform_indices = @transform_2, window_bounds = array<i64: 1, 256>}, {transform_indices = @transform_3, window_bounds = array<i64: 16, 256>}]} {
    %c0_i32 = arith.constant 0 : i32
    %0 = arith.cmpi eq, %arg2, %c0_i32 : i32
    %1 = arith.extui %0 : i1 to i32
    %c0_i32_0 = arith.constant 0 : i32
    %2 = arith.cmpi ne, %1, %c0_i32_0 : i32
    scf.if %2 {
      %cst_10 = arith.constant 0.000000e+00 : f32
      %13 = vector.broadcast %cst_10 : f32 to vector<16x256xf32>
      %c0_11 = arith.constant 0 : index
      %c0_12 = arith.constant 0 : index
      %14 = vector.load %arg7[%c0_11, %c0_12] : memref<16x256xf32, #tpu.memory_space<vmem>>, vector<16x256xf32>
      tpu.vector_store %arg7[%c0_11, %c0_12], %13 {strides = array<i32>} : memref<16x256xf32, #tpu.memory_space<vmem>>, vector<16x256xf32>,
    } else {
    }
    %c0 = arith.constant 0 : index
    %c0_1 = arith.constant 0 : index
    %3 = vector.load %arg7[%c0, %c0_1] : memref<16x256xf32, #tpu.memory_space<vmem>>, vector<16x256xf32>
    %c0_2 = arith.constant 0 : index
    %c0_3 = arith.constant 0 : index
    %4 = vector.load %arg3[%c0_2, %c0_3] : memref<16x128xf32, #tpu.memory_space<vmem>>, vector<16x128xf32>
    %5 = arith.truncf %4 : vector<16x128xf32> to vector<16x128xbf16>
    %c0_4 = arith.constant 0 : index
    %c0_5 = arith.constant 0 : index
    %6 = vector.load %arg4[%c0_4, %c0_5] : memref<128x256xbf16, #tpu.memory_space<vmem>>, vector<128x256xbf16>
    %cst = arith.constant dense<0.000000e+00> : vector<16x256xf32>
    %7 = tpu.matmul %5, %6, %cst {dimension_numbers = #tpu.dot_dimension_numbers<[1], [0], [0], [1], [0, 0, 1, 1], [], []>} : vector<16x128xbf16>, vector<128x256xbf16>, vector<16x256xf32> -> vector<16x256xf32>
    %8 = arith.addf %3, %7 : vector<16x256xf32>
    %c0_6 = arith.constant 0 : index
    %c0_7 = arith.constant 0 : index
    %9 = vector.load %arg7[%c0_6, %c0_7] : memref<16x256xf32, #tpu.memory_space<vmem>>, vector<16x256xf32>
    tpu.vector_store %arg7[%c0_6, %c0_7], %8 {strides = array<i32>} : memref<16x256xf32, #tpu.memory_space<vmem>>, vector<16x256xf32>,
    %c0_i32_8 = arith.constant 0 : i32
    %10 = arith.cmpi eq, %arg2, %c0_i32_8 : i32
    %11 = arith.extui %10 : i1 to i32
    %c0_i32_9 = arith.constant 0 : i32
    %12 = arith.cmpi ne, %11, %c0_i32_9 : i32
    scf.if %12 {
      %c0_10 = arith.constant 0 : index
      %c0_11 = arith.constant 0 : index
      %13 = vector.load %arg7[%c0_10, %c0_11] : memref<16x256xf32, #tpu.memory_space<vmem>>, vector<16x256xf32>
      %c0_12 = arith.constant 0 : index
      %c0_13 = arith.constant 0 : index
      %14 = vector.load %arg5[%c0_12, %c0_13] : memref<1x256xf32, #tpu.memory_space<vmem>>, vector<1x256xf32>
      %15 = vector.broadcast %14 : vector<1x256xf32> to vector<16x256xf32>
      %16 = arith.addf %13, %15 : vector<16x256xf32>
      %17 = arith.truncf %16 : vector<16x256xf32> to vector<16x256xbf16>
      %c0_14 = arith.constant 0 : index
      %c0_15 = arith.constant 0 : index
      %18 = vector.load %arg6[%c0_14, %c0_15] : memref<16x256xbf16, #tpu.memory_space<vmem>>, vector<16x256xbf16>
      tpu.vector_store %arg6[%c0_14, %c0_15], %17 {strides = array<i32>} : memref<16x256xbf16, #tpu.memory_space<vmem>>, vector<16x256xbf16>,
    } else {
    }
    return
  }
  func.func @transform_0(%arg0: i32, %arg1: i32, %arg2: i32) -> (i32, i32) {
    %c0_i32 = arith.constant 0 : i32
    return %arg0, %arg2 : i32, i32
  }
  func.func @transform_1(%arg0: i32, %arg1: i32, %arg2: i32) -> (i32, i32) {
    %c0_i32 = arith.constant 0 : i32
    return %arg2, %arg1 : i32, i32
  }
  func.func @transform_2(%arg0: i32, %arg1: i32, %arg2: i32) -> (i32, i32) {
    %c0_i32 = arith.constant 0 : i32
    %c0_i32_0 = arith.constant 0 : i32
    return %c0_i32, %arg1 : i32, i32
  }
  func.func @transform_3(%arg0: i32, %arg1: i32, %arg2: i32) -> (i32, i32) {
    %c0_i32 = arith.constant 0 : i32
    return %arg0, %arg1 : i32, i32
  }
}

module attributes {stable_mosaic.version = 11 : i64} {
  func.func @_flash_attn_kernel(%arg0: i32, %arg1: i32, %arg2: i32, %arg3: memref<1x16x128xbf16, #tpu.memory_space<vmem>>, %arg4: memref<1x16x128xbf16, #tpu.memory_space<vmem>>, %arg5: memref<1x16x128xbf16, #tpu.memory_space<vmem>>, %arg6: memref<1x16x128xbf16, #tpu.memory_space<vmem>>, %arg7: memref<2x16x1xf32, #tpu.memory_space<vmem>>, %arg8: memref<2x16x1xf32, #tpu.memory_space<vmem>>, %arg9: memref<2x16x64xf32, #tpu.memory_space<vmem>>) attributes {dimension_semantics = [#tpu.dimension_semantics<parallel>, #tpu.dimension_semantics<parallel>, #tpu.dimension_semantics<arbitrary>], iteration_bounds = array<i64: 2, 1, 1>, scalar_prefetch = 0 : i64, scratch_operands = 3 : i64, tpu.core_type = #tpu.core_type<tc>, window_params = [{transform_indices = @transform_0, window_bounds = array<i64: 1, 16, 128>}, {transform_indices = @transform_1, window_bounds = array<i64: 1, 16, 128>}, {transform_indices = @transform_2, window_bounds = array<i64: 1, 16, 128>}, {transform_indices = @transform_3, window_bounds = array<i64: 1, 16, 128>}]} {
    %c0_i32 = arith.constant 0 : i32
    %0 = arith.cmpi eq, %arg2, %c0_i32 : i32
    %1 = arith.extui %0 : i1 to i32
    %c0_i32_0 = arith.constant 0 : i32
    %2 = arith.cmpi ne, %1, %c0_i32_0 : i32
    scf.if %2 {
      %cst_63 = arith.constant 0xFF800000 : f32
      %88 = vector.broadcast %cst_63 : f32 to vector<2x16x1xf32>
      %c0_64 = arith.constant 0 : index
      %c0_65 = arith.constant 0 : index
      %c0_66 = arith.constant 0 : index
      %89 = vector.load %arg7[%c0_64, %c0_65, %c0_66] : memref<2x16x1xf32, #tpu.memory_space<vmem>>, vector<2x16x1xf32>
      tpu.vector_store %arg7[%c0_64, %c0_65, %c0_66], %88 {strides = array<i32>} : memref<2x16x1xf32, #tpu.memory_space<vmem>>, vector<2x16x1xf32>,
      %cst_67 = arith.constant 0.000000e+00 : f32
      %90 = vector.broadcast %cst_67 : f32 to vector<2x16x1xf32>
      %c0_68 = arith.constant 0 : index
      %c0_69 = arith.constant 0 : index
      %c0_70 = arith.constant 0 : index
      %91 = vector.load %arg8[%c0_68, %c0_69, %c0_70] : memref<2x16x1xf32, #tpu.memory_space<vmem>>, vector<2x16x1xf32>
      tpu.vector_store %arg8[%c0_68, %c0_69, %c0_70], %90 {strides = array<i32>} : memref<2x16x1xf32, #tpu.memory_space<vmem>>, vector<2x16x1xf32>,
      %cst_71 = arith.constant 0.000000e+00 : f32
      %92 = vector.broadcast %cst_71 : f32 to vector<2x16x64xf32>
      %c0_72 = arith.constant 0 : index
      %c0_73 = arith.constant 0 : index
      %c0_74 = arith.constant 0 : index
      %93 = vector.load %arg9[%c0_72, %c0_73, %c0_74] : memref<2x16x64xf32, #tpu.memory_space<vmem>>, vector<2x16x64xf32>
      tpu.vector_store %arg9[%c0_72, %c0_73, %c0_74], %92 {strides = array<i32>} : memref<2x16x64xf32, #tpu.memory_space<vmem>>, vector<2x16x64xf32>,
    } else {
    }
    %c0 = arith.constant 0 : index
    %c0_1 = arith.constant 0 : index
    %c0_2 = arith.constant 0 : index
    %3 = vector.load %arg3[%c0, %c0_1, %c0_2] : memref<1x16x128xbf16, #tpu.memory_space<vmem>>, vector<1x16x64xbf16>
    %4 = vector.shape_cast %3 : vector<1x16x64xbf16> to vector<16x64xbf16>
    %c0_3 = arith.constant 0 : index
    %c0_4 = arith.constant 0 : index
    %c0_5 = arith.constant 0 : index
    %5 = vector.load %arg4[%c0_3, %c0_4, %c0_5] : memref<1x16x128xbf16, #tpu.memory_space<vmem>>, vector<1x16x64xbf16>
    %6 = vector.shape_cast %5 : vector<1x16x64xbf16> to vector<16x64xbf16>
    %c0_6 = arith.constant 0 : index
    %c0_7 = arith.constant 0 : index
    %c0_8 = arith.constant 0 : index
    %7 = vector.load %arg5[%c0_6, %c0_7, %c0_8] : memref<1x16x128xbf16, #tpu.memory_space<vmem>>, vector<1x16x64xbf16>
    %8 = vector.shape_cast %7 : vector<1x16x64xbf16> to vector<16x64xbf16>
    %cst = arith.constant dense<0.000000e+00> : vector<16x16xf32>
    %9 = tpu.matmul %4, %6, %cst {dimension_numbers = #tpu.dot_dimension_numbers<[1], [1], [0], [0], [0, 0, 1, 0], [], []>} : vector<16x64xbf16>, vector<16x64xbf16>, vector<16x16xf32> -> vector<16x16xf32>
    %cst_9 = arith.constant 1.250000e-01 : f32
    %10 = vector.broadcast %cst_9 : f32 to vector<16x16xf32>
    %11 = arith.mulf %9, %10 : vector<16x16xf32>
    %c0_10 = arith.constant 0 : index
    %c0_11 = arith.constant 0 : index
    %c0_12 = arith.constant 0 : index
    %12 = vector.load %arg7[%c0_10, %c0_11, %c0_12] : memref<2x16x1xf32, #tpu.memory_space<vmem>>, vector<1x16x1xf32>
    %13 = vector.shape_cast %12 : vector<1x16x1xf32> to vector<16x1xf32>
    %cst_13 = arith.constant dense<0xFF800000> : vector<16xf32>
    %14 = vector.multi_reduction <maximumf>, %11, %cst_13 [1] : vector<16x16xf32> to vector<16xf32>
    %15 = vector.shape_cast %14 : vector<16xf32> to vector<16x1xf32>
    %16 = arith.maximumf %13, %15 : vector<16x1xf32>
    %17 = arith.subf %13, %16 : vector<16x1xf32>
    %18 = math.exp %17 : vector<16x1xf32>
    %19 = vector.broadcast %16 : vector<16x1xf32> to vector<16x16xf32>
    %20 = arith.subf %11, %19 : vector<16x16xf32>
    %21 = math.exp %20 : vector<16x16xf32>
    %c0_14 = arith.constant 0 : index
    %c0_15 = arith.constant 0 : index
    %c0_16 = arith.constant 0 : index
    %22 = vector.load %arg8[%c0_14, %c0_15, %c0_16] : memref<2x16x1xf32, #tpu.memory_space<vmem>>, vector<1x16x1xf32>
    %23 = vector.shape_cast %22 : vector<1x16x1xf32> to vector<16x1xf32>
    %24 = arith.mulf %18, %23 : vector<16x1xf32>
    %cst_17 = arith.constant dense<0.000000e+00> : vector<16xf32>
    %25 = vector.multi_reduction <add>, %21, %cst_17 [1] : vector<16x16xf32> to vector<16xf32>
    %26 = vector.shape_cast %25 : vector<16xf32> to vector<16x1xf32>
    %27 = arith.addf %24, %26 : vector<16x1xf32>
    %c0_18 = arith.constant 0 : index
    %c0_19 = arith.constant 0 : index
    %c0_20 = arith.constant 0 : index
    %28 = vector.load %arg8[%c0_18, %c0_19, %c0_20] : memref<2x16x1xf32, #tpu.memory_space<vmem>>, vector<1x16x1xf32>
    %29 = vector.shape_cast %28 : vector<1x16x1xf32> to vector<16x1xf32>
    %30 = vector.shape_cast %27 : vector<16x1xf32> to vector<1x16x1xf32>
    tpu.vector_store %arg8[%c0_18, %c0_19, %c0_20], %30 {strides = array<i32>} : memref<2x16x1xf32, #tpu.memory_space<vmem>>, vector<1x16x1xf32>,
    %c0_21 = arith.constant 0 : index
    %c0_22 = arith.constant 0 : index
    %c0_23 = arith.constant 0 : index
    %31 = vector.load %arg9[%c0_21, %c0_22, %c0_23] : memref<2x16x64xf32, #tpu.memory_space<vmem>>, vector<1x16x64xf32>
    %32 = vector.shape_cast %31 : vector<1x16x64xf32> to vector<16x64xf32>
    %33 = vector.broadcast %18 : vector<16x1xf32> to vector<16x64xf32>
    %34 = arith.mulf %33, %32 : vector<16x64xf32>
    %35 = arith.truncf %21 : vector<16x16xf32> to vector<16x16xbf16>
    %cst_24 = arith.constant dense<0.000000e+00> : vector<16x64xf32>
    %36 = tpu.matmul %35, %8, %cst_24 {dimension_numbers = #tpu.dot_dimension_numbers<[1], [0], [0], [1], [0, 0, 1, 1], [], []>} : vector<16x16xbf16>, vector<16x64xbf16>, vector<16x64xf32> -> vector<16x64xf32>
    %37 = arith.addf %34, %36 : vector<16x64xf32>
    %c0_25 = arith.constant 0 : index
    %c0_26 = arith.constant 0 : index
    %c0_27 = arith.constant 0 : index
    %38 = vector.load %arg9[%c0_25, %c0_26, %c0_27] : memref<2x16x64xf32, #tpu.memory_space<vmem>>, vector<1x16x64xf32>
    %39 = vector.shape_cast %38 : vector<1x16x64xf32> to vector<16x64xf32>
    %40 = vector.shape_cast %37 : vector<16x64xf32> to vector<1x16x64xf32>
    tpu.vector_store %arg9[%c0_25, %c0_26, %c0_27], %40 {strides = array<i32>} : memref<2x16x64xf32, #tpu.memory_space<vmem>>, vector<1x16x64xf32>,
    %c0_28 = arith.constant 0 : index
    %c0_29 = arith.constant 0 : index
    %c0_30 = arith.constant 0 : index
    %41 = vector.load %arg7[%c0_28, %c0_29, %c0_30] : memref<2x16x1xf32, #tpu.memory_space<vmem>>, vector<1x16x1xf32>
    %42 = vector.shape_cast %41 : vector<1x16x1xf32> to vector<16x1xf32>
    %43 = vector.shape_cast %16 : vector<16x1xf32> to vector<1x16x1xf32>
    tpu.vector_store %arg7[%c0_28, %c0_29, %c0_30], %43 {strides = array<i32>} : memref<2x16x1xf32, #tpu.memory_space<vmem>>, vector<1x16x1xf32>,
    %c0_31 = arith.constant 0 : index
    %c0_32 = arith.constant 0 : index
    %c64 = arith.constant 64 : index
    %44 = vector.load %arg3[%c0_31, %c0_32, %c64] : memref<1x16x128xbf16, #tpu.memory_space<vmem>>, vector<1x16x64xbf16>
    %45 = vector.shape_cast %44 : vector<1x16x64xbf16> to vector<16x64xbf16>
    %c0_33 = arith.constant 0 : index
    %c0_34 = arith.constant 0 : index
    %c64_35 = arith.constant 64 : index
    %46 = vector.load %arg4[%c0_33, %c0_34, %c64_35] : memref<1x16x128xbf16, #tpu.memory_space<vmem>>, vector<1x16x64xbf16>
    %47 = vector.shape_cast %46 : vector<1x16x64xbf16> to vector<16x64xbf16>
    %c0_36 = arith.constant 0 : index
    %c0_37 = arith.constant 0 : index
    %c64_38 = arith.constant 64 : index
    %48 = vector.load %arg5[%c0_36, %c0_37, %c64_38] : memref<1x16x128xbf16, #tpu.memory_space<vmem>>, vector<1x16x64xbf16>
    %49 = vector.shape_cast %48 : vector<1x16x64xbf16> to vector<16x64xbf16>
    %cst_39 = arith.constant dense<0.000000e+00> : vector<16x16xf32>
    %50 = tpu.matmul %45, %47, %cst_39 {dimension_numbers = #tpu.dot_dimension_numbers<[1], [1], [0], [0], [0, 0, 1, 0], [], []>} : vector<16x64xbf16>, vector<16x64xbf16>, vector<16x16xf32> -> vector<16x16xf32>
    %cst_40 = arith.constant 1.250000e-01 : f32
    %51 = vector.broadcast %cst_40 : f32 to vector<16x16xf32>
    %52 = arith.mulf %50, %51 : vector<16x16xf32>
    %c1 = arith.constant 1 : index
    %c0_41 = arith.constant 0 : index
    %c0_42 = arith.constant 0 : index
    %53 = vector.load %arg7[%c1, %c0_41, %c0_42] : memref<2x16x1xf32, #tpu.memory_space<vmem>>, vector<1x16x1xf32>
    %54 = vector.shape_cast %53 : vector<1x16x1xf32> to vector<16x1xf32>
    %cst_43 = arith.constant dense<0xFF800000> : vector<16xf32>
    %55 = vector.multi_reduction <maximumf>, %52, %cst_43 [1] : vector<16x16xf32> to vector<16xf32>
    %56 = vector.shape_cast %55 : vector<16xf32> to vector<16x1xf32>
    %57 = arith.maximumf %54, %56 : vector<16x1xf32>
    %58 = arith.subf %54, %57 : vector<16x1xf32>
    %59 = math.exp %58 : vector<16x1xf32>
    %60 = vector.broadcast %57 : vector<16x1xf32> to vector<16x16xf32>
    %61 = arith.subf %52, %60 : vector<16x16xf32>
    %62 = math.exp %61 : vector<16x16xf32>
    %c1_44 = arith.constant 1 : index
    %c0_45 = arith.constant 0 : index
    %c0_46 = arith.constant 0 : index
    %63 = vector.load %arg8[%c1_44, %c0_45, %c0_46] : memref<2x16x1xf32, #tpu.memory_space<vmem>>, vector<1x16x1xf32>
    %64 = vector.shape_cast %63 : vector<1x16x1xf32> to vector<16x1xf32>
    %65 = arith.mulf %59, %64 : vector<16x1xf32>
    %cst_47 = arith.constant dense<0.000000e+00> : vector<16xf32>
    %66 = vector.multi_reduction <add>, %62, %cst_47 [1] : vector<16x16xf32> to vector<16xf32>
    %67 = vector.shape_cast %66 : vector<16xf32> to vector<16x1xf32>
    %68 = arith.addf %65, %67 : vector<16x1xf32>
    %c1_48 = arith.constant 1 : index
    %c0_49 = arith.constant 0 : index
    %c0_50 = arith.constant 0 : index
    %69 = vector.load %arg8[%c1_48, %c0_49, %c0_50] : memref<2x16x1xf32, #tpu.memory_space<vmem>>, vector<1x16x1xf32>
    %70 = vector.shape_cast %69 : vector<1x16x1xf32> to vector<16x1xf32>
    %71 = vector.shape_cast %68 : vector<16x1xf32> to vector<1x16x1xf32>
    tpu.vector_store %arg8[%c1_48, %c0_49, %c0_50], %71 {strides = array<i32>} : memref<2x16x1xf32, #tpu.memory_space<vmem>>, vector<1x16x1xf32>,
    %c1_51 = arith.constant 1 : index
    %c0_52 = arith.constant 0 : index
    %c0_53 = arith.constant 0 : index
    %72 = vector.load %arg9[%c1_51, %c0_52, %c0_53] : memref<2x16x64xf32, #tpu.memory_space<vmem>>, vector<1x16x64xf32>
    %73 = vector.shape_cast %72 : vector<1x16x64xf32> to vector<16x64xf32>
    %74 = vector.broadcast %59 : vector<16x1xf32> to vector<16x64xf32>
    %75 = arith.mulf %74, %73 : vector<16x64xf32>
    %76 = arith.truncf %62 : vector<16x16xf32> to vector<16x16xbf16>
    %cst_54 = arith.constant dense<0.000000e+00> : vector<16x64xf32>
    %77 = tpu.matmul %76, %49, %cst_54 {dimension_numbers = #tpu.dot_dimension_numbers<[1], [0], [0], [1], [0, 0, 1, 1], [], []>} : vector<16x16xbf16>, vector<16x64xbf16>, vector<16x64xf32> -> vector<16x64xf32>
    %78 = arith.addf %75, %77 : vector<16x64xf32>
    %c1_55 = arith.constant 1 : index
    %c0_56 = arith.constant 0 : index
    %c0_57 = arith.constant 0 : index
    %79 = vector.load %arg9[%c1_55, %c0_56, %c0_57] : memref<2x16x64xf32, #tpu.memory_space<vmem>>, vector<1x16x64xf32>
    %80 = vector.shape_cast %79 : vector<1x16x64xf32> to vector<16x64xf32>
    %81 = vector.shape_cast %78 : vector<16x64xf32> to vector<1x16x64xf32>
    tpu.vector_store %arg9[%c1_55, %c0_56, %c0_57], %81 {strides = array<i32>} : memref<2x16x64xf32, #tpu.memory_space<vmem>>, vector<1x16x64xf32>,
    %c1_58 = arith.constant 1 : index
    %c0_59 = arith.constant 0 : index
    %c0_60 = arith.constant 0 : index
    %82 = vector.load %arg7[%c1_58, %c0_59, %c0_60] : memref<2x16x1xf32, #tpu.memory_space<vmem>>, vector<1x16x1xf32>
    %83 = vector.shape_cast %82 : vector<1x16x1xf32> to vector<16x1xf32>
    %84 = vector.shape_cast %57 : vector<16x1xf32> to vector<1x16x1xf32>
    tpu.vector_store %arg7[%c1_58, %c0_59, %c0_60], %84 {strides = array<i32>} : memref<2x16x1xf32, #tpu.memory_space<vmem>>, vector<1x16x1xf32>,
    %c0_i32_61 = arith.constant 0 : i32
    %85 = arith.cmpi eq, %arg2, %c0_i32_61 : i32
    %86 = arith.extui %85 : i1 to i32
    %c0_i32_62 = arith.constant 0 : i32
    %87 = arith.cmpi ne, %86, %c0_i32_62 : i32
    scf.if %87 {
      %c0_63 = arith.constant 0 : index
      %c0_64 = arith.constant 0 : index
      %c0_65 = arith.constant 0 : index
      %88 = vector.load %arg8[%c0_63, %c0_64, %c0_65] : memref<2x16x1xf32, #tpu.memory_space<vmem>>, vector<1x16x1xf32>
      %89 = vector.shape_cast %88 : vector<1x16x1xf32> to vector<16x1xf32>
      %90 = tpu.reciprocal %89 : vector<16x1xf32> -> vector<16x1xf32>
      %c0_66 = arith.constant 0 : index
      %c0_67 = arith.constant 0 : index
      %c0_68 = arith.constant 0 : index
      %91 = vector.load %arg9[%c0_66, %c0_67, %c0_68] : memref<2x16x64xf32, #tpu.memory_space<vmem>>, vector<1x16x64xf32>
      %92 = vector.shape_cast %91 : vector<1x16x64xf32> to vector<16x64xf32>
      %93 = vector.broadcast %90 : vector<16x1xf32> to vector<16x64xf32>
      %94 = arith.mulf %92, %93 : vector<16x64xf32>
      %95 = arith.truncf %94 : vector<16x64xf32> to vector<16x64xbf16>
      %c0_69 = arith.constant 0 : index
      %c0_70 = arith.constant 0 : index
      %c0_71 = arith.constant 0 : index
      %96 = vector.load %arg6[%c0_69, %c0_70, %c0_71] : memref<1x16x128xbf16, #tpu.memory_space<vmem>>, vector<1x16x64xbf16>
      %97 = vector.shape_cast %96 : vector<1x16x64xbf16> to vector<16x64xbf16>
      %98 = vector.shape_cast %95 : vector<16x64xbf16> to vector<1x16x64xbf16>
      tpu.vector_store %arg6[%c0_69, %c0_70, %c0_71], %98 {strides = array<i32>} : memref<1x16x128xbf16, #tpu.memory_space<vmem>>, vector<1x16x64xbf16>,
      %c1_72 = arith.constant 1 : index
      %c0_73 = arith.constant 0 : index
      %c0_74 = arith.constant 0 : index
      %99 = vector.load %arg8[%c1_72, %c0_73, %c0_74] : memref<2x16x1xf32, #tpu.memory_space<vmem>>, vector<1x16x1xf32>
      %100 = vector.shape_cast %99 : vector<1x16x1xf32> to vector<16x1xf32>
      %101 = tpu.reciprocal %100 : vector<16x1xf32> -> vector<16x1xf32>
      %c1_75 = arith.constant 1 : index
      %c0_76 = arith.constant 0 : index
      %c0_77 = arith.constant 0 : index
      %102 = vector.load %arg9[%c1_75, %c0_76, %c0_77] : memref<2x16x64xf32, #tpu.memory_space<vmem>>, vector<1x16x64xf32>
      %103 = vector.shape_cast %102 : vector<1x16x64xf32> to vector<16x64xf32>
      %104 = vector.broadcast %101 : vector<16x1xf32> to vector<16x64xf32>
      %105 = arith.mulf %103, %104 : vector<16x64xf32>
      %106 = arith.truncf %105 : vector<16x64xf32> to vector<16x64xbf16>
      %c0_78 = arith.constant 0 : index
      %c0_79 = arith.constant 0 : index
      %c64_80 = arith.constant 64 : index
      %107 = vector.load %arg6[%c0_78, %c0_79, %c64_80] : memref<1x16x128xbf16, #tpu.memory_space<vmem>>, vector<1x16x64xbf16>
      %108 = vector.shape_cast %107 : vector<1x16x64xbf16> to vector<16x64xbf16>
      %109 = vector.shape_cast %106 : vector<16x64xbf16> to vector<1x16x64xbf16>
      tpu.vector_store %arg6[%c0_78, %c0_79, %c64_80], %109 {strides = array<i32>} : memref<1x16x128xbf16, #tpu.memory_space<vmem>>, vector<1x16x64xbf16>,
    } else {
    }
    return
  }
  func.func @transform_0(%arg0: i32, %arg1: i32, %arg2: i32) -> (i32, i32, i32) {
    %c0_i32 = arith.constant 0 : i32
    %c0_i32_0 = arith.constant 0 : i32
    return %arg0, %arg1, %c0_i32 : i32, i32, i32
  }
  func.func @transform_1(%arg0: i32, %arg1: i32, %arg2: i32) -> (i32, i32, i32) {
    %c0_i32 = arith.constant 0 : i32
    %c0_i32_0 = arith.constant 0 : i32
    return %arg0, %arg2, %c0_i32 : i32, i32, i32
  }
  func.func @transform_2(%arg0: i32, %arg1: i32, %arg2: i32) -> (i32, i32, i32) {
    %c1_i32 = arith.constant 1 : i32
    %c0_i32 = arith.constant 0 : i32
    return %arg0, %arg2, %c1_i32 : i32, i32, i32
  }
  func.func @transform_3(%arg0: i32, %arg1: i32, %arg2: i32) -> (i32, i32, i32) {
    %c0_i32 = arith.constant 0 : i32
    %c0_i32_0 = arith.constant 0 : i32
    return %arg0, %arg1, %c0_i32 : i32, i32, i32
  }
}

module attributes {stable_mosaic.version = 11 : i64} {
  func.func @_matmul_res_ln_kernel(%arg0: i32, %arg1: i32, %arg2: memref<16x256xbf16, #tpu.memory_space<vmem>>, %arg3: memref<256x128xbf16, #tpu.memory_space<vmem>>, %arg4: memref<1x128xf32, #tpu.memory_space<vmem>>, %arg5: memref<16x128xf32, #tpu.memory_space<vmem>>, %arg6: memref<1x128xf32, #tpu.memory_space<vmem>>, %arg7: memref<1x128xf32, #tpu.memory_space<vmem>>, %arg8: memref<16x128xf32, #tpu.memory_space<vmem>>, %arg9: memref<16x128xf32, #tpu.memory_space<vmem>>) attributes {dimension_semantics = [#tpu.dimension_semantics<parallel>, #tpu.dimension_semantics<arbitrary>], iteration_bounds = array<i64: 2, 1>, scalar_prefetch = 0 : i64, scratch_operands = 1 : i64, tpu.core_type = #tpu.core_type<tc>, window_params = [{transform_indices = @transform_0, window_bounds = array<i64: 16, 256>}, {transform_indices = @transform_1, window_bounds = array<i64: 256, 128>}, {pipeline_mode = #tpu.pipeline_mode<synchronous>, transform_indices = @transform_2, window_bounds = array<i64: 1, 128>}, {transform_indices = @transform_3, window_bounds = array<i64: 16, 128>}, {pipeline_mode = #tpu.pipeline_mode<synchronous>, transform_indices = @transform_4, window_bounds = array<i64: 1, 128>}, {pipeline_mode = #tpu.pipeline_mode<synchronous>, transform_indices = @transform_5, window_bounds = array<i64: 1, 128>}, {transform_indices = @transform_6, window_bounds = array<i64: 16, 128>}]} {
    %c0_i32 = arith.constant 0 : i32
    %0 = arith.cmpi eq, %arg1, %c0_i32 : i32
    %1 = arith.extui %0 : i1 to i32
    %c0_i32_0 = arith.constant 0 : i32
    %2 = arith.cmpi ne, %1, %c0_i32_0 : i32
    scf.if %2 {
      %cst_10 = arith.constant 0.000000e+00 : f32
      %12 = vector.broadcast %cst_10 : f32 to vector<16x128xf32>
      %c0_11 = arith.constant 0 : index
      %c0_12 = arith.constant 0 : index
      %13 = vector.load %arg9[%c0_11, %c0_12] : memref<16x128xf32, #tpu.memory_space<vmem>>, vector<16x128xf32>
      tpu.vector_store %arg9[%c0_11, %c0_12], %12 {strides = array<i32>} : memref<16x128xf32, #tpu.memory_space<vmem>>, vector<16x128xf32>,
    } else {
    }
    %c0 = arith.constant 0 : index
    %c0_1 = arith.constant 0 : index
    %3 = vector.load %arg9[%c0, %c0_1] : memref<16x128xf32, #tpu.memory_space<vmem>>, vector<16x128xf32>
    %c0_2 = arith.constant 0 : index
    %c0_3 = arith.constant 0 : index
    %4 = vector.load %arg2[%c0_2, %c0_3] : memref<16x256xbf16, #tpu.memory_space<vmem>>, vector<16x256xbf16>
    %c0_4 = arith.constant 0 : index
    %c0_5 = arith.constant 0 : index
    %5 = vector.load %arg3[%c0_4, %c0_5] : memref<256x128xbf16, #tpu.memory_space<vmem>>, vector<256x128xbf16>
    %cst = arith.constant dense<0.000000e+00> : vector<16x128xf32>
    %6 = tpu.matmul %4, %5, %cst {dimension_numbers = #tpu.dot_dimension_numbers<[1], [0], [0], [1], [0, 0, 1, 1], [], []>} : vector<16x256xbf16>, vector<256x128xbf16>, vector<16x128xf32> -> vector<16x128xf32>
    %7 = arith.addf %3, %6 : vector<16x128xf32>
    %c0_6 = arith.constant 0 : index
    %c0_7 = arith.constant 0 : index
    %8 = vector.load %arg9[%c0_6, %c0_7] : memref<16x128xf32, #tpu.memory_space<vmem>>, vector<16x128xf32>
    tpu.vector_store %arg9[%c0_6, %c0_7], %7 {strides = array<i32>} : memref<16x128xf32, #tpu.memory_space<vmem>>, vector<16x128xf32>,
    %c0_i32_8 = arith.constant 0 : i32
    %9 = arith.cmpi eq, %arg1, %c0_i32_8 : i32
    %10 = arith.extui %9 : i1 to i32
    %c0_i32_9 = arith.constant 0 : i32
    %11 = arith.cmpi ne, %10, %c0_i32_9 : i32
    scf.if %11 {
      %c0_10 = arith.constant 0 : index
      %c0_11 = arith.constant 0 : index
      %12 = vector.load %arg9[%c0_10, %c0_11] : memref<16x128xf32, #tpu.memory_space<vmem>>, vector<16x128xf32>
      %c0_12 = arith.constant 0 : index
      %c0_13 = arith.constant 0 : index
      %13 = vector.load %arg4[%c0_12, %c0_13] : memref<1x128xf32, #tpu.memory_space<vmem>>, vector<1x128xf32>
      %14 = vector.broadcast %13 : vector<1x128xf32> to vector<16x128xf32>
      %15 = arith.addf %12, %14 : vector<16x128xf32>
      %c0_14 = arith.constant 0 : index
      %c0_15 = arith.constant 0 : index
      %16 = vector.load %arg5[%c0_14, %c0_15] : memref<16x128xf32, #tpu.memory_space<vmem>>, vector<16x128xf32>
      %17 = arith.addf %15, %16 : vector<16x128xf32>
      %cst_16 = arith.constant dense<0.000000e+00> : vector<16xf32>
      %18 = vector.multi_reduction <add>, %17, %cst_16 [1] : vector<16x128xf32> to vector<16xf32>
      %19 = vector.shape_cast %18 : vector<16xf32> to vector<16x1xf32>
      %cst_17 = arith.constant 1.280000e+02 : f32
      %20 = vector.broadcast %cst_17 : f32 to vector<16x1xf32>
      %21 = arith.divf %19, %20 : vector<16x1xf32>
      %22 = vector.broadcast %21 : vector<16x1xf32> to vector<16x128xf32>
      %23 = arith.subf %17, %22 : vector<16x128xf32>
      %24 = arith.mulf %23, %23 : vector<16x128xf32>
      %cst_18 = arith.constant dense<0.000000e+00> : vector<16xf32>
      %25 = vector.multi_reduction <add>, %24, %cst_18 [1] : vector<16x128xf32> to vector<16xf32>
      %26 = vector.shape_cast %25 : vector<16xf32> to vector<16x1xf32>
      %cst_19 = arith.constant 1.280000e+02 : f32
      %27 = vector.broadcast %cst_19 : f32 to vector<16x1xf32>
      %28 = arith.divf %26, %27 : vector<16x1xf32>
      %cst_20 = arith.constant 9.99999974E-6 : f32
      %29 = vector.broadcast %cst_20 : f32 to vector<16x1xf32>
      %30 = arith.addf %28, %29 : vector<16x1xf32>
      %31 = math.rsqrt %30 : vector<16x1xf32>
      %32 = vector.broadcast %31 : vector<16x1xf32> to vector<16x128xf32>
      %33 = arith.mulf %23, %32 : vector<16x128xf32>
      %c0_21 = arith.constant 0 : index
      %c0_22 = arith.constant 0 : index
      %34 = vector.load %arg6[%c0_21, %c0_22] : memref<1x128xf32, #tpu.memory_space<vmem>>, vector<1x128xf32>
      %35 = vector.broadcast %34 : vector<1x128xf32> to vector<16x128xf32>
      %36 = arith.mulf %33, %35 : vector<16x128xf32>
      %c0_23 = arith.constant 0 : index
      %c0_24 = arith.constant 0 : index
      %37 = vector.load %arg7[%c0_23, %c0_24] : memref<1x128xf32, #tpu.memory_space<vmem>>, vector<1x128xf32>
      %38 = vector.broadcast %37 : vector<1x128xf32> to vector<16x128xf32>
      %39 = arith.addf %36, %38 : vector<16x128xf32>
      %c0_25 = arith.constant 0 : index
      %c0_26 = arith.constant 0 : index
      %40 = vector.load %arg8[%c0_25, %c0_26] : memref<16x128xf32, #tpu.memory_space<vmem>>, vector<16x128xf32>
      tpu.vector_store %arg8[%c0_25, %c0_26], %39 {strides = array<i32>} : memref<16x128xf32, #tpu.memory_space<vmem>>, vector<16x128xf32>,
    } else {
    }
    return
  }
  func.func @transform_0(%arg0: i32, %arg1: i32) -> (i32, i32) {
    %c0_i32 = arith.constant 0 : i32
    return %arg0, %arg1 : i32, i32
  }
  func.func @transform_1(%arg0: i32, %arg1: i32) -> (i32, i32) {
    %c0_i32 = arith.constant 0 : i32
    %c0_i32_0 = arith.constant 0 : i32
    return %arg1, %c0_i32 : i32, i32
  }
  func.func @transform_2(%arg0: i32, %arg1: i32) -> (i32, i32) {
    %c0_i32 = arith.constant 0 : i32
    %c0_i32_0 = arith.constant 0 : i32
    %c0_i32_1 = arith.constant 0 : i32
    return %c0_i32, %c0_i32_0 : i32, i32
  }
  func.func @transform_3(%arg0: i32, %arg1: i32) -> (i32, i32) {
    %c0_i32 = arith.constant 0 : i32
    %c0_i32_0 = arith.constant 0 : i32
    return %arg0, %c0_i32 : i32, i32
  }
  func.func @transform_4(%arg0: i32, %arg1: i32) -> (i32, i32) {
    %c0_i32 = arith.constant 0 : i32
    %c0_i32_0 = arith.constant 0 : i32
    %c0_i32_1 = arith.constant 0 : i32
    return %c0_i32, %c0_i32_0 : i32, i32
  }
  func.func @transform_5(%arg0: i32, %arg1: i32) -> (i32, i32) {
    %c0_i32 = arith.constant 0 : i32
    %c0_i32_0 = arith.constant 0 : i32
    %c0_i32_1 = arith.constant 0 : i32
    return %c0_i32, %c0_i32_0 : i32, i32
  }
  func.func @transform_6(%arg0: i32, %arg1: i32) -> (i32, i32) {
    %c0_i32 = arith.constant 0 : i32
    %c0_i32_0 = arith.constant 0 : i32
    return %arg0, %c0_i32 : i32, i32
  }
}

module attributes {stable_mosaic.version = 11 : i64} {
  func.func @_matmul_bias_kernel(%arg0: i32, %arg1: i32, %arg2: i32, %arg3: memref<16x128xf32, #tpu.memory_space<vmem>>, %arg4: memref<128x256xbf16, #tpu.memory_space<vmem>>, %arg5: memref<1x256xf32, #tpu.memory_space<vmem>>, %arg6: memref<16x256xbf16, #tpu.memory_space<vmem>>, %arg7: memref<16x256xf32, #tpu.memory_space<vmem>>) attributes {dimension_semantics = [#tpu.dimension_semantics<parallel>, #tpu.dimension_semantics<parallel>, #tpu.dimension_semantics<arbitrary>], iteration_bounds = array<i64: 2, 1, 1>, scalar_prefetch = 0 : i64, scratch_operands = 1 : i64, tpu.core_type = #tpu.core_type<tc>, window_params = [{transform_indices = @transform_0, window_bounds = array<i64: 16, 128>}, {transform_indices = @transform_1, window_bounds = array<i64: 128, 256>}, {transform_indices = @transform_2, window_bounds = array<i64: 1, 256>}, {transform_indices = @transform_3, window_bounds = array<i64: 16, 256>}]} {
    %c0_i32 = arith.constant 0 : i32
    %0 = arith.cmpi eq, %arg2, %c0_i32 : i32
    %1 = arith.extui %0 : i1 to i32
    %c0_i32_0 = arith.constant 0 : i32
    %2 = arith.cmpi ne, %1, %c0_i32_0 : i32
    scf.if %2 {
      %cst_10 = arith.constant 0.000000e+00 : f32
      %13 = vector.broadcast %cst_10 : f32 to vector<16x256xf32>
      %c0_11 = arith.constant 0 : index
      %c0_12 = arith.constant 0 : index
      %14 = vector.load %arg7[%c0_11, %c0_12] : memref<16x256xf32, #tpu.memory_space<vmem>>, vector<16x256xf32>
      tpu.vector_store %arg7[%c0_11, %c0_12], %13 {strides = array<i32>} : memref<16x256xf32, #tpu.memory_space<vmem>>, vector<16x256xf32>,
    } else {
    }
    %c0 = arith.constant 0 : index
    %c0_1 = arith.constant 0 : index
    %3 = vector.load %arg7[%c0, %c0_1] : memref<16x256xf32, #tpu.memory_space<vmem>>, vector<16x256xf32>
    %c0_2 = arith.constant 0 : index
    %c0_3 = arith.constant 0 : index
    %4 = vector.load %arg3[%c0_2, %c0_3] : memref<16x128xf32, #tpu.memory_space<vmem>>, vector<16x128xf32>
    %5 = arith.truncf %4 : vector<16x128xf32> to vector<16x128xbf16>
    %c0_4 = arith.constant 0 : index
    %c0_5 = arith.constant 0 : index
    %6 = vector.load %arg4[%c0_4, %c0_5] : memref<128x256xbf16, #tpu.memory_space<vmem>>, vector<128x256xbf16>
    %cst = arith.constant dense<0.000000e+00> : vector<16x256xf32>
    %7 = tpu.matmul %5, %6, %cst {dimension_numbers = #tpu.dot_dimension_numbers<[1], [0], [0], [1], [0, 0, 1, 1], [], []>} : vector<16x128xbf16>, vector<128x256xbf16>, vector<16x256xf32> -> vector<16x256xf32>
    %8 = arith.addf %3, %7 : vector<16x256xf32>
    %c0_6 = arith.constant 0 : index
    %c0_7 = arith.constant 0 : index
    %9 = vector.load %arg7[%c0_6, %c0_7] : memref<16x256xf32, #tpu.memory_space<vmem>>, vector<16x256xf32>
    tpu.vector_store %arg7[%c0_6, %c0_7], %8 {strides = array<i32>} : memref<16x256xf32, #tpu.memory_space<vmem>>, vector<16x256xf32>,
    %c0_i32_8 = arith.constant 0 : i32
    %10 = arith.cmpi eq, %arg2, %c0_i32_8 : i32
    %11 = arith.extui %10 : i1 to i32
    %c0_i32_9 = arith.constant 0 : i32
    %12 = arith.cmpi ne, %11, %c0_i32_9 : i32
    scf.if %12 {
      %c0_10 = arith.constant 0 : index
      %c0_11 = arith.constant 0 : index
      %13 = vector.load %arg7[%c0_10, %c0_11] : memref<16x256xf32, #tpu.memory_space<vmem>>, vector<16x256xf32>
      %c0_12 = arith.constant 0 : index
      %c0_13 = arith.constant 0 : index
      %14 = vector.load %arg5[%c0_12, %c0_13] : memref<1x256xf32, #tpu.memory_space<vmem>>, vector<1x256xf32>
      %15 = vector.broadcast %14 : vector<1x256xf32> to vector<16x256xf32>
      %16 = arith.addf %13, %15 : vector<16x256xf32>
      %cst_14 = arith.constant 0.000000e+00 : f32
      %17 = vector.broadcast %cst_14 : f32 to vector<16x256xf32>
      %18 = arith.maximumf %16, %17 : vector<16x256xf32>
      %19 = arith.truncf %18 : vector<16x256xf32> to vector<16x256xbf16>
      %c0_15 = arith.constant 0 : index
      %c0_16 = arith.constant 0 : index
      %20 = vector.load %arg6[%c0_15, %c0_16] : memref<16x256xbf16, #tpu.memory_space<vmem>>, vector<16x256xbf16>
      tpu.vector_store %arg6[%c0_15, %c0_16], %19 {strides = array<i32>} : memref<16x256xbf16, #tpu.memory_space<vmem>>, vector<16x256xbf16>,
    } else {
    }
    return
  }
  func.func @transform_0(%arg0: i32, %arg1: i32, %arg2: i32) -> (i32, i32) {
    %c0_i32 = arith.constant 0 : i32
    return %arg0, %arg2 : i32, i32
  }
  func.func @transform_1(%arg0: i32, %arg1: i32, %arg2: i32) -> (i32, i32) {
    %c0_i32 = arith.constant 0 : i32
    return %arg2, %arg1 : i32, i32
  }
  func.func @transform_2(%arg0: i32, %arg1: i32, %arg2: i32) -> (i32, i32) {
    %c0_i32 = arith.constant 0 : i32
    %c0_i32_0 = arith.constant 0 : i32
    return %c0_i32, %arg1 : i32, i32
  }
  func.func @transform_3(%arg0: i32, %arg1: i32, %arg2: i32) -> (i32, i32) {
    %c0_i32 = arith.constant 0 : i32
    return %arg0, %arg1 : i32, i32
  }
}

module attributes {stable_mosaic.version = 11 : i64} {
  func.func @_matmul_bias_kernel(%arg0: i32, %arg1: i32, %arg2: i32, %arg3: memref<16x128xf32, #tpu.memory_space<vmem>>, %arg4: memref<128x128xbf16, #tpu.memory_space<vmem>>, %arg5: memref<1x128xf32, #tpu.memory_space<vmem>>, %arg6: memref<16x128xbf16, #tpu.memory_space<vmem>>, %arg7: memref<16x128xf32, #tpu.memory_space<vmem>>) attributes {dimension_semantics = [#tpu.dimension_semantics<parallel>, #tpu.dimension_semantics<parallel>, #tpu.dimension_semantics<arbitrary>], iteration_bounds = array<i64: 2, 3, 1>, scalar_prefetch = 0 : i64, scratch_operands = 1 : i64, tpu.core_type = #tpu.core_type<tc>, window_params = [{transform_indices = @transform_0, window_bounds = array<i64: 16, 128>}, {transform_indices = @transform_1, window_bounds = array<i64: 128, 128>}, {transform_indices = @transform_2, window_bounds = array<i64: 1, 128>}, {transform_indices = @transform_3, window_bounds = array<i64: 16, 128>}]} {
    %c0_i32 = arith.constant 0 : i32
    %0 = arith.cmpi eq, %arg2, %c0_i32 : i32
    %1 = arith.extui %0 : i1 to i32
    %c0_i32_0 = arith.constant 0 : i32
    %2 = arith.cmpi ne, %1, %c0_i32_0 : i32
    scf.if %2 {
      %cst_10 = arith.constant 0.000000e+00 : f32
      %13 = vector.broadcast %cst_10 : f32 to vector<16x128xf32>
      %c0_11 = arith.constant 0 : index
      %c0_12 = arith.constant 0 : index
      %14 = vector.load %arg7[%c0_11, %c0_12] : memref<16x128xf32, #tpu.memory_space<vmem>>, vector<16x128xf32>
      tpu.vector_store %arg7[%c0_11, %c0_12], %13 {strides = array<i32>} : memref<16x128xf32, #tpu.memory_space<vmem>>, vector<16x128xf32>,
    } else {
    }
    %c0 = arith.constant 0 : index
    %c0_1 = arith.constant 0 : index
    %3 = vector.load %arg7[%c0, %c0_1] : memref<16x128xf32, #tpu.memory_space<vmem>>, vector<16x128xf32>
    %c0_2 = arith.constant 0 : index
    %c0_3 = arith.constant 0 : index
    %4 = vector.load %arg3[%c0_2, %c0_3] : memref<16x128xf32, #tpu.memory_space<vmem>>, vector<16x128xf32>
    %5 = arith.truncf %4 : vector<16x128xf32> to vector<16x128xbf16>
    %c0_4 = arith.constant 0 : index
    %c0_5 = arith.constant 0 : index
    %6 = vector.load %arg4[%c0_4, %c0_5] : memref<128x128xbf16, #tpu.memory_space<vmem>>, vector<128x128xbf16>
    %cst = arith.constant dense<0.000000e+00> : vector<16x128xf32>
    %7 = tpu.matmul %5, %6, %cst {dimension_numbers = #tpu.dot_dimension_numbers<[1], [0], [0], [1], [0, 0, 1, 1], [], []>} : vector<16x128xbf16>, vector<128x128xbf16>, vector<16x128xf32> -> vector<16x128xf32>
    %8 = arith.addf %3, %7 : vector<16x128xf32>
    %c0_6 = arith.constant 0 : index
    %c0_7 = arith.constant 0 : index
    %9 = vector.load %arg7[%c0_6, %c0_7] : memref<16x128xf32, #tpu.memory_space<vmem>>, vector<16x128xf32>
    tpu.vector_store %arg7[%c0_6, %c0_7], %8 {strides = array<i32>} : memref<16x128xf32, #tpu.memory_space<vmem>>, vector<16x128xf32>,
    %c0_i32_8 = arith.constant 0 : i32
    %10 = arith.cmpi eq, %arg2, %c0_i32_8 : i32
    %11 = arith.extui %10 : i1 to i32
    %c0_i32_9 = arith.constant 0 : i32
    %12 = arith.cmpi ne, %11, %c0_i32_9 : i32
    scf.if %12 {
      %c0_10 = arith.constant 0 : index
      %c0_11 = arith.constant 0 : index
      %13 = vector.load %arg7[%c0_10, %c0_11] : memref<16x128xf32, #tpu.memory_space<vmem>>, vector<16x128xf32>
      %c0_12 = arith.constant 0 : index
      %c0_13 = arith.constant 0 : index
      %14 = vector.load %arg5[%c0_12, %c0_13] : memref<1x128xf32, #tpu.memory_space<vmem>>, vector<1x128xf32>
      %15 = vector.broadcast %14 : vector<1x128xf32> to vector<16x128xf32>
      %16 = arith.addf %13, %15 : vector<16x128xf32>
      %17 = arith.truncf %16 : vector<16x128xf32> to vector<16x128xbf16>
      %c0_14 = arith.constant 0 : index
      %c0_15 = arith.constant 0 : index
      %18 = vector.load %arg6[%c0_14, %c0_15] : memref<16x128xbf16, #tpu.memory_space<vmem>>, vector<16x128xbf16>
      tpu.vector_store %arg6[%c0_14, %c0_15], %17 {strides = array<i32>} : memref<16x128xbf16, #tpu.memory_space<vmem>>, vector<16x128xbf16>,
    } else {
    }
    return
  }
  func.func @transform_0(%arg0: i32, %arg1: i32, %arg2: i32) -> (i32, i32) {
    %c0_i32 = arith.constant 0 : i32
    return %arg0, %arg2 : i32, i32
  }
  func.func @transform_1(%arg0: i32, %arg1: i32, %arg2: i32) -> (i32, i32) {
    %c0_i32 = arith.constant 0 : i32
    return %arg2, %arg1 : i32, i32
  }
  func.func @transform_2(%arg0: i32, %arg1: i32, %arg2: i32) -> (i32, i32) {
    %c0_i32 = arith.constant 0 : i32
    %c0_i32_0 = arith.constant 0 : i32
    return %c0_i32, %arg1 : i32, i32
  }
  func.func @transform_3(%arg0: i32, %arg1: i32, %arg2: i32) -> (i32, i32) {
    %c0_i32 = arith.constant 0 : i32
    return %arg0, %arg1 : i32, i32
  }
}

module attributes {stable_mosaic.version = 11 : i64} {
  func.func @_matmul_res_ln_kernel(%arg0: i32, %arg1: i32, %arg2: memref<16x256xbf16, #tpu.memory_space<vmem>>, %arg3: memref<256x128xbf16, #tpu.memory_space<vmem>>, %arg4: memref<1x128xf32, #tpu.memory_space<vmem>>, %arg5: memref<16x128xf32, #tpu.memory_space<vmem>>, %arg6: memref<1x128xf32, #tpu.memory_space<vmem>>, %arg7: memref<1x128xf32, #tpu.memory_space<vmem>>, %arg8: memref<16x128xf32, #tpu.memory_space<vmem>>, %arg9: memref<16x128xf32, #tpu.memory_space<vmem>>) attributes {dimension_semantics = [#tpu.dimension_semantics<parallel>, #tpu.dimension_semantics<arbitrary>], iteration_bounds = array<i64: 2, 1>, scalar_prefetch = 0 : i64, scratch_operands = 1 : i64, tpu.core_type = #tpu.core_type<tc>, window_params = [{transform_indices = @transform_0, window_bounds = array<i64: 16, 256>}, {transform_indices = @transform_1, window_bounds = array<i64: 256, 128>}, {pipeline_mode = #tpu.pipeline_mode<synchronous>, transform_indices = @transform_2, window_bounds = array<i64: 1, 128>}, {transform_indices = @transform_3, window_bounds = array<i64: 16, 128>}, {pipeline_mode = #tpu.pipeline_mode<synchronous>, transform_indices = @transform_4, window_bounds = array<i64: 1, 128>}, {pipeline_mode = #tpu.pipeline_mode<synchronous>, transform_indices = @transform_5, window_bounds = array<i64: 1, 128>}, {transform_indices = @transform_6, window_bounds = array<i64: 16, 128>}]} {
    %c0_i32 = arith.constant 0 : i32
    %0 = arith.cmpi eq, %arg1, %c0_i32 : i32
    %1 = arith.extui %0 : i1 to i32
    %c0_i32_0 = arith.constant 0 : i32
    %2 = arith.cmpi ne, %1, %c0_i32_0 : i32
    scf.if %2 {
      %cst_10 = arith.constant 0.000000e+00 : f32
      %12 = vector.broadcast %cst_10 : f32 to vector<16x128xf32>
      %c0_11 = arith.constant 0 : index
      %c0_12 = arith.constant 0 : index
      %13 = vector.load %arg9[%c0_11, %c0_12] : memref<16x128xf32, #tpu.memory_space<vmem>>, vector<16x128xf32>
      tpu.vector_store %arg9[%c0_11, %c0_12], %12 {strides = array<i32>} : memref<16x128xf32, #tpu.memory_space<vmem>>, vector<16x128xf32>,
    } else {
    }
    %c0 = arith.constant 0 : index
    %c0_1 = arith.constant 0 : index
    %3 = vector.load %arg9[%c0, %c0_1] : memref<16x128xf32, #tpu.memory_space<vmem>>, vector<16x128xf32>
    %c0_2 = arith.constant 0 : index
    %c0_3 = arith.constant 0 : index
    %4 = vector.load %arg2[%c0_2, %c0_3] : memref<16x256xbf16, #tpu.memory_space<vmem>>, vector<16x256xbf16>
    %c0_4 = arith.constant 0 : index
    %c0_5 = arith.constant 0 : index
    %5 = vector.load %arg3[%c0_4, %c0_5] : memref<256x128xbf16, #tpu.memory_space<vmem>>, vector<256x128xbf16>
    %cst = arith.constant dense<0.000000e+00> : vector<16x128xf32>
    %6 = tpu.matmul %4, %5, %cst {dimension_numbers = #tpu.dot_dimension_numbers<[1], [0], [0], [1], [0, 0, 1, 1], [], []>} : vector<16x256xbf16>, vector<256x128xbf16>, vector<16x128xf32> -> vector<16x128xf32>
    %7 = arith.addf %3, %6 : vector<16x128xf32>
    %c0_6 = arith.constant 0 : index
    %c0_7 = arith.constant 0 : index
    %8 = vector.load %arg9[%c0_6, %c0_7] : memref<16x128xf32, #tpu.memory_space<vmem>>, vector<16x128xf32>
    tpu.vector_store %arg9[%c0_6, %c0_7], %7 {strides = array<i32>} : memref<16x128xf32, #tpu.memory_space<vmem>>, vector<16x128xf32>,
    %c0_i32_8 = arith.constant 0 : i32
    %9 = arith.cmpi eq, %arg1, %c0_i32_8 : i32
    %10 = arith.extui %9 : i1 to i32
    %c0_i32_9 = arith.constant 0 : i32
    %11 = arith.cmpi ne, %10, %c0_i32_9 : i32
    scf.if %11 {
      %c0_10 = arith.constant 0 : index
      %c0_11 = arith.constant 0 : index
      %12 = vector.load %arg9[%c0_10, %c0_11] : memref<16x128xf32, #tpu.memory_space<vmem>>, vector<16x128xf32>
      %c0_12 = arith.constant 0 : index
      %c0_13 = arith.constant 0 : index
      %13 = vector.load %arg4[%c0_12, %c0_13] : memref<1x128xf32, #tpu.memory_space<vmem>>, vector<1x128xf32>
      %14 = vector.broadcast %13 : vector<1x128xf32> to vector<16x128xf32>
      %15 = arith.addf %12, %14 : vector<16x128xf32>
      %c0_14 = arith.constant 0 : index
      %c0_15 = arith.constant 0 : index
      %16 = vector.load %arg5[%c0_14, %c0_15] : memref<16x128xf32, #tpu.memory_space<vmem>>, vector<16x128xf32>
      %17 = arith.addf %15, %16 : vector<16x128xf32>
      %cst_16 = arith.constant dense<0.000000e+00> : vector<16xf32>
      %18 = vector.multi_reduction <add>, %17, %cst_16 [1] : vector<16x128xf32> to vector<16xf32>
      %19 = vector.shape_cast %18 : vector<16xf32> to vector<16x1xf32>
      %cst_17 = arith.constant 1.280000e+02 : f32
      %20 = vector.broadcast %cst_17 : f32 to vector<16x1xf32>
      %21 = arith.divf %19, %20 : vector<16x1xf32>
      %22 = vector.broadcast %21 : vector<16x1xf32> to vector<16x128xf32>
      %23 = arith.subf %17, %22 : vector<16x128xf32>
      %24 = arith.mulf %23, %23 : vector<16x128xf32>
      %cst_18 = arith.constant dense<0.000000e+00> : vector<16xf32>
      %25 = vector.multi_reduction <add>, %24, %cst_18 [1] : vector<16x128xf32> to vector<16xf32>
      %26 = vector.shape_cast %25 : vector<16xf32> to vector<16x1xf32>
      %cst_19 = arith.constant 1.280000e+02 : f32
      %27 = vector.broadcast %cst_19 : f32 to vector<16x1xf32>
      %28 = arith.divf %26, %27 : vector<16x1xf32>
      %cst_20 = arith.constant 9.99999974E-6 : f32
      %29 = vector.broadcast %cst_20 : f32 to vector<16x1xf32>
      %30 = arith.addf %28, %29 : vector<16x1xf32>
      %31 = math.rsqrt %30 : vector<16x1xf32>
      %32 = vector.broadcast %31 : vector<16x1xf32> to vector<16x128xf32>
      %33 = arith.mulf %23, %32 : vector<16x128xf32>
      %c0_21 = arith.constant 0 : index
      %c0_22 = arith.constant 0 : index
      %34 = vector.load %arg6[%c0_21, %c0_22] : memref<1x128xf32, #tpu.memory_space<vmem>>, vector<1x128xf32>
      %35 = vector.broadcast %34 : vector<1x128xf32> to vector<16x128xf32>
      %36 = arith.mulf %33, %35 : vector<16x128xf32>
      %c0_23 = arith.constant 0 : index
      %c0_24 = arith.constant 0 : index
      %37 = vector.load %arg7[%c0_23, %c0_24] : memref<1x128xf32, #tpu.memory_space<vmem>>, vector<1x128xf32>
      %38 = vector.broadcast %37 : vector<1x128xf32> to vector<16x128xf32>
      %39 = arith.addf %36, %38 : vector<16x128xf32>
      %c0_25 = arith.constant 0 : index
      %c0_26 = arith.constant 0 : index
      %40 = vector.load %arg8[%c0_25, %c0_26] : memref<16x128xf32, #tpu.memory_space<vmem>>, vector<16x128xf32>
      tpu.vector_store %arg8[%c0_25, %c0_26], %39 {strides = array<i32>} : memref<16x128xf32, #tpu.memory_space<vmem>>, vector<16x128xf32>,
    } else {
    }
    return
  }
  func.func @transform_0(%arg0: i32, %arg1: i32) -> (i32, i32) {
    %c0_i32 = arith.constant 0 : i32
    return %arg0, %arg1 : i32, i32
  }
  func.func @transform_1(%arg0: i32, %arg1: i32) -> (i32, i32) {
    %c0_i32 = arith.constant 0 : i32
    %c0_i32_0 = arith.constant 0 : i32
    return %arg1, %c0_i32 : i32, i32
  }
  func.func @transform_2(%arg0: i32, %arg1: i32) -> (i32, i32) {
    %c0_i32 = arith.constant 0 : i32
    %c0_i32_0 = arith.constant 0 : i32
    %c0_i32_1 = arith.constant 0 : i32
    return %c0_i32, %c0_i32_0 : i32, i32
  }
  func.func @transform_3(%arg0: i32, %arg1: i32) -> (i32, i32) {
    %c0_i32 = arith.constant 0 : i32
    %c0_i32_0 = arith.constant 0 : i32
    return %arg0, %c0_i32 : i32, i32
  }
  func.func @transform_4(%arg0: i32, %arg1: i32) -> (i32, i32) {
    %c0_i32 = arith.constant 0 : i32
    %c0_i32_0 = arith.constant 0 : i32
    %c0_i32_1 = arith.constant 0 : i32
    return %c0_i32, %c0_i32_0 : i32, i32
  }
  func.func @transform_5(%arg0: i32, %arg1: i32) -> (i32, i32) {
    %c0_i32 = arith.constant 0 : i32
    %c0_i32_0 = arith.constant 0 : i32
    %c0_i32_1 = arith.constant 0 : i32
    return %c0_i32, %c0_i32_0 : i32, i32
  }
  func.func @transform_6(%arg0: i32, %arg1: i32) -> (i32, i32) {
    %c0_i32 = arith.constant 0 : i32
    %c0_i32_0 = arith.constant 0 : i32
    return %arg0, %c0_i32 : i32, i32
  }
}

</mosaic_0001>

<bundles_post_ra>
// kernel: transformer_decoder.18
= control target key start
LH: loop header
LB: loop body
LE: loop exit
PB: predicated region body
PF: predicated region fallthrough
CT: control target
= control target key end

     0   :  { %8 = vsyncpa [#allocation4], 0  ;;  %s1034_s0 = inlined_call_operand.vmem [shape: f32[32,128], index: 0, kind: input, shape index: {}]   ;;  %s1035_s1 = inlined_call_operand.hbm [shape: bf16[128,384], index: 1, kind: input, shape index: {}]   ;;  %s1036_s2 = inlined_call_operand.vmem [shape: f32[1,384], index: 2, kind: input, shape index: {}]   ;;  %s1037_s3 = inlined_call_operand.vmem [shape: bf16[32,384], index: 3, kind: output, shape index: {}]  }
   0x1   :  { %10 = vsyncpa [#allocation4 + $0x1], 0  ;;  %s868_s12 = smov 0   ;;  %s870_s13 = smov 0  }
   0x2   :  { %s872_s14 = smov 0   ;;  %s874_s15 = smov 0  }
   0x3   :  { %s876_s16 = smov 0   ;;  %s878_s17 = smov 0  }
   0x4   :  { %s880_s18 = smov 0   ;;  %s882_s19 = smov 0  }
   0x5   :  { %s884_s20 = smov 0   ;;  %s886_s21 = smov 0  }
   0x6 LB: > { %s565_s22 = sadd.s32 4294967295, %s840_s21   ;;  %s31_s23 = sadd.s32 1, %s832_s19  ;;  %s840_s21 = sphi %s886_s21, %s16_s21   ;;  %s836_s20 = sphi %s884_s20, %s1056_s20   ;;  %s832_s19 = sphi %s882_s19, %s1055_s19   ;;  %s828_s18 = sphi %s880_s18, %s1054_s18   ;;  %s824_s17 = sphi %s878_s17, %s1053_s17   ;;  %s820_s16 = sphi %s876_s16, %s1052_s16   ;;  %s816_s15 = sphi %s874_s15, %s1051_s15   ;;  %s812_s14 = sphi %s872_s14, %s1050_s14   ;;  %s808_s13 = sphi %s870_s13, %s1049_s13   ;;  %s804_s12 = sphi %s868_s12, %s1048_s12  }
   0x7   : > { %p33_p0 = scmp.ge.s32.totalorder %s31_s23, 3  ;;  %s35_s24 = sadd.s32 1, %s836_s20 }
   0x8   : > { %s72_s25 = sadd.s32 1, %s820_s16  ;;  %p79_p1 = scmp.ne.s32.totalorder %s820_s16, %s816_s15 }
   0x9   : > { %s1058_s23 = smov (%p33_p0, %s31_s23), 0  ;;  %s1060_s24 = smov (!%p33_p0, %s35_s24), %s836_s20 }
   0xa   : > { %1040 = sst [smem:[#allocation7_spill]] %s1058_s23  ;;  %s68_s26 = ssub.s32 %s832_s19, %s1058_s23 }
   0xb   : > { %p80_p2 = scmp.eq.s32.totalorder %s840_s21, 0  ;;  %p37_p3 = scmp.ge.s32.totalorder %s1060_s24, 2 }
   0xc   : > { %p70_p4 = scmp.eq.s32.totalorder %s68_s26, 0  ;;  %p85_p6 = scmp.ne.s32.totalorder %s816_s15, %s812_s14 }
   0xd   : > { %p928_p5 = por %p80_p2, %p79_p1  ;;  %s1062_s24 = smov (%p37_p3, %s1060_s24), 0 }
   0xe   : > { %1042 = sst [smem:[#allocation8_spill]] %s1062_s24  ;;  %p86_p7 = scmp.eq.s32.totalorder %s565_s22, 0 }
   0xf   : > { %s936_s28 = scalar_select %p70_p4, %s820_s16, %s72_s25  }
  0x10   : > { %s121_s29 = ssub.s32 %s836_s20, %s1062_s24  ;;  %s126_s4 = sadd.s32 1, %s808_s13 }
  0x11   : > { %s123_s30 = sor.u32 %s121_s29, %s68_s26  ;;  %p941_p8 = por %p86_p7, %p85_p6 }
  0x12   : > { %p124_p9 = scmp.eq.s32.totalorder %s123_s30, 0  ;;  %p136_p10 = scmp.ne.s32.totalorder %s808_s13, %s804_s12 }
  0x13   : > { %p137_p11 = scmp.eq.s32.totalorder %s565_s22, 5  ;;  %p636_p13 = scmp.lt.s32.totalorder %s840_s21, 6 }
  0x14   : > { %s948_s6 = scalar_select %p124_p9, %s808_s13, %s126_s4  }
  0x15   : > { %p950_p12 = por %p137_p11, %p136_p10  ;;  %s175_s8 = sand.u32 1, %s820_s16  }
  0x16   : > { %s569_s9 = sshll.u32 %s175_s8, 6  ;;  %s570_s10 = sshll.u32 %s832_s19, 6 }
  0x17   : > { %s187_s25 = scalar_lea.hbm %s1035_s1, %s570_s10  ;;  %s179_s26 = scalar_lea.vmem [#allocation3], %s569_s9 }
  0x18   : > { %s188_s29 = sshll.u32 %s179_s26, 4  ;;  %p962_p0 = pnand %p636_p13, %p928_p5  ;;  %s189_s29 = int_to_ptr.vmem [resolvable:$true] %s188_s29 }
  0x19   : > { %s176_s30 = scalar_lea.sflag [#allocation4], %s175_s8  ;;  %s743_s4 = scalar_lea.vmem %s189_s29, 1024 }
  0x1a   : > { %p732_p1 = pneg %p962_p0  ;;  %p744_p2 = scmp.ne.s32.totalorder %s189_s29, %s743_s4 }
  0x1b   : > { %s842_s24 = smov [#allocation3]  }
  0x1c   : > { %p746_p3 = pnand %p744_p2, %p732_p1  ;;  %s748_s23 = sshll.u32 %s842_s24, 4  ;;  %s749_s23 = int_to_ptr.vmem [resolvable:$false] %s748_s23 }
  0x1d   : > { %s750_s10 = scalar_lea.vmem %s749_s23, 2048  ;;  %p751_p6 = scmp.lt.s32.totalorder %s189_s29, %s749_s23 }
  0x1e   : > { %p747_p4 = pneg %p746_p3  ;;  %p752_p7 = scmp.lt.s32.totalorder %s750_s10, %s743_s4 }
  0x20   : > { %p753_p9 = por %p752_p7, %p751_p6 }
  0x22   : > { %p754_p10 = pnand %p753_p9, %p747_p4 }
  0x24   : > { %757 = shalt.err (!%p754_p10)
}
  0x25   : > { %s843_s27 = smov 192   ;;  %s844_s8 = smov 64  }
  0x26   : > { %s845_s9 = smov 4   ;;  %p571_p5 = scmp.ge.s32.totalorder %s840_s21, 1 }
  0x27   : > { %635 = dma.hbm_to_vmem [thread:$0]  (!%p962_p0), %s187_s25, 1024, %s189_s29, %s176_s30, %s843_s27, %s844_s8, %s845_s9  }
  0x28   : > { %p202_p11 = scmp.lt.s32.totalorder %s840_s21, 7 }
  0x2a   : > { %p203_p13 = pnand %p571_p5, %p202_p11 }
  0x2b   : > { %s208_s24 = sand.u32 (!%p203_p13), 1, %s816_s15  }
  0x2c   : > { %206 = sbr.rel (%p203_p13) target bundleno = 293 (0x125), region = 32  ;;  %s572_s23 = sshll.u32 (!%p203_p13), %s208_s24, 6 }
  0x2d   : > { %s209_s11 = scalar_lea.sflag (!%p203_p13), [#allocation4], %s208_s24  ;;  %s973_s14 = scalar_lea.vmem (!%p203_p13), [#allocation3], %s572_s23 }
  0x31   : > { %799 = dma.done.wait (%p941_p8), %s209_s11, 1024  }
  0x32   : > { %801 = vsyncadd (%p941_p8), %s209_s11, 4294966272  ;;  %v846_v0 = vmov 0.0   ;;  %vm847_vm0 = vmmov 0   ;;  %v722_v1 = vld [vmem:[%s973_s14 + $0x38] sm:$0xff]   ;;  %v723_v2 = vld [vmem:[%s973_s14 + $0x30] sm:$0xff]   ;;  %s574_s5 = sshll.u32 %s828_s18, 1 }
  0x33   : > { %609 = vmatprep.subr.bf16.mxu0 %v846_v0  ;;  %625 = vmatprep.mubr.msk.bf16.mxu0 %vm847_vm0, %v846_v0  ;;  %v724_v3 = vld [vmem:[%s973_s14 + $0x28] sm:$0xff]   ;;  %v725_v4 = vld [vmem:[%s973_s14 + $0x20] sm:$0xff]   ;;  %p246_p8 = scmp.lt.s32.totalorder %s574_s5, 3  ;;  %v726_v5 = vld [vmem:[%s973_s14 + $0x18] sm:$0xff]   ;;  %p255_p0 = scmp.lt.s32.totalorder %s824_s17, 2 }
  0x34   : > { %610 = vmatpush3.bf16.msra.mxu0 %v722_v1  ;;  %v727_v6 = vld [vmem:[%s973_s14 + $0x10] sm:$0xff]   ;;  %v728_v7 = vld [vmem:[%s973_s14 + $0x8] sm:$0xff]   ;;  %v729_v8 = vld [vmem:[%s973_s14] sm:$0xff]   ;;  %s242_s8 = sand.u32 1, %s804_s12   ;;  %s629_s23 = smul.u32 (%p950_p12), 6, %s828_s18 }
  0x35   : > { %611 = vmatprep.subr.bf16.mxu0 %v846_v0  ;;  %s1064_s5 = smov (!%p246_p8, %s574_s5), 3  ;;  %s573_s9 = sshll.u32 %s242_s8, 3 }
  0x36   : > { %s575_s25 = sshll.u32 %s1064_s5, 3  ;;  %s244_s24 = scalar_lea.vmem [#allocation5], %s573_s9 }
  0x37   : > { %s252_s22 = scalar_lea.vmem %s1034_s0, %s575_s25  ;;  %s413_s11 = sadd.s32 (%p950_p12), %s824_s17, %s629_s23 }
  0x38   : > { %612 = vmatpush3.bf16.msra.mxu0 %v723_v2  ;;  %v268_v9 = vld [vmem:[%s252_s22] sm:$0xff]  ;;  %v269_v10 = vld [vmem:[%s252_s22 + $0x8] sm:$0xff]  ;;  %s256_s30 = scalar_select %p255_p0, %s824_s17, 2 }
  0x39   : > { %613 = vmatprep.subr.bf16.mxu0 %v846_v0  ;;  %v270_v11 = vpack.c.bf16 %v269_v10, %v268_v9  ;;  %s590_s12 = sshll.u32 (%p950_p12), %s413_s11, 2 }
  0x3a   : > { %s257_s27 = scalar_lea.vmem %s1036_s2, %s256_s30  ;;  %s415_s25 = scalar_lea.vmem (%p950_p12), %s1037_s3, %s590_s12 }
  0x3b   : > { %v584_v13 = vld [vmem:[%s257_s27] ss:$0 sm:$0xff] }
  0x3c   : > { %614 = vmatpush3.bf16.msra.mxu0 %v724_v3 }
  0x3d   : > { %615 = vmatprep.subr.bf16.mxu0 %v846_v0 }
  0x40   : > { %616 = vmatpush3.bf16.msra.mxu0 %v725_v4 }
  0x41   : > { %617 = vmatprep.subr.bf16.mxu0 %v846_v0 }
  0x44   : > { %618 = vmatpush3.bf16.msra.mxu0 %v726_v5 }
  0x45   : > { %619 = vmatprep.subr.bf16.mxu0 %v846_v0 }
  0x48   : > { %620 = vmatpush3.bf16.msra.mxu0 %v727_v6 }
  0x49   : > { %621 = vmatprep.subr.bf16.mxu0 %v846_v0 }
  0x4c   : > { %622 = vmatpush3.bf16.msra.mxu0 %v728_v7 }
  0x4d   : > { %623 = vmatprep.subr.bf16.mxu0 %v846_v0 }
  0x50   : > { %624 = vmatpush3.bf16.msra.mxu0 %v729_v8 }
  0x53   : > { %626 = vmatmul.mubr.bf16.vlgmr.msra.gmra.mxu0 %v270_v11 }
 0x113   : > { %v369_v12 = vpop.f32.mrf.mxu0 }
 0x114   : > { %v392_v16 = vadd.f32 %v584_v13, %v369_v12 }
 0x115   : > { %v627_v14 = vpop.f32.mrf.mxu0 }
 0x117   : > { %v372_v15 = vpop.f32.mrf.mxu0 }
 0x118   : > { %v393_v17 = vadd.f32 %v584_v13, %v372_v15  ;;  %410 = sbr.rel (!%p950_p12) target bundleno = 293 (0x125), region = 48 }
 0x119   : > { %v628_v18 = vpop.f32.mrf.mxu0 }
 0x11a   : > { %v598_v19 = vpack.c.bf16 %v393_v17, %v392_v16 }
 0x11c   : > { %599 = vst [vmem:[%s244_s24] sm:$0xff] %v598_v19  }
 0x123   : > { %v432_v20 = vld [vmem:[%s244_s24] sm:$0xf]  ;;  %v434_v21 = vld [vmem:[%s244_s24 + $0x4] sm:$0xf] }
 0x124   : > { %433 = vst [vmem:[%s415_s25] sm:$0xf] %v432_v20  ;;  %435 = vst [vmem:[%s415_s25 + $0xc] sm:$0xf] %v434_v21 }
 0x125 PF: > { %s16_s21 = sadd.s32 1, %s840_s21   ;;  %s1046_s7 = sld [smem:[#allocation7_spill]] }
 0x126   : > { %p13_p1 = scmp.ge.s32.totalorder %s16_s21, 8   ;;  %s1047_s26 = sld [smem:[#allocation8_spill]] }
 0x127   : > { %s1048_s12 = smov %s808_s13  ;;  %s1049_s13 = smov %s948_s6 }
 0x128   : > { %s1050_s14 = smov %s816_s15  ;;  %s1051_s15 = smov %s820_s16 }
 0x129   : > { %s1052_s16 = smov %s936_s28  ;;  %s1053_s17 = smov %s832_s19 }
 0x12a   : > { %s1054_s18 = smov %s836_s20  ;;  %15 = sbr.rel (!%p13_p1) target bundleno = 6 (0x6), region = 127 }
 0x12b   : > { %s1055_s19 = smov %s1046_s7 }
 0x12c   : > { %s1056_s20 = smov %s1047_s26 }
 0x12f   :  { %473 = vsyncpa [#allocation4], 1 }
 0x130   :  { %475 = vsyncpa [#allocation4 + $0x1], 1 }

// kernel: transformer_decoder.20
= control target key start
LH: loop header
LB: loop body
LE: loop exit
PB: predicated region body
PF: predicated region fallthrough
CT: control target
= control target key end

     0   :  { %s759_s21 = smov 0   ;;  %s761_s22 = smov 0   ;;  %s836_s0 = inlined_call_operand.vmem [shape: bf16[32,128], index: 0, kind: input, shape index: {}]   ;;  %s837_s1 = inlined_call_operand.vmem [shape: bf16[128,128], index: 1, kind: input, shape index: {}]   ;;  %s838_s2 = inlined_call_operand.vmem [shape: f32[1,128], index: 2, kind: input, shape index: {}]   ;;  %s839_s3 = inlined_call_operand.vmem [shape: f32[32,128], index: 3, kind: input, shape index: {}]   ;;  %s840_s4 = inlined_call_operand.vmem [shape: f32[1,128], index: 4, kind: input, shape index: {}]   ;;  %s841_s5 = inlined_call_operand.vmem [shape: f32[1,128], index: 5, kind: input, shape index: {}]   ;;  %s842_s6 = inlined_call_operand.vmem [shape: f32[32,128], index: 6, kind: output, shape index: {}]  }
   0x1   :  { %s763_s23 = smov 0  }
   0x2 LB: > { %s28_s24 = sadd.s32 1, %s716_s22  ;;  %p609_p0 = scmp.ge.s32.totalorder %s720_s23, 1  ;;  %s720_s23 = sphi %s763_s23, %s16_s23   ;;  %s716_s22 = sphi %s761_s22, %s844_s22   ;;  %s712_s21 = sphi %s759_s21, %s843_s21  }
   0x3   : > { %p30_p1 = scmp.ge.s32.totalorder %s28_s24, 2  ;;  %p252_p2 = scmp.lt.s32.totalorder %s720_s23, 3 }
   0x5   : > { %s846_s24 = smov (%p30_p1, %s28_s24), 0  ;;  %p253_p3 = pnand %p609_p0, %p252_p2 }
   0x6   : > { %s610_s29 = sshll.u32 (!%p253_p3), %s712_s21, 1 }
   0x7   : > { %256 = sbr.rel (%p253_p3) target bundleno = 553 (0x229), region = 44  ;;  %p296_p4 = scmp.lt.s32.totalorder (!%p253_p3), %s610_s29, 3 }
   0xc   : > { %v685_v0 = vld [vmem:[%s837_s1 + $0x38] sm:$0xff]   ;;  %v722_v1 = vmov 0.0   ;;  %v686_v2 = vld [vmem:[%s837_s1 + $0x30] sm:$0xff]   ;;  %vm723_vm0 = vmmov 0   ;;  %s848_s29 = smov (!%p296_p4, %s610_s29), 3  ;;  %v687_v3 = vld [vmem:[%s837_s1 + $0x28] sm:$0xff]  }
   0xd   : > { %639 = vmatprep.subr.bf16.mxu0 %v722_v1  ;;  %655 = vmatprep.mubr.msk.bf16.mxu0 %vm723_vm0, %v722_v1  ;;  %s611_s8 = sshll.u32 %s848_s29, 2  ;;  %v688_v4 = vld [vmem:[%s837_s1 + $0x20] sm:$0xff]   ;;  %v689_v5 = vld [vmem:[%s837_s1 + $0x18] sm:$0xff]   ;;  %v690_v6 = vld [vmem:[%s837_s1 + $0x10] sm:$0xff]   ;;  %s613_s25 = sshll.u32 %s848_s29, 3 }
   0xe   : > { %640 = vmatpush3.bf16.msra.mxu0 %v685_v0  ;;  %s302_s11 = scalar_lea.vmem %s836_s0, %s611_s8  ;;  %v691_v7 = vld [vmem:[%s837_s1 + $0x8] sm:$0xff]   ;;  %v692_v8 = vld [vmem:[%s837_s1] sm:$0xff]   ;;  %s314_s28 = scalar_lea.vmem %s839_s3, %s613_s25 }
   0xf   : > { %641 = vmatprep.subr.bf16.mxu0 %v722_v1  ;;  %v693_v9 = vld [vmem:[%s302_s11] sm:$0xff]   ;;  %v463_v17 = vld [vmem:[%s314_s28 + $0x8] sm:$0xff]  ;;  %s320_s14 = scalar_lea.vmem %s842_s6, %s613_s25 }
  0x10   : > { %v625_v10 = vld [vmem:[%s838_s2] ss:$0 sm:$0xff] }
  0x11   : > { %v462_v12 = vld [vmem:[%s314_s28] sm:$0xff] }
  0x12   : > { %642 = vmatpush3.bf16.msra.mxu0 %v686_v2  ;;  %v626_v36 = vld [vmem:[%s840_s4] ss:$0 sm:$0xff] }
  0x13   : > { %643 = vmatprep.subr.bf16.mxu0 %v722_v1  ;;  %v627_v38 = vld [vmem:[%s841_s5] ss:$0 sm:$0xff] }
  0x16   : > { %644 = vmatpush3.bf16.msra.mxu0 %v687_v3 }
  0x17   : > { %645 = vmatprep.subr.bf16.mxu0 %v722_v1 }
  0x1a   : > { %646 = vmatpush3.bf16.msra.mxu0 %v688_v4 }
  0x1b   : > { %647 = vmatprep.subr.bf16.mxu0 %v722_v1 }
  0x1e   : > { %648 = vmatpush3.bf16.msra.mxu0 %v689_v5 }
  0x1f   : > { %649 = vmatprep.subr.bf16.mxu0 %v722_v1 }
  0x22   : > { %650 = vmatpush3.bf16.msra.mxu0 %v690_v6 }
  0x23   : > { %651 = vmatprep.subr.bf16.mxu0 %v722_v1 }
  0x26   : > { %652 = vmatpush3.bf16.msra.mxu0 %v691_v7 }
  0x27   : > { %653 = vmatprep.subr.bf16.mxu0 %v722_v1 }
  0x2a   : > { %654 = vmatpush3.bf16.msra.mxu0 %v692_v8 }
  0x2d   : > { %656 = vmatmul.mubr.bf16.vlgmr.msra.gmra.mxu0 %v693_v9 }
  0xed   : > { %v437_v11 = vpop.f32.mrf.mxu0 }
  0xee   : > { %v460_v13 = vadd.f32 %v625_v10, %v437_v11 }
  0xef   : > { %v657_v14 = vpop.f32.mrf.mxu0 }
  0xf0   : > { %v464_v15 = vadd.f32 %v462_v12, %v460_v13 }
  0xf1   : > { %v440_v16 = vpop.f32.mrf.mxu0 }
  0xf2   : > { %v461_v18 = vadd.f32 %v625_v10, %v440_v16  ;;  %466 = vadd.xlane.f32.xlu0 %v464_v15 }
  0xf3   : > { %v658_v19 = vpop.f32.mrf.mxu0 }
  0xf4   : > { %v465_v20 = vadd.f32 %v463_v17, %v461_v18 }
  0xf6   : > { %468 = vadd.xlane.f32.xlu0 %v465_v20 }
 0x17b   : > { %v467_v21 = vpop.xlane.xlu0 %466 }
 0x17c   : > { %v471_v22 = vmul.f32 0.0078125, %v467_v21 }
 0x17e   : > { %v473_v23 = vsub.f32 %v464_v15, %v471_v22 }
 0x17f   : > { %v469_v24 = vpop.xlane.xlu0 %468 }
 0x180   : > { %v472_v25 = vmul.f32 0.0078125, %v469_v24  ;;  %v475_v26 = vmul.f32 %v473_v23, %v473_v23 }
 0x182   : > { %v474_v27 = vsub.f32 %v465_v20, %v472_v25  ;;  %477 = vadd.xlane.f32.xlu1 %v475_v26 }
 0x184   : > { %v476_v28 = vmul.f32 %v474_v27, %v474_v27 }
 0x186   : > { %479 = vadd.xlane.f32.xlu1 %v476_v28 }
 0x20b   : > { %v478_v29 = vpop.xlane.xlu1 %477 }
 0x20c   : > { %v481_v30 = vmul.f32 0.0078125, %v478_v29 }
 0x20e   : > { %v483_v31 = vadd.f32 1e-05, %v481_v30 }
 0x20f   : > { %v480_v32 = vpop.xlane.xlu1 %479 }
 0x210   : > { %694 = vrsqrt.f32 %v483_v31  ;;  %v482_v33 = vmul.f32 0.0078125, %v480_v32 }
 0x212   : > { %v484_v34 = vadd.f32 1e-05, %v482_v33 }
 0x214   : > { %696 = vrsqrt.f32 %v484_v34 }
 0x21d   : > { %v695_v35 = vpop.eup %694 }
 0x21e   : > { %v487_v37 = vmul.f32 %v695_v35, %v473_v23 }
 0x220   : > { %v496_v39 = vmul.f32 %v626_v36, %v487_v37 }
 0x221   : > { %v697_v40 = vpop.eup %696 }
 0x222   : > { %v505_v41 = vadd.f32 %v627_v38, %v496_v39  ;;  %v488_v42 = vmul.f32 %v697_v40, %v474_v27 }
 0x224   : > { %507 = vst [vmem:[%s320_s14] sm:$0xff] %v505_v41  ;;  %v497_v43 = vmul.f32 %v626_v36, %v488_v42 }
 0x226   : > { %v506_v44 = vadd.f32 %v627_v38, %v497_v43 }
 0x228   : > { %508 = vst [vmem:[%s320_s14 + $0x8] sm:$0xff] %v506_v44 }
 0x229 PF: > { %s16_s23 = sadd.s32 1, %s720_s23   ;;  %s843_s21 = smov %s716_s22 }
 0x22a   : > { %p13_p5 = scmp.ge.s32.totalorder %s16_s23, 4   ;;  %s844_s22 = smov %s846_s24 }
 0x22c   :  { %15 = sbr.rel (!%p13_p5) target bundleno = 2 (0x2), region = 88 }

// kernel: transformer_decoder.19
= control target key start
LH: loop header
LB: loop body
LE: loop exit
PB: predicated region body
PF: predicated region fallthrough
CT: control target
= control target key end

     0   :  { %s1218_s12 = smov 0   ;;  %s1220_s13 = smov 0   ;;  %s1414_s0 = inlined_call_operand.vmem [shape: bf16[2,16,384], index: 0, kind: input, shape index: {}, may-alias: {0,1,2}]   ;;  %s1415_s1 = inlined_call_operand.vmem [shape: bf16[2,16,384], index: 1, kind: input, shape index: {}, may-alias: {0,1,2}]   ;;  %s1416_s2 = inlined_call_operand.vmem [shape: bf16[2,16,384], index: 2, kind: input, shape index: {}, may-alias: {0,1,2}]   ;;  %s1417_s3 = inlined_call_operand.vmem [shape: bf16[2,16,128], index: 3, kind: output, shape index: {}]  }
   0x1   :  { %s1222_s14 = smov 0   ;;  %s1224_s15 = smov 0  }
   0x2   :  { %s1226_s16 = smov 0  }
   0x3 LB: > { %s32_s17 = sadd.s32 1, %s1187_s15  ;;  %p48_p1 = scmp.ne.s32.totalorder %s1179_s13, %s1175_s12  ;;  %s1191_s16 = sphi %s1226_s16, %s13_s16   ;;  %s1187_s15 = sphi %s1224_s15, %s1422_s15   ;;  %s1183_s14 = sphi %s1222_s14, %s1421_s14   ;;  %s1179_s13 = sphi %s1220_s13, %s1420_s13   ;;  %s1175_s12 = sphi %s1218_s12, %s1419_s12  }
   0x4   : > { %p34_p0 = scmp.ge.s32.totalorder %s32_s17, 2  ;;  %p49_p2 = scmp.eq.s32.totalorder %s1191_s16, 0 }
   0x5   : > { %s41_s20 = sadd.s32 1, %s1179_s13  ;;  %p1005_p5 = scmp.ge.s32.totalorder %s1191_s16, 2 }
   0x6   : > { %s1424_s17 = smov (%p34_p0, %s32_s17), 0  ;;  %p1249_p3 = por %p49_p2, %p48_p1 }
   0x7   : > { %s36_s19 = ssub.s32 %s1187_s15, %s1424_s17  ;;  %158 = sbr.rel (%p1005_p5) target bundleno = 30 (0x1e), region = 16 }
   0x8   : > { %p39_p4 = scmp.eq.s32.totalorder %s36_s19, 0 }
   0xa   : > { %s1257_s21 = scalar_select %p39_p4, %s1179_s13, %s41_s20  }
   0xc   : > { %161 = sbr.rel (!%p1249_p3) target bundleno = 18 (0x12), region = 20  ;;  %s163_s22 = sand.u32 (%p1249_p3), 1, %s1179_s13  }
   0xd   : > { %s1075_s23 = smul.u32 (%p1249_p3), 24, %s1187_s15  ;;  %s1006_s24 = sshll.u32 (%p1249_p3), %s163_s22, 3 }
   0xe   : > { %s165_s28 = scalar_lea.vmem (%p1249_p3), [#allocation5], %s1006_s24 }
   0xf   : > { %s171_s27 = scalar_lea.vmem (%p1249_p3), %s1414_s0, %s1075_s23 }
  0x10   : > { %v188_v0 = vld [vmem:[%s171_s27] sm:$0xf] (%p1249_p3)  ;;  %v190_v1 = vld [vmem:[%s171_s27 + $0xc] sm:$0xf] (%p1249_p3) }
  0x11   : > { %189 = vst [vmem:[%s165_s28] sm:$0xf] %v188_v0  ;;  %191 = vst [vmem:[%s165_s28 + $0x4] sm:$0xf] %v190_v1 }
  0x12 PF: > { %219 = sbr.rel (!%p1249_p3) target bundleno = 24 (0x18), region = 61  ;;  %s221_s29 = sand.u32 (%p1249_p3), 1, %s1179_s13  }
  0x13   : > { %s1009_s30 = smul.u32 (%p1249_p3), 24, %s1187_s15  ;;  %s1008_s4 = sshll.u32 (%p1249_p3), %s221_s29, 3 }
  0x14   : > { %s223_s8 = scalar_lea.vmem (%p1249_p3), [#allocation6], %s1008_s4 }
  0x15   : > { %s908_s7 = scalar_lea.vmem (%p1249_p3), %s1415_s1, %s1009_s30 }
  0x16   : > { %v1010_v2 = vld [vmem:[%s908_s7 + $0x4] sm:$0xf] (%p1249_p3)  ;;  %v1011_v3 = vld [vmem:[%s908_s7 + $0x10] sm:$0xf] (%p1249_p3) }
  0x17   : > { %248 = vst [vmem:[%s223_s8] sm:$0xf] %v1010_v2  ;;  %250 = vst [vmem:[%s223_s8 + $0x4] sm:$0xf] %v1011_v3 }
  0x18 PF: > { %278 = sbr.rel (!%p1249_p3) target bundleno = 30 (0x1e), region = 102  ;;  %s280_s9 = sand.u32 (%p1249_p3), 1, %s1179_s13  }
  0x19   : > { %s1013_s10 = smul.u32 (%p1249_p3), 24, %s1187_s15  ;;  %s1012_s11 = sshll.u32 (%p1249_p3), %s280_s9, 3 }
  0x1a   : > { %s282_s23 = scalar_lea.vmem (%p1249_p3), [#allocation7], %s1012_s11 }
  0x1b   : > { %s916_s22 = scalar_lea.vmem (%p1249_p3), %s1416_s2, %s1013_s10 }
  0x1c   : > { %v1014_v4 = vld [vmem:[%s916_s22 + $0x8] sm:$0xf] (%p1249_p3)  ;;  %v1015_v5 = vld [vmem:[%s916_s22 + $0x14] sm:$0xf] (%p1249_p3) }
  0x1d   : > { %307 = vst [vmem:[%s282_s23] sm:$0xf] %v1014_v4  ;;  %309 = vst [vmem:[%s282_s23 + $0x4] sm:$0xf] %v1015_v5 }
  0x1e PF: > { %p1016_p6 = scmp.ge.s32.totalorder %s1191_s16, 1  ;;  %p336_p7 = scmp.lt.s32.totalorder %s1191_s16, 3 }
  0x20   : > { %p337_p8 = pnand %p1016_p6, %p336_p7 }
  0x21   : > { %s343_s18 = sand.u32 (!%p337_p8), 1, %s1175_s12   ;;  %s1197_s26 = smov (!%p337_p8), 64  }
  0x22   : > { %340 = sbr.rel (%p337_p8) target bundleno = 1430 (0x596), region = 143  ;;  %s1285_s24 = sshll.u32 (!%p337_p8), %s343_s18, 3 }
  0x23   : > { %s352_s12 = scalar_lea.vmem (!%p337_p8), [#allocation6], %s1285_s24  ;;  %s345_s25 = scalar_lea.vmem (!%p337_p8), [#allocation5], %s1285_s24 }
  0x24   : > { %s359_s27 = scalar_lea.vmem (!%p337_p8), [#allocation7], %s1285_s24  ;;  %p396_p9 = scmp.lt.s32.totalorder (!%p337_p8), %s1183_s14, 1 }
  0x27   : > { %vm419_vm0 = vcmask 523264   ;;  %v1193_v6 = vmov 0.0   ;;  %vm1194_vm1 = vmmov 0   ;;  %v1123_v7 = vld [vmem:[%s352_s12] sm:$0xff]   ;;  %v1124_v9 = vld [vmem:[%s345_s25] sm:$0xff]   ;;  %vm410_vm2 = vcmask 7168  }
  0x28   : > { %1051 = vmatprep.subr.bf16.mxu0 %v1193_v6  ;;  %420 = vst.msk [vmem:[#allocation4] sm:$0xff] %vm419_vm0, %v1193_v6  ;;  %421 = vst.msk [vmem:[#allocation4 + $0x8] sm:$0xff] %vm419_vm0, %v1193_v6  ;;  %1053 = vmatprep.mubr.msk.bf16.mxu0 %vm1194_vm1, %v1193_v6  ;;  %v445_v8 = vsel %vm419_vm0, %v1123_v7, 0  ;;  %v1195_v10 = vmov -inf   ;;  %vm492_vm3 = vcmask 130048   ;;  %v1196_v19 = vmov 0  }
  0x29   : > { %422 = vst.msk [vmem:[#allocation4 + $0x10] sm:$0xff] %vm419_vm0, %v1193_v6  ;;  %423 = vst.msk [vmem:[#allocation4 + $0x18] sm:$0xff] %vm419_vm0, %v1193_v6  ;;  %1057 = vmatprep.subr.bf16.mxu1 %v1193_v6  ;;  %1059 = vmatprep.mubr.msk.bf16.mxu1 %vm1194_vm1, %v1193_v6  ;;  %v1125_v20 = vld [vmem:[%s352_s12] sm:$0xff]   ;;  %v1126_v29 = vld [vmem:[%s345_s25] sm:$0xff]   ;;  %s1426_s14 = smov (!%p396_p9, %s1183_s14), 1  ;;  %vm829_vm4 = vcmask 519168  }
  0x2a   : > { %1052 = vmatpush3.bf16.xpose.msra.mxu0 %v445_v8  ;;  %411 = vst.msk [vmem:[#allocation2] sm:$0xff] %vm410_vm2, %v1195_v10  ;;  %412 = vst.msk [vmem:[#allocation2 + $0x8] sm:$0xff] %vm410_vm2, %v1195_v10  ;;  %1121 = vset.pattern.permute.xlu1 %v1196_v19  ;;  %v1127_v30 = vld [vmem:[%s359_s27] sm:$0xff]   ;;  %s1038_s28 = sshll.u32 %s1426_s14, 3  ;;  %vm862_vm5 = vcmask 1043968  }
  0x2b   : > { %1069 = vmatprep.subr.bf16.mxu0 %v1193_v6  ;;  %413 = vst.msk [vmem:[#allocation2 + $0x10] sm:$0xff] %vm410_vm2, %v1195_v10  ;;  %414 = vst.msk [vmem:[#allocation2 + $0x18] sm:$0xff] %vm410_vm2, %v1195_v10  ;;  %1122 = vset.pattern.permute.xlu0 %v1196_v19  ;;  %v1128_v60 = vld [vmem:[%s359_s27] sm:$0xff]   ;;  %s403_s4 = scalar_lea.vmem %s1417_s3, %s1038_s28 }
  0x2c   : > { %415 = vst.msk [vmem:[#allocation3] sm:$0xff] %vm410_vm2, %v1193_v6  ;;  %416 = vst.msk [vmem:[#allocation3 + $0x8] sm:$0xff] %vm410_vm2, %v1193_v6  ;;  %1058 = vmatpush3.bf16.msra.mxu1 %v1127_v30 }
  0x2d   : > { %417 = vst.msk [vmem:[#allocation3 + $0x10] sm:$0xff] %vm410_vm2, %v1193_v6  ;;  %418 = vst.msk [vmem:[#allocation3 + $0x18] sm:$0xff] %vm410_vm2, %v1193_v6  ;;  %1063 = vmatprep.subr.bf16.mxu1 %v1193_v6 }
  0x31   : > { %1054 = vmatmul.mubr.msk.bf16.vlgmr.msra.gmra.mxu0 %vm419_vm0, %v1124_v9  ;;  %v1328_v21 = vld [vmem:[#allocation2] sm:$0xff]  ;;  %v1333_v24 = vld [vmem:[#allocation2 + $0x8] sm:$0xff] }
  0x32   : > { %1071 = vmatprep.mubr.msk.bf16.mxu0 %vm1194_vm1, %v1193_v6  ;;  %v679_v55 = vld [vmem:[#allocation2 + $0x10] sm:$0xff]  ;;  %v680_v58 = vld [vmem:[#allocation2 + $0x18] sm:$0xff] }
  0x33   : > { %v523_v30 = vld [vmem:[#allocation3] sm:$0xff] }
  0xf1   : > { %v481_v11 = vpop.f32.mrf.mxu0 }
  0xf2   : > { %v488_v12 = vmul.f32 0.125, %v481_v11 }
  0xf3   : > { %v1055_v13 = vpop.f32.mrf.mxu0 }
  0xf4   : > { %v493_v14 = vsel %vm492_vm3, %v488_v12, -inf }
  0xf5   : > { %494 = vmax.xlane.f32.xlu0 %v493_v14  ;;  %v484_v15 = vpop.f32.mrf.mxu0 }
  0xf6   : > { %v489_v16 = vmul.f32 0.125, %v484_v15 }
  0xf7   : > { %v1056_v17 = vpop.f32.mrf.mxu0 }
  0xf8   : > { %v496_v18 = vsel %vm492_vm3, %v489_v16, -inf }
  0xf9   : > { %497 = vmax.xlane.f32.xlu0 %v496_v18 }
 0x10f   : > { %627 = vrot.lane.b32.xlu0 %v1125_v20, %s1197_s26  ;;  %v712_v20 = vld [vmem:[#allocation3 + $0x10] sm:$0xff] }
 0x17e   : > { %v495_v22 = vpop.xlane.xlu0 %494 }
 0x17f   : > { %v1331_v23 = vmax.f32 %v1328_v21, %v495_v22 }
 0x181   : > { %v501_v25 = vsub.f32 %v1328_v21, %v1331_v23  ;;  %607 = vst.msk [vmem:[#allocation2] sm:$0xff] %vm410_vm2, %v1331_v23  ;;  %509 = vperm.xlu1 %1121, %v1331_v23  }
 0x182   : > { %v498_v26 = vpop.xlane.xlu0 %497 }
 0x183   : > { %v1341_v27 = vmax.f32 %v1333_v24, %v498_v26  ;;  %v503_v18 = vmul.f32 1.442695, %v501_v25  ;;  %v524_v25 = vld [vmem:[#allocation3 + $0x8] sm:$0xff] }
 0x185   : > { %v502_v28 = vsub.f32 %v1333_v24, %v1341_v27  ;;  %608 = vst.msk [vmem:[#allocation2 + $0x8] sm:$0xff] %vm410_vm2, %v1341_v27  ;;  %514 = vperm.xlu1 %1121, %v1341_v27  }
 0x186   : > { %v628_v37 = vpop.permute.xlu0 %627 }
 0x187   : > { %v633_v40 = vsel %vm419_vm0, %v628_v37, 0  ;;  %v505_v19 = vmul.f32 1.442695, %v502_v28 }
 0x189   : > { %620 = vrot.lane.b32.xlu1 %v1126_v29, %s1197_s26 }
 0x1fc   : > { %v510_v31 = vpop.permute.xlu1 %509 }
 0x1fd   : > { %v517_v32 = vsub.f32 %v488_v12, %v510_v31  ;;  %v713_v31 = vld [vmem:[#allocation3 + $0x18] sm:$0xff] }
 0x1ff   : > { %v519_v33 = vmul.f32 1.442695, %v517_v32 }
 0x200   : > { %v515_v34 = vpop.permute.xlu1 %514 }
 0x201   : > { %v518_v35 = vsub.f32 %v489_v16, %v515_v34  ;;  %1129 = vpow2.f32 %v519_v33 }
 0x203   : > { %v521_v36 = vmul.f32 1.442695, %v518_v35 }
 0x204   : > { %v621_v42 = vpop.permute.xlu1 %620 }
 0x205   : > { %1131 = vpow2.f32 %v521_v36 }
 0x20e   : > { %v1130_v38 = vpop.eup %1129 }
 0x20f   : > { %v527_v10 = vsel %vm492_vm3, %v1130_v38, 0.0 }
 0x212   : > { %v1132_v39 = vpop.eup %1131 }
 0x213   : > { %v552_v41 = vpack.c.bf16 %v1132_v39, %v1130_v38  ;;  %v530_v14 = vsel %vm492_vm3, %v1132_v39, 0.0 }
 0x215   : > { %1060 = vmatmul.mubr.msk.bf16.vlgmr.msra.gmra.mxu1 %vm492_vm3, %v552_v41 }
 0x216   : > { %1064 = vmatpush3.bf16.xpose.msra.mxu1 %v633_v40  ;;  %1065 = vmatprep.mubr.msk.bf16.mxu1 %vm1194_vm1, %v1193_v6 }
 0x21d   : > { %1066 = vmatmul.mubr.msk.bf16.vlgmr.msra.gmra.mxu1 %vm419_vm0, %v621_v42 }
 0x2d5   : > { %v1360_v43 = vpop.f32.mrf.mxu1 }
 0x2d7   : > { %v1061_v44 = vpop.f32.mrf.mxu1 }
 0x2d9   : > { %v1362_v45 = vpop.f32.mrf.mxu1 }
 0x2db   : > { %v1062_v46 = vpop.f32.mrf.mxu1 }
 0x2dd   : > { %v669_v47 = vpop.f32.mrf.mxu1 }
 0x2de   : > { %v676_v48 = vmul.f32 0.125, %v669_v47 }
 0x2df   : > { %v1067_v49 = vpop.f32.mrf.mxu1 }
 0x2e0   : > { %v681_v50 = vsel %vm492_vm3, %v676_v48, -inf  ;;  %v727_v49 = vld [vmem:[#allocation4 + $0x10] sm:$0xff] }
 0x2e1   : > { %682 = vmax.xlane.f32.xlu1 %v681_v50  ;;  %v672_v51 = vpop.f32.mrf.mxu1 }
 0x2e2   : > { %v677_v52 = vmul.f32 0.125, %v672_v51  ;;  %v728_v51 = vld [vmem:[#allocation4 + $0x18] sm:$0xff] }
 0x2e3   : > { %v1068_v53 = vpop.f32.mrf.mxu1 }
 0x2e4   : > { %v684_v54 = vsel %vm492_vm3, %v677_v52, -inf }
 0x2e5   : > { %685 = vmax.xlane.f32.xlu0 %v684_v54 }
 0x36a   : > { %v683_v56 = vpop.xlane.xlu1 %682 }
 0x36b   : > { %v687_v57 = vmax.f32 %v679_v55, %v683_v56 }
 0x36d   : > { %v689_v59 = vsub.f32 %v679_v55, %v687_v57  ;;  %798 = vst.msk [vmem:[#allocation2 + $0x10] sm:$0xff] %vm410_vm2, %v687_v57  ;;  %697 = vperm.xlu1 %1121, %v687_v57  }
 0x36e   : > { %v686_v61 = vpop.xlane.xlu0 %685 }
 0x36f   : > { %v688_v62 = vmax.f32 %v680_v58, %v686_v61  ;;  %v691_v13 = vmul.f32 1.442695, %v689_v59 }
 0x371   : > { %v690_v63 = vsub.f32 %v680_v58, %v688_v62  ;;  %799 = vst.msk [vmem:[#allocation2 + $0x18] sm:$0xff] %vm410_vm2, %v688_v62  ;;  %702 = vperm.xlu0 %1122, %v688_v62   ;;  %747 = vrot.lane.b32.xlu1 %v1128_v60, %s1197_s26 }
 0x373   : > { %v693_v15 = vmul.f32 1.442695, %v690_v63  ;;  %v538_v63 = vld [vmem:[#allocation4] sm:$0xff] }
 0x3e8   : > { %v698_v0 = vpop.permute.xlu1 %697 }
 0x3e9   : > { %v705_v1 = vsub.f32 %v676_v48, %v698_v0 }
 0x3eb   : > { %v707_v2 = vmul.f32 1.442695, %v705_v1 }
 0x3ec   : > { %v703_v3 = vpop.permute.xlu0 %702  ;;  %v748_v4 = vpop.permute.xlu1 %747 }
 0x3ed   : > { %1133 = vpow2.f32 %v707_v2  ;;  %v706_v5 = vsub.f32 %v677_v52, %v703_v3  ;;  %1070 = vmatpush3.bf16.msra.mxu0 %v748_v4 }
 0x3ef   : > { %v709_v6 = vmul.f32 1.442695, %v706_v5 }
 0x3f1   : > { %1135 = vpow2.f32 %v709_v6  ;;  %v539_v6 = vld [vmem:[#allocation4 + $0x8] sm:$0xff] }
 0x3f2   : > { %1137 = vpow2.f32 %v691_v13 }
 0x3f3   : > { %1139 = vpow2.f32 %v693_v15 }
 0x3f4   : > { %1141 = vpow2.f32 %v503_v18 }
 0x3f5   : > { %1143 = vpow2.f32 %v505_v19 }
 0x3fa   : > { %v1134_v7 = vpop.eup %1133 }
 0x3fb   : > { %v716_v8 = vsel %vm492_vm3, %v1134_v7, 0.0 }
 0x3fc   : > { %717 = vadd.xlane.f32.xlu1 %v716_v8 }
 0x3fe   : > { %v1136_v9 = vpop.eup %1135 }
 0x3ff   : > { %v719_v11 = vsel %vm492_vm3, %v1136_v9, 0.0  ;;  %v741_v12 = vpack.c.bf16 %v1136_v9, %v1134_v7  ;;  %v1138_v16 = vpop.eup %1137 }
 0x400   : > { %528 = vadd.xlane.f32.xlu1 %v527_v10  ;;  %720 = vadd.xlane.f32.xlu0 %v719_v11  ;;  %v1140_v17 = vpop.eup %1139  ;;  %v714_v22 = vmul.f32 %v1138_v16, %v712_v20 }
 0x401   : > { %1072 = vmatmul.mubr.msk.bf16.vlgmr.msra.gmra.mxu0 %vm492_vm3, %v741_v12  ;;  %v1142_v26 = vpop.eup %1141  ;;  %v715_v34 = vmul.f32 %v1140_v17, %v713_v31 }
 0x402   : > { %v525_v33 = vmul.f32 %v1142_v26, %v523_v30  ;;  %v1144_v35 = vpop.eup %1143 }
 0x403   : > { %v526_v24 = vmul.f32 %v1144_v35, %v524_v25 }
 0x404   : > { %531 = vadd.xlane.f32.xlu1 %v530_v14 }
 0x415   : > { %731 = vperm.xlu1 %1121, %v1138_v16  }
 0x419   : > { %736 = vperm.xlu1 %1121, %v1140_v17  }
 0x485   : > { %v718_v29 = vpop.xlane.xlu1 %717 }
 0x486   : > { %v722_v32 = vadd.f32 %v718_v29, %v714_v22 }
 0x488   : > { %724 = vst.msk [vmem:[#allocation3 + $0x10] sm:$0xff] %vm410_vm2, %v722_v32 }
 0x489   : > { %v529_v21 = vpop.xlane.xlu1 %528  ;;  %v721_v23 = vpop.xlane.xlu0 %720 }
 0x48a   : > { %v533_v36 = vadd.f32 %v529_v21, %v525_v33  ;;  %v723_v37 = vadd.f32 %v721_v23, %v715_v34 }
 0x48c   : > { %536 = vst.msk [vmem:[#allocation3] sm:$0xff] %vm410_vm2, %v533_v36  ;;  %725 = vst.msk [vmem:[#allocation3 + $0x18] sm:$0xff] %vm410_vm2, %v723_v37 }
 0x48d   : > { %v532_v27 = vpop.xlane.xlu1 %531 }
 0x48e   : > { %v534_v28 = vadd.f32 %v532_v27, %v526_v24 }
 0x48f   : > { %v832_v38 = vld [vmem:[#allocation3 + $0x10] sm:$0xff] }
 0x490   : > { %537 = vst.msk [vmem:[#allocation3 + $0x8] sm:$0xff] %vm410_vm2, %v534_v28  ;;  %1145 = vrcp.f32 %v832_v38 }
 0x491   : > { %v732_v48 = vpop.permute.xlu1 %731 }
 0x492   : > { %v739_v50 = vmul.f32 %v732_v48, %v727_v49 }
 0x493   : > { %v833_v39 = vld [vmem:[#allocation3 + $0x18] sm:$0xff]  ;;  %v803_v40 = vld [vmem:[#allocation3] sm:$0xff] }
 0x494   : > { %1147 = vrcp.f32 %v833_v39 }
 0x495   : > { %1149 = vrcp.f32 %v803_v40  ;;  %v737_v52 = vpop.permute.xlu1 %736 }
 0x496   : > { %v740_v56 = vmul.f32 %v737_v52, %v728_v51 }
 0x497   : > { %v804_v42 = vld [vmem:[#allocation3 + $0x8] sm:$0xff] }
 0x498   : > { %1151 = vrcp.f32 %v804_v42 }
 0x49d   : > { %v1146_v41 = vpop.eup %1145 }
 0x49e   : > { %840 = vperm.xlu1 %1121, %v1146_v41  }
 0x4a1   : > { %v1148_v44 = vpop.eup %1147 }
 0x4a2   : > { %542 = vperm.xlu1 %1121, %v1142_v26   ;;  %845 = vperm.xlu0 %1122, %v1148_v44   ;;  %v1150_v46 = vpop.eup %1149 }
 0x4a5   : > { %v1152_v47 = vpop.eup %1151 }
 0x4a6   : > { %547 = vperm.xlu1 %1121, %v1144_v35  }
 0x4aa   : > { %811 = vperm.xlu1 %1121, %v1150_v46  }
 0x4ae   : > { %816 = vperm.xlu1 %1121, %v1152_v47  }
 0x4c1   : > { %v787_v53 = vpop.f32.mrf.mxu0 }
 0x4c2   : > { %v794_v54 = vadd.f32 %v787_v53, %v739_v50 }
 0x4c3   : > { %v1073_v55 = vpop.f32.mrf.mxu0 }
 0x4c4   : > { %796 = vst.msk [vmem:[#allocation4 + $0x10] sm:$0xff] %vm419_vm0, %v794_v54 }
 0x4c5   : > { %v790_v57 = vpop.f32.mrf.mxu0 }
 0x4c6   : > { %v795_v58 = vadd.f32 %v790_v57, %v740_v56 }
 0x4c7   : > { %v1074_v59 = vpop.f32.mrf.mxu0 }
 0x4c8   : > { %797 = vst.msk [vmem:[#allocation4 + $0x18] sm:$0xff] %vm419_vm0, %v795_v58 }
 0x4cb   : > { %v836_v61 = vld [vmem:[#allocation4 + $0x10] sm:$0xff] }
 0x4cf   : > { %v837_v3 = vld [vmem:[#allocation4 + $0x18] sm:$0xff] }
 0x519   : > { %v841_v60 = vpop.permute.xlu1 %840 }
 0x51a   : > { %v848_v62 = vmul.f32 %v841_v60, %v836_v61 }
 0x51c   : > { %v1041_v0 = vpack.c.bf16 %v848_v62, %v848_v62 }
 0x51d   : > { %v543_v1 = vpop.permute.xlu1 %542  ;;  %v846_v2 = vpop.permute.xlu0 %845 }
 0x51e   : > { %v550_v4 = vmul.f32 %v543_v1, %v538_v63  ;;  %v849_v5 = vmul.f32 %v846_v2, %v837_v3  ;;  %856 = vrot.lane.b32.xlu1 %v1041_v0, %s1197_s26 }
 0x520   : > { %v603_v7 = vadd.f32 %v1360_v43, %v550_v4  ;;  %v1042_v8 = vpack.c.bf16 %v849_v5, %v849_v5 }
 0x521   : > { %v548_v9 = vpop.permute.xlu1 %547 }
 0x522   : > { %605 = vst.msk [vmem:[#allocation4] sm:$0xff] %vm419_vm0, %v603_v7  ;;  %v551_v10 = vmul.f32 %v548_v9, %v539_v6  ;;  %858 = vrot.lane.b32.xlu0 %v1042_v8, %s1197_s26 }
 0x524   : > { %v604_v11 = vadd.f32 %v1362_v45, %v551_v10 }
 0x525   : > { %v812_v12 = vpop.permute.xlu1 %811 }
 0x526   : > { %606 = vst.msk [vmem:[#allocation4 + $0x8] sm:$0xff] %vm419_vm0, %v604_v11 }
 0x529   : > { %v807_v13 = vld [vmem:[#allocation4] sm:$0xff]  ;;  %v817_v16 = vpop.permute.xlu1 %816 }
 0x52a   : > { %v819_v14 = vmul.f32 %v812_v12, %v807_v13 }
 0x52c   : > { %v1039_v43 = vpack.c.bf16 %v819_v14, %v819_v14 }
 0x52d   : > { %v808_v15 = vld [vmem:[#allocation4 + $0x8] sm:$0xff] }
 0x52e   : > { %830 = vst.msk [vmem:[%s403_s4] sm:$0xf] %vm829_vm4, %v1039_v43  ;;  %v820_v17 = vmul.f32 %v817_v16, %v808_v15 }
 0x530   : > { %v1040_v18 = vpack.c.bf16 %v820_v17, %v820_v17 }
 0x532   : > { %831 = vst.msk [vmem:[%s403_s4 + $0x4] sm:$0xf] %vm829_vm4, %v1040_v18 }
 0x590   : > { %v857_v45 = vpop.permute.xlu1 %856 }
 0x591   : > { %863 = vst.msk [vmem:[%s403_s4] sm:$0xf] %vm862_vm5, %v857_v45 }
 0x594   : > { %v859_v19 = vpop.permute.xlu0 %858 }
 0x595   : > { %864 = vst.msk [vmem:[%s403_s4 + $0x4] sm:$0xf] %vm862_vm5, %v859_v19 }
 0x596 PF: > { %s13_s16 = sadd.s32 1, %s1191_s16   ;;  %s1419_s12 = smov %s1179_s13 }
 0x597   : > { %p10_p10 = scmp.ge.s32.totalorder %s13_s16, 4   ;;  %s1420_s13 = smov %s1257_s21 }
 0x598   : > { %s1421_s14 = smov %s1187_s15  ;;  %s1422_s15 = smov %s1424_s17 }
 0x599   :  { %12 = sbr.rel (!%p10_p10) target bundleno = 3 (0x3), region = 217 }

// kernel: transformer_decoder.21
= control target key start
LH: loop header
LB: loop body
LE: loop exit
PB: predicated region body
PF: predicated region fallthrough
CT: control target
= control target key end

     0   :  { %s655_s12 = smov 0   ;;  %s657_s13 = smov 0   ;;  %s718_s0 = inlined_call_operand.vmem [shape: f32[32,128], index: 0, kind: input, shape index: {}]   ;;  %s719_s1 = inlined_call_operand.vmem [shape: bf16[128,128], index: 1, kind: input, shape index: {}]   ;;  %s720_s2 = inlined_call_operand.vmem [shape: f32[1,128], index: 2, kind: input, shape index: {}]   ;;  %s721_s3 = inlined_call_operand.vmem [shape: bf16[32,128], index: 3, kind: output, shape index: {}]  }
   0x1   :  { %s659_s14 = smov 0  }
   0x2 LB: > { %s32_s15 = sadd.s32 1, %s627_s13  ;;  %p521_p0 = scmp.ge.s32.totalorder %s631_s14, 1  ;;  %s631_s14 = sphi %s659_s14, %s13_s14   ;;  %s627_s13 = sphi %s657_s13, %s723_s13   ;;  %s623_s12 = sphi %s655_s12, %s722_s12  }
   0x3   : > { %p34_p1 = scmp.ge.s32.totalorder %s32_s15, 2  ;;  %p188_p2 = scmp.lt.s32.totalorder %s631_s14, 3 }
   0x5   : > { %s725_s15 = smov (%p34_p1, %s32_s15), 0  ;;  %p189_p3 = pnand %p521_p0, %p188_p2 }
   0x6   : > { %s522_s22 = sshll.u32 (!%p189_p3), %s623_s12, 1 }
   0x7   : > { %192 = sbr.rel (%p189_p3) target bundleno = 247 (0xf7), region = 32  ;;  %p230_p4 = scmp.lt.s32.totalorder (!%p189_p3), %s522_s22, 3 }
   0xc   : > { %v601_v0 = vld [vmem:[%s719_s1 + $0x38] sm:$0xff]   ;;  %v633_v1 = vmov 0.0   ;;  %v602_v2 = vld [vmem:[%s719_s1 + $0x30] sm:$0xff]   ;;  %vm634_vm0 = vmmov 0   ;;  %v603_v3 = vld [vmem:[%s719_s1 + $0x28] sm:$0xff]   ;;  %s727_s22 = smov (!%p230_p4, %s522_s22), 3 }
   0xd   : > { %555 = vmatprep.subr.bf16.mxu0 %v633_v1  ;;  %571 = vmatprep.mubr.msk.bf16.mxu0 %vm634_vm0, %v633_v1  ;;  %v604_v4 = vld [vmem:[%s719_s1 + $0x20] sm:$0xff]   ;;  %v605_v5 = vld [vmem:[%s719_s1 + $0x18] sm:$0xff]   ;;  %v606_v6 = vld [vmem:[%s719_s1 + $0x10] sm:$0xff]   ;;  %s523_s29 = sshll.u32 %s727_s22, 3  ;;  %s525_s12 = sshll.u32 %s727_s22, 2 }
   0xe   : > { %556 = vmatpush3.bf16.msra.mxu0 %v601_v0  ;;  %v607_v7 = vld [vmem:[%s719_s1 + $0x8] sm:$0xff]   ;;  %s236_s7 = scalar_lea.vmem %s718_s0, %s523_s29  ;;  %v608_v8 = vld [vmem:[%s719_s1] sm:$0xff]   ;;  %s257_s18 = scalar_lea.vmem %s721_s3, %s525_s12 }
   0xf   : > { %557 = vmatprep.subr.bf16.mxu0 %v633_v1  ;;  %v268_v9 = vld [vmem:[%s236_s7] sm:$0xff]  ;;  %v269_v10 = vld [vmem:[%s236_s7 + $0x8] sm:$0xff] }
  0x10   : > { %v270_v11 = vpack.c.bf16 %v269_v10, %v268_v9  ;;  %v534_v13 = vld [vmem:[%s720_s2] ss:$0 sm:$0xff] }
  0x12   : > { %558 = vmatpush3.bf16.msra.mxu0 %v602_v2 }
  0x13   : > { %559 = vmatprep.subr.bf16.mxu0 %v633_v1 }
  0x16   : > { %560 = vmatpush3.bf16.msra.mxu0 %v603_v3 }
  0x17   : > { %561 = vmatprep.subr.bf16.mxu0 %v633_v1 }
  0x1a   : > { %562 = vmatpush3.bf16.msra.mxu0 %v604_v4 }
  0x1b   : > { %563 = vmatprep.subr.bf16.mxu0 %v633_v1 }
  0x1e   : > { %564 = vmatpush3.bf16.msra.mxu0 %v605_v5 }
  0x1f   : > { %565 = vmatprep.subr.bf16.mxu0 %v633_v1 }
  0x22   : > { %566 = vmatpush3.bf16.msra.mxu0 %v606_v6 }
  0x23   : > { %567 = vmatprep.subr.bf16.mxu0 %v633_v1 }
  0x26   : > { %568 = vmatpush3.bf16.msra.mxu0 %v607_v7 }
  0x27   : > { %569 = vmatprep.subr.bf16.mxu0 %v633_v1 }
  0x2a   : > { %570 = vmatpush3.bf16.msra.mxu0 %v608_v8 }
  0x2d   : > { %572 = vmatmul.mubr.bf16.vlgmr.msra.gmra.mxu0 %v270_v11 }
  0xed   : > { %v369_v12 = vpop.f32.mrf.mxu0 }
  0xee   : > { %v392_v16 = vadd.f32 %v534_v13, %v369_v12 }
  0xef   : > { %v573_v14 = vpop.f32.mrf.mxu0 }
  0xf1   : > { %v372_v15 = vpop.f32.mrf.mxu0 }
  0xf2   : > { %v393_v17 = vadd.f32 %v534_v13, %v372_v15 }
  0xf3   : > { %v574_v18 = vpop.f32.mrf.mxu0 }
  0xf4   : > { %v544_v19 = vpack.c.bf16 %v393_v17, %v392_v16 }
  0xf6   : > { %545 = vst [vmem:[%s257_s18] sm:$0xff] %v544_v19  }
  0xf7 PF: > { %s13_s14 = sadd.s32 1, %s631_s14   ;;  %s722_s12 = smov %s627_s13 }
  0xf8   : > { %p10_p5 = scmp.ge.s32.totalorder %s13_s14, 4   ;;  %s723_s13 = smov %s725_s15 }
  0xfa   :  { %12 = sbr.rel (!%p10_p5) target bundleno = 2 (0x2), region = 76 }

// kernel: transformer_decoder.22
= control target key start
LH: loop header
LB: loop body
LE: loop exit
PB: predicated region body
PF: predicated region fallthrough
CT: control target
= control target key end

     0   :  { %s729_s12 = smov 0   ;;  %s731_s13 = smov 0   ;;  %s819_s0 = inlined_call_operand.vmem [shape: f32[32,128], index: 0, kind: input, shape index: {}]   ;;  %s820_s1 = inlined_call_operand.vmem [shape: bf16[128,256], index: 1, kind: input, shape index: {}]   ;;  %s821_s2 = inlined_call_operand.vmem [shape: f32[1,256], index: 2, kind: input, shape index: {}]   ;;  %s822_s3 = inlined_call_operand.vmem [shape: bf16[32,256], index: 3, kind: output, shape index: {}]  }
   0x1   :  { %s733_s14 = smov 0  }
   0x2 LB: > { %s32_s15 = sadd.s32 1, %s702_s13  ;;  %p606_p0 = scmp.ge.s32.totalorder %s706_s14, 1  ;;  %s706_s14 = sphi %s733_s14, %s13_s14   ;;  %s702_s13 = sphi %s731_s13, %s824_s13   ;;  %s698_s12 = sphi %s729_s12, %s823_s12  }
   0x3   : > { %p34_p1 = scmp.ge.s32.totalorder %s32_s15, 2  ;;  %p193_p2 = scmp.lt.s32.totalorder %s706_s14, 3 }
   0x5   : > { %s826_s15 = smov (%p34_p1, %s32_s15), 0  ;;  %p194_p3 = pnand %p606_p0, %p193_p2 }
   0x6   : > { %s607_s30 = sshll.u32 (!%p194_p3), %s698_s12, 1 }
   0x7   : > { %197 = sbr.rel (%p194_p3) target bundleno = 249 (0xf9), region = 32  ;;  %p240_p4 = scmp.lt.s32.totalorder (!%p194_p3), %s607_s30, 3 }
   0xc   : > { %v660_v0 = vld [vmem:[%s820_s1 + $0x74] ss:$8 sps:$4 sm:$0xff]   ;;  %v662_v1 = vld [vmem:[%s820_s1 + $0x70] ss:$8 sps:$4 sm:$0xff]   ;;  %v708_v2 = vmov 0   ;;  %s828_s30 = smov (!%p240_p4, %s607_s30), 3  ;;  %v449_v20 = vlaneseq }
   0xd   : > { %421 = vmatprep.mubr.bf16.mxu0 %v708_v2  ;;  %389 = vmatprep.subr.bf16.mxu0 %v660_v0  ;;  %v663_v3 = vld [vmem:[%s820_s1 + $0x64] ss:$8 sps:$4 sm:$0xff]   ;;  %v665_v4 = vld [vmem:[%s820_s1 + $0x60] ss:$8 sps:$4 sm:$0xff]   ;;  %v666_v5 = vld [vmem:[%s820_s1 + $0x54] ss:$8 sps:$4 sm:$0xff]  }
   0xe   : > { %390 = vmatpush1.bf16.msra.mxu0 %v662_v1  ;;  %v668_v6 = vld [vmem:[%s820_s1 + $0x50] ss:$8 sps:$4 sm:$0xff]   ;;  %v669_v7 = vld [vmem:[%s820_s1 + $0x44] ss:$8 sps:$4 sm:$0xff]   ;;  %v671_v8 = vld [vmem:[%s820_s1 + $0x40] ss:$8 sps:$4 sm:$0xff]  }
   0xf   : > { %391 = vmatprep.subr.bf16.mxu0 %v663_v3  ;;  %v672_v9 = vld [vmem:[%s820_s1 + $0x34] ss:$8 sps:$4 sm:$0xff]   ;;  %v674_v10 = vld [vmem:[%s820_s1 + $0x30] ss:$8 sps:$4 sm:$0xff]   ;;  %v675_v11 = vld [vmem:[%s820_s1 + $0x24] ss:$8 sps:$4 sm:$0xff]  }
  0x10   : > { %v677_v12 = vld [vmem:[%s820_s1 + $0x20] ss:$8 sps:$4 sm:$0xff]   ;;  %v678_v13 = vld [vmem:[%s820_s1 + $0x14] ss:$8 sps:$4 sm:$0xff]   ;;  %s608_s19 = sshll.u32 %s828_s30, 3  ;;  %v450_v21 = vshrl.u32 %v449_v20, 7 }
  0x11   : > { %v680_v14 = vld [vmem:[%s820_s1 + $0x10] ss:$8 sps:$4 sm:$0xff]   ;;  %v681_v15 = vld [vmem:[%s820_s1 + $0x4] ss:$8 sps:$4 sm:$0xff]   ;;  %s246_s26 = scalar_lea.vmem %s819_s0, %s608_s19  ;;  %v683_v16 = vld [vmem:[%s820_s1] ss:$8 sps:$4 sm:$0xff]   ;;  %s274_s6 = scalar_lea.vmem %s822_s3, %s608_s19 }
  0x12   : > { %392 = vmatpush1.bf16.msra.mxu0 %v665_v4  ;;  %v290_v17 = vld [vmem:[%s246_s26] sm:$0xff]  ;;  %v291_v18 = vld [vmem:[%s246_s26 + $0x8] sm:$0xff]  ;;  %v451_v22 = vsub.s32 0, %v450_v21  ;;  %v455_v23 = vsub.s32 1, %v450_v21 }
  0x13   : > { %393 = vmatprep.subr.bf16.mxu0 %v666_v5  ;;  %v292_v19 = vpack.c.bf16 %v291_v18, %v290_v17  ;;  %v447_v24 = vld [vmem:[%s821_s2] sm:$0x3] }
  0x14   : > { %v452_v25 = vrot.slane %v447_v24, %v451_v22  ;;  %v456_v26 = vrot.slane %v447_v24, %v455_v23 }
  0x16   : > { %394 = vmatpush1.bf16.msra.mxu0 %v668_v6 }
  0x17   : > { %395 = vmatprep.subr.bf16.mxu0 %v669_v7 }
  0x1a   : > { %396 = vmatpush1.bf16.msra.mxu0 %v671_v8 }
  0x1b   : > { %397 = vmatprep.subr.bf16.mxu0 %v672_v9 }
  0x1e   : > { %398 = vmatpush1.bf16.msra.mxu0 %v674_v10 }
  0x1f   : > { %399 = vmatprep.subr.bf16.mxu0 %v675_v11 }
  0x22   : > { %400 = vmatpush1.bf16.msra.mxu0 %v677_v12 }
  0x23   : > { %401 = vmatprep.subr.bf16.mxu0 %v678_v13 }
  0x26   : > { %402 = vmatpush1.bf16.msra.mxu0 %v680_v14 }
  0x27   : > { %403 = vmatprep.subr.bf16.mxu0 %v681_v15 }
  0x2a   : > { %404 = vmatpush1.bf16.msra.mxu0 %v683_v16 }
  0x2d   : > { %422 = vmatmul.mubr.bf16.vlgmr.msra.gmra.mxu0 %v292_v19 }
  0xed   : > { %v423_v27 = vpop.f32.mrf.mxu0 }
  0xee   : > { %v459_v29 = vadd.f32 %v452_v25, %v423_v27 }
  0xef   : > { %v425_v28 = vpop.f32.mrf.mxu0 }
  0xf0   : > { %v460_v30 = vadd.f32 %v456_v26, %v425_v28 }
  0xf1   : > { %v427_v31 = vpop.f32.mrf.mxu0 }
  0xf2   : > { %v633_v32 = vpack.c.bf16 %v460_v30, %v459_v29  ;;  %v461_v34 = vadd.f32 %v452_v25, %v427_v31 }
  0xf3   : > { %v429_v33 = vpop.f32.mrf.mxu0 }
  0xf4   : > { %475 = vst [vmem:[%s274_s6] sm:$0xff] %v633_v32  ;;  %v462_v35 = vadd.f32 %v456_v26, %v429_v33 }
  0xf6   : > { %v634_v36 = vpack.c.bf16 %v462_v35, %v461_v34 }
  0xf8   : > { %476 = vst [vmem:[%s274_s6 + $0x8] sm:$0xff] %v634_v36 }
  0xf9 PF: > { %s13_s14 = sadd.s32 1, %s706_s14   ;;  %s823_s12 = smov %s702_s13 }
  0xfa   : > { %p10_p5 = scmp.ge.s32.totalorder %s13_s14, 4   ;;  %s824_s13 = smov %s826_s15 }
  0xfc   :  { %12 = sbr.rel (!%p10_p5) target bundleno = 2 (0x2), region = 76 }

// kernel: transformer_decoder.23
= control target key start
LH: loop header
LB: loop body
LE: loop exit
PB: predicated region body
PF: predicated region fallthrough
CT: control target
= control target key end

     0   :  { %s1176_s12 = smov 0   ;;  %s1178_s13 = smov 0   ;;  %s1376_s0 = inlined_call_operand.vmem [shape: bf16[2,16,128], index: 0, kind: input, shape index: {}]   ;;  %s1377_s1 = inlined_call_operand.vmem [shape: bf16[2,16,256], index: 1, kind: input, shape index: {}, may-alias: {1,2}]   ;;  %s1378_s2 = inlined_call_operand.vmem [shape: bf16[2,16,256], index: 2, kind: input, shape index: {}, may-alias: {1,2}]   ;;  %s1379_s3 = inlined_call_operand.vmem [shape: bf16[2,16,128], index: 3, kind: output, shape index: {}]  }
   0x1   :  { %s1180_s14 = smov 0   ;;  %s1182_s15 = smov 0  }
   0x2   :  { %s1184_s16 = smov 0  }
   0x3 LB: > { %s32_s17 = sadd.s32 1, %s1145_s15  ;;  %p76_p1 = scmp.ne.s32.totalorder %s1137_s13, %s1133_s12  ;;  %s1149_s16 = sphi %s1184_s16, %s13_s16   ;;  %s1145_s15 = sphi %s1182_s15, %s1384_s15   ;;  %s1141_s14 = sphi %s1180_s14, %s1383_s14   ;;  %s1137_s13 = sphi %s1178_s13, %s1382_s13   ;;  %s1133_s12 = sphi %s1176_s12, %s1381_s12  }
   0x4   : > { %p34_p0 = scmp.ge.s32.totalorder %s32_s17, 2  ;;  %p77_p2 = scmp.eq.s32.totalorder %s1149_s16, 0 }
   0x5   : > { %s69_s20 = sadd.s32 1, %s1137_s13  ;;  %p962_p5 = scmp.ge.s32.totalorder %s1149_s16, 2 }
   0x6   : > { %s1386_s17 = smov (%p34_p0, %s32_s17), 0  ;;  %p1207_p3 = por %p77_p2, %p76_p1 }
   0x7   : > { %s64_s19 = ssub.s32 %s1145_s15, %s1386_s17  ;;  %158 = sbr.rel (%p962_p5) target bundleno = 22 (0x16), region = 16 }
   0x8   : > { %p67_p4 = scmp.eq.s32.totalorder %s64_s19, 0 }
   0xa   : > { %s1215_s21 = scalar_select %p67_p4, %s1137_s13, %s69_s20  }
   0xc   : > { %174 = sbr.rel (!%p1207_p3) target bundleno = 17 (0x11), region = 24  ;;  %s176_s22 = sand.u32 (%p1207_p3), 1, %s1137_s13  }
   0xd   : > { %s994_s23 = sshll.u32 (%p1207_p3), %s1145_s15, 4  ;;  %s963_s24 = sshll.u32 (%p1207_p3), %s176_s22, 3 }
   0xe   : > { %s184_s27 = scalar_lea.vmem (%p1207_p3), %s1377_s1, %s994_s23  ;;  %s178_s28 = scalar_lea.vmem (%p1207_p3), [#allocation5], %s963_s24 }
   0xf   : > { %v201_v0 = vld [vmem:[%s184_s27] sm:$0xf] (%p1207_p3)  ;;  %v203_v1 = vld [vmem:[%s184_s27 + $0x8] sm:$0xf] (%p1207_p3) }
  0x10   : > { %202 = vst [vmem:[%s178_s28] sm:$0xf] (%p1207_p3), %v201_v0  ;;  %204 = vst [vmem:[%s178_s28 + $0x4] sm:$0xf] (%p1207_p3), %v203_v1 }
  0x11 PF: > { %232 = sbr.rel (!%p1207_p3) target bundleno = 22 (0x16), region = 65  ;;  %s234_s29 = sand.u32 (%p1207_p3), 1, %s1137_s13  }
  0x12   : > { %s995_s30 = sshll.u32 (%p1207_p3), %s1145_s15, 4  ;;  %s966_s4 = sshll.u32 (%p1207_p3), %s234_s29, 3 }
  0x13   : > { %s873_s7 = scalar_lea.vmem (%p1207_p3), %s1378_s2, %s995_s30  ;;  %s236_s8 = scalar_lea.vmem (%p1207_p3), [#allocation6], %s966_s4 }
  0x14   : > { %v969_v2 = vld [vmem:[%s873_s7 + $0x4] sm:$0xf] (%p1207_p3)  ;;  %v970_v3 = vld [vmem:[%s873_s7 + $0xc] sm:$0xf] (%p1207_p3) }
  0x15   : > { %261 = vst [vmem:[%s236_s8] sm:$0xf] (%p1207_p3), %v969_v2  ;;  %263 = vst [vmem:[%s236_s8 + $0x4] sm:$0xf] (%p1207_p3), %v970_v3 }
  0x16 PF: > { %p971_p6 = scmp.ge.s32.totalorder %s1149_s16, 1  ;;  %p290_p7 = scmp.lt.s32.totalorder %s1149_s16, 3 }
  0x18   : > { %p291_p8 = pnand %p971_p6, %p290_p7 }
  0x19   : > { %s297_s9 = sand.u32 (!%p291_p8), 1, %s1133_s12   ;;  %p345_p9 = scmp.lt.s32.totalorder (!%p291_p8), %s1141_s14, 1 }
  0x1a   : > { %294 = sbr.rel (%p291_p8) target bundleno = 1422 (0x58e), region = 106  ;;  %s1237_s10 = sshll.u32 (!%p291_p8), %s297_s9, 3 }
  0x1b   : > { %s299_s11 = scalar_lea.vmem (!%p291_p8), [#allocation5], %s1237_s10  ;;  %s1155_s22 = smov (!%p291_p8), 64  }
  0x1c   : > { %s306_s23 = scalar_lea.vmem (!%p291_p8), [#allocation6], %s1237_s10 }
  0x1f   : > { %vm380_vm0 = vcmask 523264   ;;  %v1151_v4 = vmov 0.0   ;;  %vm1152_vm1 = vmmov 0   ;;  %v1081_v5 = vld [vmem:[%s299_s11] sm:$0xff]   ;;  %s1388_s14 = smov (!%p345_p9, %s1141_s14), 1  ;;  %vm371_vm2 = vcmask 7168  }
  0x20   : > { %1010 = vmatprep.subr.bf16.mxu0 %v1151_v4  ;;  %381 = vst.msk [vmem:[#allocation4] sm:$0xff] %vm380_vm0, %v1151_v4  ;;  %382 = vst.msk [vmem:[#allocation4 + $0x8] sm:$0xff] %vm380_vm0, %v1151_v4  ;;  %1012 = vmatprep.mubr.msk.bf16.mxu0 %vm1152_vm1, %v1151_v4  ;;  %v406_v6 = vsel %vm380_vm0, %v1081_v5, 0  ;;  %s996_s12 = sshll.u32 %s1388_s14, 3  ;;  %v1153_v8 = vmov -inf   ;;  %vm453_vm3 = vcmask 130048  }
  0x21   : > { %383 = vst.msk [vmem:[#allocation4 + $0x10] sm:$0xff] %vm380_vm0, %v1151_v4  ;;  %384 = vst.msk [vmem:[#allocation4 + $0x18] sm:$0xff] %vm380_vm0, %v1151_v4  ;;  %1016 = vmatprep.subr.bf16.mxu1 %v1151_v4  ;;  %1018 = vmatprep.mubr.msk.bf16.mxu1 %vm1152_vm1, %v1151_v4  ;;  %s1267_s20 = scalar_lea.vmem %s1376_s0, %s996_s12  ;;  %v1154_v17 = vmov 0   ;;  %v1083_v18 = vld [vmem:[%s299_s11] sm:$0xff]   ;;  %v1085_v28 = vld [vmem:[%s306_s23] sm:$0xff]   ;;  %s364_s26 = scalar_lea.vmem %s1379_s3, %s996_s12  ;;  %vm790_vm4 = vcmask 519168  }
  0x22   : > { %1011 = vmatpush3.bf16.xpose.msra.mxu0 %v406_v6  ;;  %v1082_v7 = vld [vmem:[%s1267_s20] sm:$0xff]   ;;  %372 = vst.msk [vmem:[#allocation2] sm:$0xff] %vm371_vm2, %v1153_v8  ;;  %373 = vst.msk [vmem:[#allocation2 + $0x8] sm:$0xff] %vm371_vm2, %v1153_v8  ;;  %1079 = vset.pattern.permute.xlu1 %v1154_v17  ;;  %v1086_v58 = vld [vmem:[%s306_s23] sm:$0xff]   ;;  %vm823_vm5 = vcmask 1043968  }
  0x23   : > { %1028 = vmatprep.subr.bf16.mxu0 %v1151_v4  ;;  %374 = vst.msk [vmem:[#allocation2 + $0x10] sm:$0xff] %vm371_vm2, %v1153_v8  ;;  %375 = vst.msk [vmem:[#allocation2 + $0x18] sm:$0xff] %vm371_vm2, %v1153_v8  ;;  %1080 = vset.pattern.permute.xlu0 %v1154_v17  ;;  %v1084_v27 = vld [vmem:[%s1267_s20] sm:$0xff]  }
  0x24   : > { %376 = vst.msk [vmem:[#allocation3] sm:$0xff] %vm371_vm2, %v1151_v4  ;;  %377 = vst.msk [vmem:[#allocation3 + $0x8] sm:$0xff] %vm371_vm2, %v1151_v4  ;;  %1017 = vmatpush3.bf16.msra.mxu1 %v1085_v28 }
  0x25   : > { %378 = vst.msk [vmem:[#allocation3 + $0x10] sm:$0xff] %vm371_vm2, %v1151_v4  ;;  %379 = vst.msk [vmem:[#allocation3 + $0x18] sm:$0xff] %vm371_vm2, %v1151_v4  ;;  %1022 = vmatprep.subr.bf16.mxu1 %v1151_v4 }
  0x29   : > { %1013 = vmatmul.mubr.msk.bf16.vlgmr.msra.gmra.mxu0 %vm380_vm0, %v1082_v7  ;;  %v1291_v19 = vld [vmem:[#allocation2] sm:$0xff]  ;;  %v1296_v22 = vld [vmem:[#allocation2 + $0x8] sm:$0xff] }
  0x2a   : > { %1030 = vmatprep.mubr.msk.bf16.mxu0 %vm1152_vm1, %v1151_v4  ;;  %v640_v53 = vld [vmem:[#allocation2 + $0x10] sm:$0xff]  ;;  %v641_v56 = vld [vmem:[#allocation2 + $0x18] sm:$0xff] }
  0x2b   : > { %v484_v28 = vld [vmem:[#allocation3] sm:$0xff] }
  0xe9   : > { %v442_v9 = vpop.f32.mrf.mxu0 }
  0xea   : > { %v449_v10 = vmul.f32 0.125, %v442_v9 }
  0xeb   : > { %v1014_v11 = vpop.f32.mrf.mxu0 }
  0xec   : > { %v454_v12 = vsel %vm453_vm3, %v449_v10, -inf }
  0xed   : > { %455 = vmax.xlane.f32.xlu0 %v454_v12  ;;  %v445_v13 = vpop.f32.mrf.mxu0 }
  0xee   : > { %v450_v14 = vmul.f32 0.125, %v445_v13 }
  0xef   : > { %v1015_v15 = vpop.f32.mrf.mxu0 }
  0xf0   : > { %v457_v16 = vsel %vm453_vm3, %v450_v14, -inf }
  0xf1   : > { %458 = vmax.xlane.f32.xlu0 %v457_v16 }
 0x107   : > { %588 = vrot.lane.b32.xlu0 %v1083_v18, %s1155_s22  ;;  %v673_v18 = vld [vmem:[#allocation3 + $0x10] sm:$0xff] }
 0x176   : > { %v456_v20 = vpop.xlane.xlu0 %455 }
 0x177   : > { %v1294_v21 = vmax.f32 %v1291_v19, %v456_v20 }
 0x179   : > { %v462_v23 = vsub.f32 %v1291_v19, %v1294_v21  ;;  %568 = vst.msk [vmem:[#allocation2] sm:$0xff] %vm371_vm2, %v1294_v21  ;;  %470 = vperm.xlu1 %1079, %v1294_v21  }
 0x17a   : > { %v459_v24 = vpop.xlane.xlu0 %458 }
 0x17b   : > { %v1304_v25 = vmax.f32 %v1296_v22, %v459_v24  ;;  %v464_v16 = vmul.f32 1.442695, %v462_v23  ;;  %v485_v23 = vld [vmem:[#allocation3 + $0x8] sm:$0xff] }
 0x17d   : > { %v463_v26 = vsub.f32 %v1296_v22, %v1304_v25  ;;  %569 = vst.msk [vmem:[#allocation2 + $0x8] sm:$0xff] %vm371_vm2, %v1304_v25  ;;  %475 = vperm.xlu1 %1079, %v1304_v25  }
 0x17e   : > { %v589_v35 = vpop.permute.xlu0 %588 }
 0x17f   : > { %v594_v38 = vsel %vm380_vm0, %v589_v35, 0  ;;  %v466_v17 = vmul.f32 1.442695, %v463_v26 }
 0x181   : > { %581 = vrot.lane.b32.xlu1 %v1084_v27, %s1155_s22 }
 0x1f4   : > { %v471_v29 = vpop.permute.xlu1 %470 }
 0x1f5   : > { %v478_v30 = vsub.f32 %v449_v10, %v471_v29  ;;  %v674_v29 = vld [vmem:[#allocation3 + $0x18] sm:$0xff] }
 0x1f7   : > { %v480_v31 = vmul.f32 1.442695, %v478_v30 }
 0x1f8   : > { %v476_v32 = vpop.permute.xlu1 %475 }
 0x1f9   : > { %v479_v33 = vsub.f32 %v450_v14, %v476_v32  ;;  %1087 = vpow2.f32 %v480_v31 }
 0x1fb   : > { %v482_v34 = vmul.f32 1.442695, %v479_v33 }
 0x1fc   : > { %v582_v40 = vpop.permute.xlu1 %581 }
 0x1fd   : > { %1089 = vpow2.f32 %v482_v34 }
 0x206   : > { %v1088_v36 = vpop.eup %1087 }
 0x207   : > { %v488_v8 = vsel %vm453_vm3, %v1088_v36, 0.0 }
 0x20a   : > { %v1090_v37 = vpop.eup %1089 }
 0x20b   : > { %v513_v39 = vpack.c.bf16 %v1090_v37, %v1088_v36  ;;  %v491_v12 = vsel %vm453_vm3, %v1090_v37, 0.0 }
 0x20d   : > { %1019 = vmatmul.mubr.msk.bf16.vlgmr.msra.gmra.mxu1 %vm453_vm3, %v513_v39 }
 0x20e   : > { %1023 = vmatpush3.bf16.xpose.msra.mxu1 %v594_v38  ;;  %1024 = vmatprep.mubr.msk.bf16.mxu1 %vm1152_vm1, %v1151_v4 }
 0x215   : > { %1025 = vmatmul.mubr.msk.bf16.vlgmr.msra.gmra.mxu1 %vm380_vm0, %v582_v40 }
 0x2cd   : > { %v1322_v41 = vpop.f32.mrf.mxu1 }
 0x2cf   : > { %v1020_v42 = vpop.f32.mrf.mxu1 }
 0x2d1   : > { %v1324_v43 = vpop.f32.mrf.mxu1 }
 0x2d3   : > { %v1021_v44 = vpop.f32.mrf.mxu1 }
 0x2d5   : > { %v630_v45 = vpop.f32.mrf.mxu1 }
 0x2d6   : > { %v637_v46 = vmul.f32 0.125, %v630_v45 }
 0x2d7   : > { %v1026_v47 = vpop.f32.mrf.mxu1 }
 0x2d8   : > { %v642_v48 = vsel %vm453_vm3, %v637_v46, -inf  ;;  %v688_v47 = vld [vmem:[#allocation4 + $0x10] sm:$0xff] }
 0x2d9   : > { %643 = vmax.xlane.f32.xlu1 %v642_v48  ;;  %v633_v49 = vpop.f32.mrf.mxu1 }
 0x2da   : > { %v638_v50 = vmul.f32 0.125, %v633_v49  ;;  %v689_v49 = vld [vmem:[#allocation4 + $0x18] sm:$0xff] }
 0x2db   : > { %v1027_v51 = vpop.f32.mrf.mxu1 }
 0x2dc   : > { %v645_v52 = vsel %vm453_vm3, %v638_v50, -inf }
 0x2dd   : > { %646 = vmax.xlane.f32.xlu0 %v645_v52 }
 0x362   : > { %v644_v54 = vpop.xlane.xlu1 %643 }
 0x363   : > { %v648_v55 = vmax.f32 %v640_v53, %v644_v54 }
 0x365   : > { %v650_v57 = vsub.f32 %v640_v53, %v648_v55  ;;  %759 = vst.msk [vmem:[#allocation2 + $0x10] sm:$0xff] %vm371_vm2, %v648_v55  ;;  %658 = vperm.xlu1 %1079, %v648_v55  }
 0x366   : > { %v647_v59 = vpop.xlane.xlu0 %646 }
 0x367   : > { %v649_v60 = vmax.f32 %v641_v56, %v647_v59  ;;  %v652_v11 = vmul.f32 1.442695, %v650_v57 }
 0x369   : > { %v651_v61 = vsub.f32 %v641_v56, %v649_v60  ;;  %760 = vst.msk [vmem:[#allocation2 + $0x18] sm:$0xff] %vm371_vm2, %v649_v60  ;;  %663 = vperm.xlu0 %1080, %v649_v60   ;;  %708 = vrot.lane.b32.xlu1 %v1086_v58, %s1155_s22 }
 0x36b   : > { %v654_v13 = vmul.f32 1.442695, %v651_v61  ;;  %v499_v61 = vld [vmem:[#allocation4] sm:$0xff] }
 0x3e0   : > { %v659_v62 = vpop.permute.xlu1 %658 }
 0x3e1   : > { %v666_v63 = vsub.f32 %v637_v46, %v659_v62 }
 0x3e3   : > { %v668_v0 = vmul.f32 1.442695, %v666_v63 }
 0x3e4   : > { %v664_v1 = vpop.permute.xlu0 %663  ;;  %v709_v2 = vpop.permute.xlu1 %708 }
 0x3e5   : > { %1091 = vpow2.f32 %v668_v0  ;;  %v667_v3 = vsub.f32 %v638_v50, %v664_v1  ;;  %1029 = vmatpush3.bf16.msra.mxu0 %v709_v2 }
 0x3e7   : > { %v670_v4 = vmul.f32 1.442695, %v667_v3 }
 0x3e9   : > { %1093 = vpow2.f32 %v670_v4  ;;  %v500_v4 = vld [vmem:[#allocation4 + $0x8] sm:$0xff] }
 0x3ea   : > { %1095 = vpow2.f32 %v652_v11 }
 0x3eb   : > { %1097 = vpow2.f32 %v654_v13 }
 0x3ec   : > { %1099 = vpow2.f32 %v464_v16 }
 0x3ed   : > { %1101 = vpow2.f32 %v466_v17 }
 0x3f2   : > { %v1092_v5 = vpop.eup %1091 }
 0x3f3   : > { %v677_v6 = vsel %vm453_vm3, %v1092_v5, 0.0 }
 0x3f4   : > { %678 = vadd.xlane.f32.xlu1 %v677_v6 }
 0x3f6   : > { %v1094_v7 = vpop.eup %1093 }
 0x3f7   : > { %v680_v9 = vsel %vm453_vm3, %v1094_v7, 0.0  ;;  %v702_v10 = vpack.c.bf16 %v1094_v7, %v1092_v5  ;;  %v1096_v14 = vpop.eup %1095 }
 0x3f8   : > { %489 = vadd.xlane.f32.xlu1 %v488_v8  ;;  %681 = vadd.xlane.f32.xlu0 %v680_v9  ;;  %v1098_v15 = vpop.eup %1097  ;;  %v675_v20 = vmul.f32 %v1096_v14, %v673_v18 }
 0x3f9   : > { %1031 = vmatmul.mubr.msk.bf16.vlgmr.msra.gmra.mxu0 %vm453_vm3, %v702_v10  ;;  %v1100_v24 = vpop.eup %1099  ;;  %v676_v32 = vmul.f32 %v1098_v15, %v674_v29 }
 0x3fa   : > { %v486_v31 = vmul.f32 %v1100_v24, %v484_v28  ;;  %v1102_v33 = vpop.eup %1101 }
 0x3fb   : > { %v487_v22 = vmul.f32 %v1102_v33, %v485_v23 }
 0x3fc   : > { %492 = vadd.xlane.f32.xlu1 %v491_v12 }
 0x40d   : > { %692 = vperm.xlu1 %1079, %v1096_v14  }
 0x411   : > { %697 = vperm.xlu1 %1079, %v1098_v15  }
 0x47d   : > { %v679_v27 = vpop.xlane.xlu1 %678 }
 0x47e   : > { %v683_v30 = vadd.f32 %v679_v27, %v675_v20 }
 0x480   : > { %685 = vst.msk [vmem:[#allocation3 + $0x10] sm:$0xff] %vm371_vm2, %v683_v30 }
 0x481   : > { %v490_v19 = vpop.xlane.xlu1 %489  ;;  %v682_v21 = vpop.xlane.xlu0 %681 }
 0x482   : > { %v494_v34 = vadd.f32 %v490_v19, %v486_v31  ;;  %v684_v35 = vadd.f32 %v682_v21, %v676_v32 }
 0x484   : > { %497 = vst.msk [vmem:[#allocation3] sm:$0xff] %vm371_vm2, %v494_v34  ;;  %686 = vst.msk [vmem:[#allocation3 + $0x18] sm:$0xff] %vm371_vm2, %v684_v35 }
 0x485   : > { %v493_v25 = vpop.xlane.xlu1 %492 }
 0x486   : > { %v495_v26 = vadd.f32 %v493_v25, %v487_v22 }
 0x487   : > { %v793_v36 = vld [vmem:[#allocation3 + $0x10] sm:$0xff] }
 0x488   : > { %498 = vst.msk [vmem:[#allocation3 + $0x8] sm:$0xff] %vm371_vm2, %v495_v26  ;;  %1103 = vrcp.f32 %v793_v36 }
 0x489   : > { %v693_v46 = vpop.permute.xlu1 %692 }
 0x48a   : > { %v700_v48 = vmul.f32 %v693_v46, %v688_v47 }
 0x48b   : > { %v794_v37 = vld [vmem:[#allocation3 + $0x18] sm:$0xff]  ;;  %v764_v38 = vld [vmem:[#allocation3] sm:$0xff] }
 0x48c   : > { %1105 = vrcp.f32 %v794_v37 }
 0x48d   : > { %1107 = vrcp.f32 %v764_v38  ;;  %v698_v50 = vpop.permute.xlu1 %697 }
 0x48e   : > { %v701_v54 = vmul.f32 %v698_v50, %v689_v49 }
 0x48f   : > { %v765_v40 = vld [vmem:[#allocation3 + $0x8] sm:$0xff] }
 0x490   : > { %1109 = vrcp.f32 %v765_v40 }
 0x495   : > { %v1104_v39 = vpop.eup %1103 }
 0x496   : > { %801 = vperm.xlu1 %1079, %v1104_v39  }
 0x499   : > { %v1106_v42 = vpop.eup %1105 }
 0x49a   : > { %503 = vperm.xlu1 %1079, %v1100_v24   ;;  %806 = vperm.xlu0 %1080, %v1106_v42   ;;  %v1108_v44 = vpop.eup %1107 }
 0x49d   : > { %v1110_v45 = vpop.eup %1109 }
 0x49e   : > { %508 = vperm.xlu1 %1079, %v1102_v33  }
 0x4a2   : > { %772 = vperm.xlu1 %1079, %v1108_v44  }
 0x4a6   : > { %777 = vperm.xlu1 %1079, %v1110_v45  }
 0x4b9   : > { %v748_v51 = vpop.f32.mrf.mxu0 }
 0x4ba   : > { %v755_v52 = vadd.f32 %v748_v51, %v700_v48 }
 0x4bb   : > { %v1032_v53 = vpop.f32.mrf.mxu0 }
 0x4bc   : > { %757 = vst.msk [vmem:[#allocation4 + $0x10] sm:$0xff] %vm380_vm0, %v755_v52 }
 0x4bd   : > { %v751_v55 = vpop.f32.mrf.mxu0 }
 0x4be   : > { %v756_v56 = vadd.f32 %v751_v55, %v701_v54 }
 0x4bf   : > { %v1033_v57 = vpop.f32.mrf.mxu0 }
 0x4c0   : > { %758 = vst.msk [vmem:[#allocation4 + $0x18] sm:$0xff] %vm380_vm0, %v756_v56 }
 0x4c3   : > { %v797_v59 = vld [vmem:[#allocation4 + $0x10] sm:$0xff] }
 0x4c7   : > { %v798_v1 = vld [vmem:[#allocation4 + $0x18] sm:$0xff] }
 0x511   : > { %v802_v58 = vpop.permute.xlu1 %801 }
 0x512   : > { %v809_v60 = vmul.f32 %v802_v58, %v797_v59 }
 0x514   : > { %v1000_v62 = vpack.c.bf16 %v809_v60, %v809_v60 }
 0x515   : > { %v504_v63 = vpop.permute.xlu1 %503  ;;  %v807_v0 = vpop.permute.xlu0 %806 }
 0x516   : > { %v511_v2 = vmul.f32 %v504_v63, %v499_v61  ;;  %v810_v3 = vmul.f32 %v807_v0, %v798_v1  ;;  %817 = vrot.lane.b32.xlu1 %v1000_v62, %s1155_s22 }
 0x518   : > { %v564_v5 = vadd.f32 %v1322_v41, %v511_v2  ;;  %v1001_v6 = vpack.c.bf16 %v810_v3, %v810_v3 }
 0x519   : > { %v509_v7 = vpop.permute.xlu1 %508 }
 0x51a   : > { %566 = vst.msk [vmem:[#allocation4] sm:$0xff] %vm380_vm0, %v564_v5  ;;  %v512_v8 = vmul.f32 %v509_v7, %v500_v4  ;;  %819 = vrot.lane.b32.xlu0 %v1001_v6, %s1155_s22 }
 0x51c   : > { %v565_v9 = vadd.f32 %v1324_v43, %v512_v8 }
 0x51d   : > { %v773_v10 = vpop.permute.xlu1 %772 }
 0x51e   : > { %567 = vst.msk [vmem:[#allocation4 + $0x8] sm:$0xff] %vm380_vm0, %v565_v9 }
 0x521   : > { %v768_v11 = vld [vmem:[#allocation4] sm:$0xff]  ;;  %v778_v14 = vpop.permute.xlu1 %777 }
 0x522   : > { %v780_v12 = vmul.f32 %v773_v10, %v768_v11 }
 0x524   : > { %v998_v41 = vpack.c.bf16 %v780_v12, %v780_v12 }
 0x525   : > { %v769_v13 = vld [vmem:[#allocation4 + $0x8] sm:$0xff] }
 0x526   : > { %791 = vst.msk [vmem:[%s364_s26] sm:$0xf] %vm790_vm4, %v998_v41  ;;  %v781_v15 = vmul.f32 %v778_v14, %v769_v13 }
 0x528   : > { %v999_v16 = vpack.c.bf16 %v781_v15, %v781_v15 }
 0x52a   : > { %792 = vst.msk [vmem:[%s364_s26 + $0x4] sm:$0xf] %vm790_vm4, %v999_v16 }
 0x588   : > { %v818_v43 = vpop.permute.xlu1 %817 }
 0x589   : > { %824 = vst.msk [vmem:[%s364_s26] sm:$0xf] %vm823_vm5, %v818_v43 }
 0x58c   : > { %v820_v17 = vpop.permute.xlu0 %819 }
 0x58d   : > { %825 = vst.msk [vmem:[%s364_s26 + $0x4] sm:$0xf] %vm823_vm5, %v820_v17 }
 0x58e PF: > { %s13_s16 = sadd.s32 1, %s1149_s16   ;;  %s1381_s12 = smov %s1137_s13 }
 0x58f   : > { %p10_p10 = scmp.ge.s32.totalorder %s13_s16, 4   ;;  %s1382_s13 = smov %s1215_s21 }
 0x590   : > { %s1383_s14 = smov %s1145_s15  ;;  %s1384_s15 = smov %s1386_s17 }
 0x591   :  { %12 = sbr.rel (!%p10_p10) target bundleno = 3 (0x3), region = 171 }

// kernel: transformer_decoder.25
= control target key start
LH: loop header
LB: loop body
LE: loop exit
PB: predicated region body
PF: predicated region fallthrough
CT: control target
= control target key end

     0   :  { %s733_s12 = smov 0   ;;  %s735_s13 = smov 0   ;;  %s827_s0 = inlined_call_operand.vmem [shape: f32[32,128], index: 0, kind: input, shape index: {}]   ;;  %s828_s1 = inlined_call_operand.vmem [shape: bf16[128,256], index: 1, kind: input, shape index: {}]   ;;  %s829_s2 = inlined_call_operand.vmem [shape: f32[1,256], index: 2, kind: input, shape index: {}]   ;;  %s830_s3 = inlined_call_operand.vmem [shape: bf16[32,256], index: 3, kind: output, shape index: {}]  }
   0x1   :  { %s737_s14 = smov 0  }
   0x2 LB: > { %s32_s15 = sadd.s32 1, %s706_s13  ;;  %p610_p0 = scmp.ge.s32.totalorder %s710_s14, 1  ;;  %s710_s14 = sphi %s737_s14, %s13_s14   ;;  %s706_s13 = sphi %s735_s13, %s832_s13   ;;  %s702_s12 = sphi %s733_s12, %s831_s12  }
   0x3   : > { %p34_p1 = scmp.ge.s32.totalorder %s32_s15, 2  ;;  %p193_p2 = scmp.lt.s32.totalorder %s710_s14, 3 }
   0x5   : > { %s834_s15 = smov (%p34_p1, %s32_s15), 0  ;;  %p194_p3 = pnand %p610_p0, %p193_p2 }
   0x6   : > { %s611_s30 = sshll.u32 (!%p194_p3), %s702_s12, 1 }
   0x7   : > { %197 = sbr.rel (%p194_p3) target bundleno = 251 (0xfb), region = 32  ;;  %p240_p4 = scmp.lt.s32.totalorder (!%p194_p3), %s611_s30, 3 }
   0xc   : > { %v664_v0 = vld [vmem:[%s828_s1 + $0x74] ss:$8 sps:$4 sm:$0xff]   ;;  %v666_v1 = vld [vmem:[%s828_s1 + $0x70] ss:$8 sps:$4 sm:$0xff]   ;;  %v712_v2 = vmov 0   ;;  %s836_s30 = smov (!%p240_p4, %s611_s30), 3  ;;  %v449_v20 = vlaneseq }
   0xd   : > { %421 = vmatprep.mubr.bf16.mxu0 %v712_v2  ;;  %389 = vmatprep.subr.bf16.mxu0 %v664_v0  ;;  %v667_v3 = vld [vmem:[%s828_s1 + $0x64] ss:$8 sps:$4 sm:$0xff]   ;;  %v669_v4 = vld [vmem:[%s828_s1 + $0x60] ss:$8 sps:$4 sm:$0xff]   ;;  %v670_v5 = vld [vmem:[%s828_s1 + $0x54] ss:$8 sps:$4 sm:$0xff]  }
   0xe   : > { %390 = vmatpush1.bf16.msra.mxu0 %v666_v1  ;;  %v672_v6 = vld [vmem:[%s828_s1 + $0x50] ss:$8 sps:$4 sm:$0xff]   ;;  %v673_v7 = vld [vmem:[%s828_s1 + $0x44] ss:$8 sps:$4 sm:$0xff]   ;;  %v675_v8 = vld [vmem:[%s828_s1 + $0x40] ss:$8 sps:$4 sm:$0xff]  }
   0xf   : > { %391 = vmatprep.subr.bf16.mxu0 %v667_v3  ;;  %v676_v9 = vld [vmem:[%s828_s1 + $0x34] ss:$8 sps:$4 sm:$0xff]   ;;  %v678_v10 = vld [vmem:[%s828_s1 + $0x30] ss:$8 sps:$4 sm:$0xff]   ;;  %v679_v11 = vld [vmem:[%s828_s1 + $0x24] ss:$8 sps:$4 sm:$0xff]  }
  0x10   : > { %v681_v12 = vld [vmem:[%s828_s1 + $0x20] ss:$8 sps:$4 sm:$0xff]   ;;  %v682_v13 = vld [vmem:[%s828_s1 + $0x14] ss:$8 sps:$4 sm:$0xff]   ;;  %s612_s19 = sshll.u32 %s836_s30, 3  ;;  %v450_v21 = vshrl.u32 %v449_v20, 7 }
  0x11   : > { %v684_v14 = vld [vmem:[%s828_s1 + $0x10] ss:$8 sps:$4 sm:$0xff]   ;;  %v685_v15 = vld [vmem:[%s828_s1 + $0x4] ss:$8 sps:$4 sm:$0xff]   ;;  %s246_s26 = scalar_lea.vmem %s827_s0, %s612_s19  ;;  %v687_v16 = vld [vmem:[%s828_s1] ss:$8 sps:$4 sm:$0xff]   ;;  %s274_s7 = scalar_lea.vmem %s830_s3, %s612_s19 }
  0x12   : > { %392 = vmatpush1.bf16.msra.mxu0 %v669_v4  ;;  %v290_v17 = vld [vmem:[%s246_s26] sm:$0xff]  ;;  %v291_v18 = vld [vmem:[%s246_s26 + $0x8] sm:$0xff]  ;;  %v451_v22 = vsub.s32 0, %v450_v21  ;;  %v455_v24 = vsub.s32 1, %v450_v21 }
  0x13   : > { %393 = vmatprep.subr.bf16.mxu0 %v670_v5  ;;  %v292_v19 = vpack.c.bf16 %v291_v18, %v290_v17  ;;  %v447_v23 = vld [vmem:[%s829_s2] sm:$0x3] }
  0x14   : > { %v452_v25 = vrot.slane %v447_v23, %v451_v22  ;;  %v456_v26 = vrot.slane %v447_v23, %v455_v24 }
  0x16   : > { %394 = vmatpush1.bf16.msra.mxu0 %v672_v6 }
  0x17   : > { %395 = vmatprep.subr.bf16.mxu0 %v673_v7 }
  0x1a   : > { %396 = vmatpush1.bf16.msra.mxu0 %v675_v8 }
  0x1b   : > { %397 = vmatprep.subr.bf16.mxu0 %v676_v9 }
  0x1e   : > { %398 = vmatpush1.bf16.msra.mxu0 %v678_v10 }
  0x1f   : > { %399 = vmatprep.subr.bf16.mxu0 %v679_v11 }
  0x22   : > { %400 = vmatpush1.bf16.msra.mxu0 %v681_v12 }
  0x23   : > { %401 = vmatprep.subr.bf16.mxu0 %v682_v13 }
  0x26   : > { %402 = vmatpush1.bf16.msra.mxu0 %v684_v14 }
  0x27   : > { %403 = vmatprep.subr.bf16.mxu0 %v685_v15 }
  0x2a   : > { %404 = vmatpush1.bf16.msra.mxu0 %v687_v16 }
  0x2d   : > { %422 = vmatmul.mubr.bf16.vlgmr.msra.gmra.mxu0 %v292_v19 }
  0xed   : > { %v423_v27 = vpop.f32.mrf.mxu0 }
  0xee   : > { %v459_v28 = vadd.f32 %v452_v25, %v423_v27 }
  0xef   : > { %v425_v29 = vpop.f32.mrf.mxu0 }
  0xf0   : > { %v460_v30 = vadd.f32 %v456_v26, %v425_v29  ;;  %v463_v32 = vmax.f32 %v459_v28, 0.0 }
  0xf1   : > { %v427_v31 = vpop.f32.mrf.mxu0 }
  0xf2   : > { %v464_v33 = vmax.f32 %v460_v30, 0.0  ;;  %v461_v34 = vadd.f32 %v452_v25, %v427_v31 }
  0xf3   : > { %v429_v35 = vpop.f32.mrf.mxu0 }
  0xf4   : > { %v637_v36 = vpack.c.bf16 %v464_v33, %v463_v32  ;;  %v462_v37 = vadd.f32 %v456_v26, %v429_v35  ;;  %v465_v38 = vmax.f32 %v461_v34, 0.0 }
  0xf6   : > { %479 = vst [vmem:[%s274_s7] sm:$0xff] %v637_v36  ;;  %v466_v39 = vmax.f32 %v462_v37, 0.0 }
  0xf8   : > { %v638_v40 = vpack.c.bf16 %v466_v39, %v465_v38 }
  0xfa   : > { %480 = vst [vmem:[%s274_s7 + $0x8] sm:$0xff] %v638_v40 }
  0xfb PF: > { %s13_s14 = sadd.s32 1, %s710_s14   ;;  %s831_s12 = smov %s706_s13 }
  0xfc   : > { %p10_p5 = scmp.ge.s32.totalorder %s13_s14, 4   ;;  %s832_s13 = smov %s834_s15 }
  0xfe   :  { %12 = sbr.rel (!%p10_p5) target bundleno = 2 (0x2), region = 76 }

// kernel: transformer_decoder.26
= control target key start
LH: loop header
LB: loop body
LE: loop exit
PB: predicated region body
PF: predicated region fallthrough
CT: control target
= control target key end

     0   :  { %s848_s21 = smov 0   ;;  %s850_s22 = smov 0   ;;  %s946_s0 = inlined_call_operand.vmem [shape: bf16[32,256], index: 0, kind: input, shape index: {}]   ;;  %s947_s1 = inlined_call_operand.vmem [shape: bf16[256,128], index: 1, kind: input, shape index: {}]   ;;  %s948_s2 = inlined_call_operand.vmem [shape: f32[1,128], index: 2, kind: input, shape index: {}]   ;;  %s949_s3 = inlined_call_operand.vmem [shape: f32[32,128], index: 3, kind: input, shape index: {}]   ;;  %s950_s4 = inlined_call_operand.vmem [shape: f32[1,128], index: 4, kind: input, shape index: {}]   ;;  %s951_s5 = inlined_call_operand.vmem [shape: f32[1,128], index: 5, kind: input, shape index: {}]   ;;  %s952_s6 = inlined_call_operand.vmem [shape: f32[32,128], index: 6, kind: output, shape index: {}]  }
   0x1   :  { %s852_s23 = smov 0  }
   0x2 LB: > { %s28_s24 = sadd.s32 1, %s807_s22  ;;  %p688_p0 = scmp.ge.s32.totalorder %s811_s23, 1  ;;  %s811_s23 = sphi %s852_s23, %s16_s23   ;;  %s807_s22 = sphi %s850_s22, %s954_s22   ;;  %s803_s21 = sphi %s848_s21, %s953_s21  }
   0x3   : > { %p30_p1 = scmp.ge.s32.totalorder %s28_s24, 2  ;;  %p255_p2 = scmp.lt.s32.totalorder %s811_s23, 3 }
   0x5   : > { %s956_s24 = smov (%p30_p1, %s28_s24), 0  ;;  %p256_p3 = pnand %p688_p0, %p255_p2 }
   0x6   : > { %s689_s27 = sshll.u32 (!%p256_p3), %s803_s21, 1 }
   0x7   : > { %259 = sbr.rel (%p256_p3) target bundleno = 557 (0x22d), region = 44  ;;  %p302_p4 = scmp.lt.s32.totalorder (!%p256_p3), %s689_s27, 3 }
   0xc   : > { %v766_v0 = vld [vmem:[%s947_s1 + $0x78] sm:$0xff]   ;;  %v768_v2 = vld [vmem:[%s947_s1 + $0x70] sm:$0xff]   ;;  %v770_v4 = vld [vmem:[%s947_s1 + $0x68] sm:$0xff]   ;;  %s958_s27 = smov (!%p302_p4, %s689_s27), 3 }
   0xd   : > { %v767_v1 = vld [vmem:[%s947_s1 + $0x38] sm:$0xff]   ;;  %720 = vmatprep.subr.bf16.mxu0 %v766_v0  ;;  %v769_v3 = vld [vmem:[%s947_s1 + $0x30] sm:$0xff]   ;;  %v771_v5 = vld [vmem:[%s947_s1 + $0x28] sm:$0xff]   ;;  %s890_s18 = sshll.u32 %s958_s27, 3 }
   0xe   : > { %721 = vmatpush3.bf16.msra.mxu0 %v767_v1  ;;  %v772_v6 = vld [vmem:[%s947_s1 + $0x60] sm:$0xff]   ;;  %v774_v8 = vld [vmem:[%s947_s1 + $0x58] sm:$0xff]   ;;  %s309_s26 = scalar_lea.vmem %s946_s0, %s890_s18  ;;  %v776_v10 = vld [vmem:[%s947_s1 + $0x50] sm:$0xff]   ;;  %s322_s20 = scalar_lea.vmem %s949_s3, %s890_s18 }
   0xf   : > { %722 = vmatprep.subr.bf16.mxu0 %v768_v2  ;;  %v773_v7 = vld [vmem:[%s947_s1 + $0x20] sm:$0xff]   ;;  %v775_v9 = vld [vmem:[%s947_s1 + $0x18] sm:$0xff]   ;;  %v777_v12 = vld [vmem:[%s947_s1 + $0x10] sm:$0xff]   ;;  %s328_s8 = scalar_lea.vmem %s952_s6, %s890_s18 }
  0x10   : > { %v784_v11 = vld [vmem:[%s309_s26 + $0x4] ss:$8 sps:$4 sm:$0xff]   ;;  %v782_v17 = vld [vmem:[%s309_s26] ss:$8 sps:$4 sm:$0xff]  }
  0x11   : > { %511 = vmatprep.mubr.bf16.mxu0 %v784_v11  ;;  %v778_v13 = vld [vmem:[%s947_s1 + $0x48] sm:$0xff]   ;;  %v780_v15 = vld [vmem:[%s947_s1 + $0x40] sm:$0xff]  }
  0x12   : > { %723 = vmatpush3.bf16.msra.mxu0 %v769_v3  ;;  %v779_v14 = vld [vmem:[%s947_s1 + $0x8] sm:$0xff]   ;;  %v781_v16 = vld [vmem:[%s947_s1] sm:$0xff]  }
  0x13   : > { %724 = vmatprep.subr.bf16.mxu0 %v770_v4  ;;  %v714_v20 = vld [vmem:[%s948_s2] ss:$0 sm:$0xff]  ;;  %v539_v28 = vld [vmem:[%s322_s20 + $0x8] sm:$0xff] }
  0x14   : > { %v538_v23 = vld [vmem:[%s322_s20] sm:$0xff] }
  0x15   : > { %v715_v46 = vld [vmem:[%s950_s4] ss:$0 sm:$0xff] }
  0x16   : > { %725 = vmatpush3.bf16.msra.mxu0 %v771_v5  ;;  %v716_v48 = vld [vmem:[%s951_s5] ss:$0 sm:$0xff] }
  0x17   : > { %726 = vmatprep.subr.bf16.mxu0 %v772_v6 }
  0x1a   : > { %727 = vmatpush3.bf16.msra.mxu0 %v773_v7 }
  0x1b   : > { %728 = vmatprep.subr.bf16.mxu0 %v774_v8 }
  0x1e   : > { %729 = vmatpush3.bf16.msra.mxu0 %v775_v9 }
  0x1f   : > { %730 = vmatprep.subr.bf16.mxu0 %v776_v10 }
  0x22   : > { %731 = vmatpush3.bf16.msra.mxu0 %v777_v12 }
  0x23   : > { %732 = vmatprep.subr.bf16.mxu0 %v778_v13 }
  0x26   : > { %733 = vmatpush3.bf16.msra.mxu0 %v779_v14 }
  0x27   : > { %734 = vmatprep.subr.bf16.mxu0 %v780_v15 }
  0x2a   : > { %735 = vmatpush3.bf16.msra.mxu0 %v781_v16 }
  0x2d   : > { %512 = vmatmul.mubr.bf16.vlgmr.msra.gmra.mxu0 %v782_v17 }
  0xed   : > { %v736_v18 = vpop.f32.mrf.mxu0 }
  0xef   : > { %v737_v19 = vpop.f32.mrf.mxu0 }
  0xf0   : > { %v738_v21 = vadd.f32 %v737_v19, %v736_v18 }
  0xf1   : > { %v739_v22 = vpop.f32.mrf.mxu0 }
  0xf2   : > { %v536_v24 = vadd.f32 %v738_v21, %v714_v20 }
  0xf3   : > { %v740_v25 = vpop.f32.mrf.mxu0 }
  0xf4   : > { %v741_v26 = vadd.f32 %v740_v25, %v739_v22  ;;  %v540_v27 = vadd.f32 %v538_v23, %v536_v24 }
  0xf6   : > { %v537_v29 = vadd.f32 %v741_v26, %v714_v20  ;;  %542 = vadd.xlane.f32.xlu0 %v540_v27 }
  0xf8   : > { %v541_v30 = vadd.f32 %v539_v28, %v537_v29 }
  0xfa   : > { %544 = vadd.xlane.f32.xlu0 %v541_v30 }
 0x17f   : > { %v543_v31 = vpop.xlane.xlu0 %542 }
 0x180   : > { %v547_v32 = vmul.f32 0.0078125, %v543_v31 }
 0x182   : > { %v549_v33 = vsub.f32 %v540_v27, %v547_v32 }
 0x183   : > { %v545_v34 = vpop.xlane.xlu0 %544 }
 0x184   : > { %v548_v35 = vmul.f32 0.0078125, %v545_v34  ;;  %v551_v36 = vmul.f32 %v549_v33, %v549_v33 }
 0x186   : > { %v550_v37 = vsub.f32 %v541_v30, %v548_v35  ;;  %553 = vadd.xlane.f32.xlu1 %v551_v36 }
 0x188   : > { %v552_v38 = vmul.f32 %v550_v37, %v550_v37 }
 0x18a   : > { %555 = vadd.xlane.f32.xlu1 %v552_v38 }
 0x20f   : > { %v554_v39 = vpop.xlane.xlu1 %553 }
 0x210   : > { %v557_v40 = vmul.f32 0.0078125, %v554_v39 }
 0x212   : > { %v559_v41 = vadd.f32 1e-05, %v557_v40 }
 0x213   : > { %v556_v42 = vpop.xlane.xlu1 %555 }
 0x214   : > { %785 = vrsqrt.f32 %v559_v41  ;;  %v558_v43 = vmul.f32 0.0078125, %v556_v42 }
 0x216   : > { %v560_v44 = vadd.f32 1e-05, %v558_v43 }
 0x218   : > { %787 = vrsqrt.f32 %v560_v44 }
 0x221   : > { %v786_v45 = vpop.eup %785 }
 0x222   : > { %v563_v47 = vmul.f32 %v786_v45, %v549_v33 }
 0x224   : > { %v572_v49 = vmul.f32 %v715_v46, %v563_v47 }
 0x225   : > { %v788_v50 = vpop.eup %787 }
 0x226   : > { %v581_v51 = vadd.f32 %v716_v48, %v572_v49  ;;  %v564_v52 = vmul.f32 %v788_v50, %v550_v37 }
 0x228   : > { %583 = vst [vmem:[%s328_s8] sm:$0xff] %v581_v51  ;;  %v573_v53 = vmul.f32 %v715_v46, %v564_v52 }
 0x22a   : > { %v582_v54 = vadd.f32 %v716_v48, %v573_v53 }
 0x22c   : > { %584 = vst [vmem:[%s328_s8 + $0x8] sm:$0xff] %v582_v54 }
 0x22d PF: > { %s16_s23 = sadd.s32 1, %s811_s23   ;;  %s953_s21 = smov %s807_s22 }
 0x22e   : > { %p13_p5 = scmp.ge.s32.totalorder %s16_s23, 4   ;;  %s954_s22 = smov %s956_s24 }
 0x230   :  { %15 = sbr.rel (!%p13_p5) target bundleno = 2 (0x2), region = 88 }

// kernel: transformer_decoder.27
= control target key start
LH: loop header
LB: loop body
LE: loop exit
PB: predicated region body
PF: predicated region fallthrough
CT: control target
= control target key end

     0   :  { %s885_s12 = smov 0   ;;  %s887_s13 = smov 0   ;;  %s1030_s0 = inlined_call_operand.vmem [shape: f32[32,128], index: 0, kind: input, shape index: {}]   ;;  %s1031_s1 = inlined_call_operand.vmem [shape: bf16[128,384], index: 1, kind: input, shape index: {}]   ;;  %s1032_s2 = inlined_call_operand.vmem [shape: f32[1,384], index: 2, kind: input, shape index: {}]   ;;  %s1033_s3 = inlined_call_operand.vmem [shape: bf16[32,384], index: 3, kind: output, shape index: {}]  }
   0x1   :  { %s889_s14 = smov 0   ;;  %s891_s15 = smov 0  }
   0x2   :  { %s893_s16 = smov 0   ;;  %s895_s17 = smov 0  }
   0x3   :  { %s897_s18 = smov 0   ;;  %s899_s19 = smov 0  }
   0x4   :  { %s901_s20 = smov 0  }
   0x5 LB: > { %s644_s21 = sadd.s32 4294967295, %s861_s20   ;;  %s28_s22 = sadd.s32 1, %s853_s18  ;;  %s861_s20 = sphi %s901_s20, %s13_s20   ;;  %s857_s19 = sphi %s899_s19, %s1042_s19   ;;  %s853_s18 = sphi %s897_s18, %s1041_s18   ;;  %s849_s17 = sphi %s895_s17, %s1040_s17   ;;  %s845_s16 = sphi %s893_s16, %s1039_s16   ;;  %s841_s15 = sphi %s891_s15, %s1038_s15   ;;  %s837_s14 = sphi %s889_s14, %s1037_s14   ;;  %s833_s13 = sphi %s887_s13, %s1036_s13   ;;  %s829_s12 = sphi %s885_s12, %s1035_s12  }
   0x6   : > { %p30_p0 = scmp.ge.s32.totalorder %s28_s22, 3  ;;  %s32_s23 = sadd.s32 1, %s857_s19 }
   0x7   : > { %s69_s24 = sadd.s32 1, %s841_s15  ;;  %p76_p1 = scmp.ne.s32.totalorder %s841_s15, %s837_s14 }
   0x8   : > { %s1044_s22 = smov (%p30_p0, %s28_s22), 0  ;;  %s1046_s23 = smov (!%p30_p0, %s32_s23), %s857_s19 }
   0x9   : > { %s65_s25 = ssub.s32 %s853_s18, %s1044_s22  ;;  %p77_p2 = scmp.eq.s32.totalorder %s861_s20, 0 }
   0xa   : > { %p34_p3 = scmp.ge.s32.totalorder %s1046_s23, 2  ;;  %p67_p4 = scmp.eq.s32.totalorder %s65_s25, 0 }
   0xb   : > { %p78_p5 = por %p77_p2, %p76_p1  ;;  %s123_s26 = sadd.s32 1, %s833_s13 }
   0xc   : > { %s1048_s23 = smov (%p34_p3, %s1046_s23), 0  ;;  %p133_p6 = scmp.ne.s32.totalorder %s833_s13, %s829_s12 }
   0xd   : > { %s946_s27 = scalar_select %p67_p4, %s841_s15, %s69_s24  }
   0xe   : > { %s118_s28 = ssub.s32 %s857_s19, %s1048_s23  ;;  %p134_p7 = scmp.eq.s32.totalorder %s644_s21, 5 }
   0xf   : > { %s120_s29 = sor.u32 %s118_s28, %s65_s25  ;;  %p647_p10 = scmp.ge.s32.totalorder %s861_s20, 6 }
  0x10   : > { %p121_p8 = scmp.eq.s32.totalorder %s120_s29, 0  ;;  %p952_p9 = por %p134_p7, %p133_p6 }
  0x11   : > { %156 = sbr.rel (%p647_p10) target bundleno = 36 (0x24), region = 16 }
  0x12   : > { %s957_s4 = scalar_select %p121_p8, %s833_s13, %s123_s26  }
  0x16   : > { %171 = sbr.rel (!%p78_p5) target bundleno = 36 (0x24), region = 24  ;;  %s173_s5 = sand.u32 (%p78_p5), 1, %s841_s15  }
  0x17   : > { %s649_s6 = sshll.u32 (%p78_p5), %s853_s18, 2  ;;  %s648_s7 = sshll.u32 (%p78_p5), %s173_s5, 6 }
  0x18   : > { %s965_s10 = scalar_lea.vmem (%p78_p5), %s1031_s1, %s649_s6  ;;  %s175_s11 = scalar_lea.vmem (%p78_p5), [#allocation3], %s648_s7 }
  0x19   : > { %v197_v0 = vld [vmem:[%s965_s10] sm:$0xf] (%p78_p5)  ;;  %v199_v1 = vld [vmem:[%s965_s10 + $0xc] sm:$0xf] (%p78_p5)  ;;  %v201_v2 = vld [vmem:[%s965_s10 + $0x18] sm:$0xf] (%p78_p5) }
  0x1a   : > { %198 = vst [vmem:[%s175_s11] sm:$0xf] (%p78_p5), %v197_v0  ;;  %200 = vst [vmem:[%s175_s11 + $0x4] sm:$0xf] (%p78_p5), %v199_v1  ;;  %v203_v3 = vld [vmem:[%s965_s10 + $0x24] sm:$0xf] (%p78_p5) }
  0x1b   : > { %v205_v4 = vld [vmem:[%s965_s10 + $0x30] sm:$0xf]  ;;  %202 = vst [vmem:[%s175_s11 + $0x8] sm:$0xf] %v201_v2  ;;  %204 = vst [vmem:[%s175_s11 + $0xc] sm:$0xf] %v203_v3 }
  0x1c   : > { %206 = vst [vmem:[%s175_s11 + $0x10] sm:$0xf] %v205_v4  ;;  %v207_v5 = vld [vmem:[%s965_s10 + $0x3c] sm:$0xf]  ;;  %v209_v6 = vld [vmem:[%s965_s10 + $0x48] sm:$0xf] }
  0x1d   : > { %v211_v7 = vld [vmem:[%s965_s10 + $0x54] sm:$0xf]  ;;  %208 = vst [vmem:[%s175_s11 + $0x14] sm:$0xf] %v207_v5  ;;  %210 = vst [vmem:[%s175_s11 + $0x18] sm:$0xf] %v209_v6 }
  0x1e   : > { %212 = vst [vmem:[%s175_s11 + $0x1c] sm:$0xf] %v211_v7  ;;  %v213_v8 = vld [vmem:[%s965_s10 + $0x60] sm:$0xf]  ;;  %v215_v9 = vld [vmem:[%s965_s10 + $0x6c] sm:$0xf] }
  0x1f   : > { %v217_v10 = vld [vmem:[%s965_s10 + $0x78] sm:$0xf]  ;;  %214 = vst [vmem:[%s175_s11 + $0x20] sm:$0xf] %v213_v8  ;;  %216 = vst [vmem:[%s175_s11 + $0x24] sm:$0xf] %v215_v9 }
  0x20   : > { %218 = vst [vmem:[%s175_s11 + $0x28] sm:$0xf] %v217_v10  ;;  %v219_v11 = vld [vmem:[%s965_s10 + $0x84] sm:$0xf]  ;;  %v221_v12 = vld [vmem:[%s965_s10 + $0x90] sm:$0xf] }
  0x21   : > { %v223_v13 = vld [vmem:[%s965_s10 + $0x9c] sm:$0xf]  ;;  %220 = vst [vmem:[%s175_s11 + $0x2c] sm:$0xf] %v219_v11  ;;  %222 = vst [vmem:[%s175_s11 + $0x30] sm:$0xf] %v221_v12 }
  0x22   : > { %224 = vst [vmem:[%s175_s11 + $0x34] sm:$0xf] %v223_v13  ;;  %v225_v14 = vld [vmem:[%s965_s10 + $0xa8] sm:$0xf]  ;;  %v227_v15 = vld [vmem:[%s965_s10 + $0xb4] sm:$0xf] }
  0x23   : > { %226 = vst [vmem:[%s175_s11 + $0x38] sm:$0xf] %v225_v14  ;;  %228 = vst [vmem:[%s175_s11 + $0x3c] sm:$0xf] %v227_v15 }
  0x24 PF: > { %p650_p11 = scmp.ge.s32.totalorder %s861_s20, 1  ;;  %p289_p12 = scmp.lt.s32.totalorder %s861_s20, 7 }
  0x26   : > { %p290_p13 = pnand %p650_p11, %p289_p12 }
  0x27   : > { %s296_s21 = sand.u32 (!%p290_p13), 1, %s837_s14   ;;  %s653_s26 = sshll.u32 (!%p290_p13), %s849_s17, 1 }
  0x28   : > { %293 = sbr.rel (%p290_p13) target bundleno = 288 (0x120), region = 69  ;;  %s651_s24 = sshll.u32 (!%p290_p13), %s296_s21, 6 }
  0x29   : > { %s298_s25 = scalar_lea.vmem (!%p290_p13), [#allocation3], %s651_s24  ;;  %p330_p0 = scmp.lt.s32.totalorder (!%p290_p13), %s653_s26, 3 }
  0x2a   : > { %p339_p1 = scmp.lt.s32.totalorder (!%p290_p13), %s845_s16, 2  ;;  %s326_s10 = sand.u32 (!%p290_p13), 1, %s829_s12  }
  0x2b   : > { %s652_s11 = sshll.u32 (!%p290_p13), %s326_s10, 3 }
  0x2c   : > { %s328_s21 = scalar_lea.vmem (!%p290_p13), [#allocation4], %s652_s11 }
  0x2d   : > { %v863_v16 = vmov 0.0   ;;  %vm864_vm0 = vmmov 0   ;;  %v783_v17 = vld [vmem:[%s298_s25 + $0x38] sm:$0xff]   ;;  %v784_v18 = vld [vmem:[%s298_s25 + $0x30] sm:$0xff]   ;;  %v785_v19 = vld [vmem:[%s298_s25 + $0x28] sm:$0xff]   ;;  %s1050_s26 = smov (!%p330_p0, %s653_s26), 3 }
  0x2e   : > { %688 = vmatprep.subr.bf16.mxu0 %v863_v16  ;;  %704 = vmatprep.mubr.msk.bf16.mxu0 %vm864_vm0, %v863_v16  ;;  %v786_v20 = vld [vmem:[%s298_s25 + $0x20] sm:$0xff]   ;;  %v787_v21 = vld [vmem:[%s298_s25 + $0x18] sm:$0xff]   ;;  %v788_v22 = vld [vmem:[%s298_s25 + $0x10] sm:$0xff]   ;;  %s654_s14 = sshll.u32 %s1050_s26, 3  ;;  %s708_s24 = smul.u32 (%p952_p9), 6, %s849_s17 }
  0x2f   : > { %689 = vmatpush3.bf16.msra.mxu0 %v783_v17  ;;  %v789_v23 = vld [vmem:[%s298_s25 + $0x8] sm:$0xff]   ;;  %s336_s5 = scalar_lea.vmem %s1030_s0, %s654_s14  ;;  %v790_v24 = vld [vmem:[%s298_s25] sm:$0xff]  }
  0x30   : > { %690 = vmatprep.subr.bf16.mxu0 %v863_v16  ;;  %v352_v25 = vld [vmem:[%s336_s5] sm:$0xff]  ;;  %v353_v26 = vld [vmem:[%s336_s5 + $0x8] sm:$0xff]  ;;  %s340_s6 = scalar_select %p339_p1, %s845_s16, 2 }
  0x31   : > { %v354_v27 = vpack.c.bf16 %v353_v26, %v352_v25  ;;  %s497_s25 = sadd.s32 (%p952_p9), %s845_s16, %s708_s24 }
  0x32   : > { %s341_s9 = scalar_lea.vmem %s1032_s2, %s340_s6  ;;  %s669_s12 = sshll.u32 (%p952_p9), %s497_s25, 2 }
  0x33   : > { %691 = vmatpush3.bf16.msra.mxu0 %v784_v18  ;;  %v663_v29 = vld [vmem:[%s341_s9] ss:$0 sm:$0xff]  ;;  %s499_s28 = scalar_lea.vmem (%p952_p9), %s1033_s3, %s669_s12 }
  0x34   : > { %692 = vmatprep.subr.bf16.mxu0 %v863_v16 }
  0x37   : > { %693 = vmatpush3.bf16.msra.mxu0 %v785_v19 }
  0x38   : > { %694 = vmatprep.subr.bf16.mxu0 %v863_v16 }
  0x3b   : > { %695 = vmatpush3.bf16.msra.mxu0 %v786_v20 }
  0x3c   : > { %696 = vmatprep.subr.bf16.mxu0 %v863_v16 }
  0x3f   : > { %697 = vmatpush3.bf16.msra.mxu0 %v787_v21 }
  0x40   : > { %698 = vmatprep.subr.bf16.mxu0 %v863_v16 }
  0x43   : > { %699 = vmatpush3.bf16.msra.mxu0 %v788_v22 }
  0x44   : > { %700 = vmatprep.subr.bf16.mxu0 %v863_v16 }
  0x47   : > { %701 = vmatpush3.bf16.msra.mxu0 %v789_v23 }
  0x48   : > { %702 = vmatprep.subr.bf16.mxu0 %v863_v16 }
  0x4b   : > { %703 = vmatpush3.bf16.msra.mxu0 %v790_v24 }
  0x4e   : > { %705 = vmatmul.mubr.bf16.vlgmr.msra.gmra.mxu0 %v354_v27 }
 0x10e   : > { %v453_v28 = vpop.f32.mrf.mxu0 }
 0x10f   : > { %v476_v32 = vadd.f32 %v663_v29, %v453_v28 }
 0x110   : > { %v706_v30 = vpop.f32.mrf.mxu0 }
 0x112   : > { %v456_v31 = vpop.f32.mrf.mxu0 }
 0x113   : > { %v477_v33 = vadd.f32 %v663_v29, %v456_v31  ;;  %494 = sbr.rel (!%p952_p9) target bundleno = 288 (0x120), region = 85 }
 0x114   : > { %v707_v34 = vpop.f32.mrf.mxu0 }
 0x115   : > { %v677_v35 = vpack.c.bf16 %v477_v33, %v476_v32 }
 0x117   : > { %678 = vst [vmem:[%s328_s21] sm:$0xff] %v677_v35  }
 0x11e   : > { %v516_v36 = vld [vmem:[%s328_s21] sm:$0xf]  ;;  %v518_v37 = vld [vmem:[%s328_s21 + $0x4] sm:$0xf] }
 0x11f   : > { %517 = vst [vmem:[%s499_s28] sm:$0xf] %v516_v36  ;;  %519 = vst [vmem:[%s499_s28 + $0xc] sm:$0xf] %v518_v37 }
 0x120 PF: > { %s13_s20 = sadd.s32 1, %s861_s20   ;;  %s1035_s12 = smov %s833_s13 }
 0x121   : > { %p10_p2 = scmp.ge.s32.totalorder %s13_s20, 8   ;;  %s1036_s13 = smov %s957_s4 }
 0x122   : > { %s1037_s14 = smov %s841_s15  ;;  %s1038_s15 = smov %s946_s27 }
 0x123   : > { %s1039_s16 = smov %s853_s18  ;;  %s1040_s17 = smov %s857_s19 }
 0x124   : > { %s1041_s18 = smov %s1044_s22  ;;  %s1042_s19 = smov %s1048_s23 }
 0x125   :  { %12 = sbr.rel (!%p10_p2) target bundleno = 5 (0x5), region = 163 }

// kernel: transformer_decoder.35
= control target key start
LH: loop header
LB: loop body
LE: loop exit
PB: predicated region body
PF: predicated region fallthrough
CT: control target
= control target key end

     0   :  { %11 = vsyncpa [#allocation4], 0  ;;  %s1134_s0 = inlined_call_operand.vmem [shape: bf16[32,256], index: 0, kind: input, shape index: {}]   ;;  %s1135_s1 = inlined_call_operand.vmem [shape: bf16[256,128], index: 1, kind: input, shape index: {}]   ;;  %s1136_s2 = inlined_call_operand.vmem [shape: f32[1,128], index: 2, kind: input, shape index: {}]   ;;  %s1137_s3 = inlined_call_operand.vmem [shape: f32[32,128], index: 3, kind: input, shape index: {}]   ;;  %s1138_s4 = inlined_call_operand.vmem [shape: f32[1,128], index: 4, kind: input, shape index: {}]   ;;  %s1139_s5 = inlined_call_operand.vmem [shape: f32[1,128], index: 5, kind: input, shape index: {}]   ;;  %s1140_s6 = inlined_call_operand.hbm [shape: f32[32,128], index: 6, kind: output, shape index: {}]  }
   0x1   :  { %13 = vsyncpa [#allocation4 + $0x1], 0  ;;  %s958_s21 = smov 0   ;;  %s960_s22 = smov 0  }
   0x2   :  { %s962_s23 = smov 0   ;;  %s964_s24 = smov 0  }
   0x3   :  { %s966_s25 = smov 0   ;;  %s968_s26 = smov 0  }
   0x4 LB: > { %s700_s27 = sadd.s32 4294967295, %s918_s26   ;;  %s701_s28 = sadd.s32 4294967294, %s918_s26   ;;  %s918_s26 = sphi %s968_s26, %s19_s26   ;;  %s914_s25 = sphi %s966_s25, %s1147_s25   ;;  %s910_s24 = sphi %s964_s24, %s1146_s24   ;;  %s906_s23 = sphi %s962_s23, %s1145_s23   ;;  %s902_s22 = sphi %s960_s22, %s1144_s22   ;;  %s898_s21 = sphi %s958_s21, %s1143_s21  }
   0x5   : > { %s31_s29 = sadd.s32 1, %s914_s25  ;;  %s181_s30 = sadd.s32 1, %s906_s23 }
   0x6   : > { %p33_p0 = scmp.ge.s32.totalorder %s31_s29, 2  ;;  %p191_p1 = scmp.ne.s32.totalorder %s906_s23, %s902_s22 }
   0x7   : > { %p192_p2 = scmp.eq.s32.totalorder %s700_s27, 1  ;;  %p197_p3 = scmp.ne.s32.totalorder %s902_s22, %s898_s21 }
   0x8   : > { %s1149_s29 = smov (%p33_p0, %s31_s29), 0  ;;  %p198_p5 = scmp.eq.s32.totalorder %s701_s28, 1 }
   0x9   : > { %p998_p4 = por %p192_p2, %p191_p1  ;;  %s178_s8 = ssub.s32 %s914_s25, %s1149_s29 }
   0xa   : > { %p705_p6 = scmp.ge.s32.totalorder %s918_s26, 1  ;;  %p179_p7 = scmp.eq.s32.totalorder %s178_s8, 0 }
   0xb   : > { %p1005_p8 = por %p198_p5, %p197_p3  ;;  %p258_p9 = scmp.lt.s32.totalorder %s918_s26, 3 }
   0xc   : > { %s1011_s10 = scalar_select %p179_p7, %s906_s23, %s181_s30  }
   0xd   : > { %p259_p10 = pnand %p705_p6, %p258_p9 }
   0xe   : > { %s707_s13 = sshll.u32 (!%p259_p10), %s910_s24, 1  ;;  %s739_s19 = sshll.u32 (!%p259_p10), %s910_s24, 8 }
   0xf   : > { %262 = sbr.rel (%p259_p10) target bundleno = 578 (0x242), region = 44  ;;  %p305_p11 = scmp.lt.s32.totalorder (!%p259_p10), %s707_s13, 3 }
  0x10   : > { %s920_s24 = smov (!%p259_p10), [#allocation3]  }
  0x14   : > { %v819_v0 = vld [vmem:[%s1135_s1 + $0x78] sm:$0xff]   ;;  %v821_v2 = vld [vmem:[%s1135_s1 + $0x70] sm:$0xff]   ;;  %v823_v4 = vld [vmem:[%s1135_s1 + $0x68] sm:$0xff]   ;;  %s1151_s13 = smov (!%p305_p11, %s707_s13), 3 }
  0x15   : > { %v820_v1 = vld [vmem:[%s1135_s1 + $0x38] sm:$0xff]   ;;  %740 = vmatprep.subr.bf16.mxu0 %v819_v0  ;;  %v822_v3 = vld [vmem:[%s1135_s1 + $0x30] sm:$0xff]   ;;  %v824_v5 = vld [vmem:[%s1135_s1 + $0x28] sm:$0xff]   ;;  %s738_s15 = sshll.u32 %s1151_s13, 3 }
  0x16   : > { %741 = vmatpush3.bf16.msra.mxu0 %v820_v1  ;;  %v825_v6 = vld [vmem:[%s1135_s1 + $0x60] sm:$0xff]   ;;  %v827_v8 = vld [vmem:[%s1135_s1 + $0x58] sm:$0xff]   ;;  %s312_s20 = scalar_lea.vmem %s1134_s0, %s738_s15  ;;  %v829_v10 = vld [vmem:[%s1135_s1 + $0x50] sm:$0xff]   ;;  %s325_s13 = scalar_lea.vmem %s1137_s3, %s738_s15 }
  0x17   : > { %742 = vmatprep.subr.bf16.mxu0 %v821_v2  ;;  %v826_v7 = vld [vmem:[%s1135_s1 + $0x20] sm:$0xff]   ;;  %v828_v9 = vld [vmem:[%s1135_s1 + $0x18] sm:$0xff]   ;;  %v830_v12 = vld [vmem:[%s1135_s1 + $0x10] sm:$0xff]   ;;  %s300_s15 = sand.u32 1, %s902_s22  }
  0x18   : > { %v837_v11 = vld [vmem:[%s312_s20 + $0x4] ss:$8 sps:$4 sm:$0xff]   ;;  %v835_v17 = vld [vmem:[%s312_s20] ss:$8 sps:$4 sm:$0xff]   ;;  %s706_s16 = sshll.u32 %s300_s15, 4  ;;  %s1089_s11 = scalar_lea.sflag [#allocation4], %s300_s15 }
  0x19   : > { %509 = vmatprep.mubr.bf16.mxu0 %v837_v11  ;;  %v831_v13 = vld [vmem:[%s1135_s1 + $0x48] sm:$0xff]   ;;  %v833_v15 = vld [vmem:[%s1135_s1 + $0x40] sm:$0xff]   ;;  %s302_s27 = scalar_lea.vmem [#allocation3], %s706_s16  ;;  %s846_s20 = sshll.u32 %s920_s24, 4  ;;  %s847_s20 = int_to_ptr.vmem [resolvable:$false] %s846_s20 }
  0x1a   : > { %743 = vmatpush3.bf16.msra.mxu0 %v822_v3  ;;  %v832_v14 = vld [vmem:[%s1135_s1 + $0x8] sm:$0xff]   ;;  %v834_v16 = vld [vmem:[%s1135_s1] sm:$0xff]   ;;  %s597_s28 = sshll.u32 %s302_s27, 4  ;;  %s848_s14 = scalar_lea.vmem %s847_s20, 512  ;;  %s1087_s28 = int_to_ptr.vmem [resolvable:$true] %s597_s28 }
  0x1b   : > { %744 = vmatprep.subr.bf16.mxu0 %v823_v4  ;;  %v730_v20 = vld [vmem:[%s1136_s2] ss:$0 sm:$0xff]  ;;  %v537_v28 = vld [vmem:[%s325_s13 + $0x8] sm:$0xff]  ;;  %s842_s12 = scalar_lea.vmem %s1087_s28, 256  ;;  %p849_p1 = scmp.lt.s32.totalorder %s1087_s28, %s847_s20 }
  0x1c   : > { %v536_v23 = vld [vmem:[%s325_s13] sm:$0xff]  ;;  %s1085_s13 = scalar_lea.hbm %s1140_s6, %s739_s19  ;;  %p843_p12 = scmp.ne.s32.totalorder %s1087_s28, %s842_s12 }
  0x1d   : > { %v731_v46 = vld [vmem:[%s1138_s4] ss:$0 sm:$0xff]  ;;  %p850_p2 = scmp.lt.s32.totalorder %s848_s14, %s842_s12 }
  0x1e   : > { %745 = vmatpush3.bf16.msra.mxu0 %v824_v5  ;;  %v732_v48 = vld [vmem:[%s1139_s5] ss:$0 sm:$0xff]  ;;  %p844_p13 = pnand %p843_p12, %p998_p4 }
  0x1f   : > { %746 = vmatprep.subr.bf16.mxu0 %v825_v6  ;;  %p851_p3 = por %p850_p2, %p849_p1 }
  0x20   : > { %p845_p0 = pneg %p844_p13 }
  0x22   : > { %747 = vmatpush3.bf16.msra.mxu0 %v826_v7  ;;  %p852_p5 = pnand %p851_p3, %p845_p0 }
  0x23   : > { %748 = vmatprep.subr.bf16.mxu0 %v827_v8 }
  0x26   : > { %749 = vmatpush3.bf16.msra.mxu0 %v828_v9 }
  0x27   : > { %750 = vmatprep.subr.bf16.mxu0 %v829_v10 }
  0x2a   : > { %751 = vmatpush3.bf16.msra.mxu0 %v830_v12 }
  0x2b   : > { %752 = vmatprep.subr.bf16.mxu0 %v831_v13 }
  0x2e   : > { %753 = vmatpush3.bf16.msra.mxu0 %v832_v14 }
  0x2f   : > { %754 = vmatprep.subr.bf16.mxu0 %v833_v15 }
  0x32   : > { %755 = vmatpush3.bf16.msra.mxu0 %v834_v16 }
  0x35   : > { %510 = vmatmul.mubr.bf16.vlgmr.msra.gmra.mxu0 %v835_v17 }
  0xf5   : > { %v756_v18 = vpop.f32.mrf.mxu0 }
  0xf7   : > { %v757_v19 = vpop.f32.mrf.mxu0 }
  0xf8   : > { %v758_v21 = vadd.f32 %v757_v19, %v756_v18 }
  0xf9   : > { %v759_v22 = vpop.f32.mrf.mxu0 }
  0xfa   : > { %v534_v24 = vadd.f32 %v758_v21, %v730_v20 }
  0xfb   : > { %v760_v25 = vpop.f32.mrf.mxu0 }
  0xfc   : > { %v761_v26 = vadd.f32 %v760_v25, %v759_v22  ;;  %v538_v27 = vadd.f32 %v536_v23, %v534_v24 }
  0xfe   : > { %v535_v29 = vadd.f32 %v761_v26, %v730_v20  ;;  %540 = vadd.xlane.f32.xlu0 %v538_v27 }
 0x100   : > { %v539_v30 = vadd.f32 %v537_v28, %v535_v29 }
 0x102   : > { %542 = vadd.xlane.f32.xlu0 %v539_v30 }
 0x187   : > { %v541_v31 = vpop.xlane.xlu0 %540 }
 0x188   : > { %v545_v32 = vmul.f32 0.0078125, %v541_v31 }
 0x18a   : > { %v547_v33 = vsub.f32 %v538_v27, %v545_v32 }
 0x18b   : > { %v543_v34 = vpop.xlane.xlu0 %542 }
 0x18c   : > { %v546_v35 = vmul.f32 0.0078125, %v543_v34  ;;  %v549_v36 = vmul.f32 %v547_v33, %v547_v33 }
 0x18e   : > { %v548_v37 = vsub.f32 %v539_v30, %v546_v35  ;;  %551 = vadd.xlane.f32.xlu1 %v549_v36 }
 0x190   : > { %v550_v38 = vmul.f32 %v548_v37, %v548_v37 }
 0x192   : > { %553 = vadd.xlane.f32.xlu1 %v550_v38 }
 0x217   : > { %v552_v39 = vpop.xlane.xlu1 %551 }
 0x218   : > { %v555_v40 = vmul.f32 0.0078125, %v552_v39 }
 0x21a   : > { %v557_v41 = vadd.f32 1e-05, %v555_v40 }
 0x21b   : > { %v554_v42 = vpop.xlane.xlu1 %553 }
 0x21c   : > { %838 = vrsqrt.f32 %v557_v41  ;;  %v556_v43 = vmul.f32 0.0078125, %v554_v42 }
 0x21e   : > { %v558_v44 = vadd.f32 1e-05, %v556_v43 }
 0x220   : > { %840 = vrsqrt.f32 %v558_v44 }
 0x229   : > { %v839_v45 = vpop.eup %838 }
 0x22a   : > { %v561_v47 = vmul.f32 %v839_v45, %v547_v33 }
 0x22c   : > { %v570_v49 = vmul.f32 %v731_v46, %v561_v47 }
 0x22d   : > { %v841_v50 = vpop.eup %840 }
 0x22e   : > { %v562_v51 = vmul.f32 %v841_v50, %v548_v37  ;;  %v579_v52 = vadd.f32 %v732_v48, %v570_v49 }
 0x230   : > { %v571_v53 = vmul.f32 %v731_v46, %v562_v51  ;;  %581 = vst [vmem:[%s302_s27] sm:$0xff] %v579_v52 }
 0x232   : > { %v580_v54 = vadd.f32 %v732_v48, %v571_v53 }
 0x234   : > { %582 = vst [vmem:[%s302_s27 + $0x8] sm:$0xff] %v580_v54 }
 0x235   : > { %855 = shalt.err (!%p852_p5)
}
 0x236   : > { %s856_s15 = scalar_lea.hbm %s1085_s13, 256  ;;  %s860_s18 = scalar_lea.hbm %s1140_s6, 512 }
 0x237   : > { %p857_p6 = scmp.ne.s32.totalorder %s1085_s13, %s856_s15  ;;  %p861_p10 = scmp.lt.s32.totalorder %s1085_s13, %s1140_s6 }
 0x238   : > { %p862_p11 = scmp.lt.s32.totalorder %s860_s18, %s856_s15 }
 0x239   : > { %p858_p7 = pnand %p857_p6, %p998_p4 }
 0x23a   : > { %p863_p12 = por %p862_p11, %p861_p10 }
 0x23b   : > { %p859_p9 = pneg %p858_p7 }
 0x23d   : > { %p864_p13 = pnand %p863_p12, %p859_p9 }
 0x23f   : > { %867 = shalt.err (!%p864_p13)
}
 0x240   : > { %s921_s30 = smov 128   ;;  %s922_s8 = smov 8  }
 0x241   : > { %762 = dma.vmem_to_hbm [thread:$0]  (%p998_p4), %s1087_s28, 256, %s1085_s13, %s1089_s11, %s921_s30, %s921_s30, %s922_s8  }
 0x242 PF: > { %p768_p0 = scmp.ge.s32.totalorder %s918_s26, 2  ;;  %s612_s12 = sand.u32 1, %s898_s21  }
 0x243   : > { %s613_s24 = scalar_lea.sflag [#allocation4], %s612_s12 }
 0x244   : > { %p765_p1 = pnand %p768_p0, %p1005_p8 }
 0x246   : > { %p766_p2 = pneg %p765_p1 }
 0x248   : > { %893 = dma.done.wait (%p766_p2), %s613_s24, 256  }
 0x249   : > { %895 = vsyncadd (%p766_p2), %s613_s24, 4294967040  ;;  %s19_s26 = sadd.s32 1, %s918_s26   ;;  %s1143_s21 = smov %s902_s22 }
 0x24a   : > { %p16_p3 = scmp.ge.s32.totalorder %s19_s26, 4   ;;  %s1144_s22 = smov %s906_s23 }
 0x24b   : > { %s1145_s23 = smov %s1011_s10  ;;  %s1146_s24 = smov %s914_s25 }
 0x24c   : > { %s1147_s25 = smov %s1149_s29  ;;  %18 = sbr.rel (!%p16_p3) target bundleno = 4 (0x4), region = 93 }
 0x251   :  { %618 = vsyncpa [#allocation4], 1 }
 0x252   :  { %620 = vsyncpa [#allocation4 + $0x1], 1 }

</bundles_post_ra>
